<compile_context>
chip_gen: v7x
topology: tpu7x:2x2x1
jax: 0.10.0
libtpu: 0.0.40
codegen_flags: <defaults>
</compile_context>

<pallas_src>
import jax
import jax.numpy as jnp
from jax.experimental import pallas as pl
from jax.experimental.pallas import tpu as pltpu

_LANE = 128


def _round_up(x, m):
    return (x + m - 1) // m * m


def _divisors(n):
    ds = set()
    d = 1
    while d * d <= n:
        if n % d == 0:
            ds.add(d)
            ds.add(n // d)
        d += 1
    return sorted(ds)


def _vmem_budgets():
    """Generation-aware (scoped-VMEM limit, per-step working-set budget)."""
    phys = None
    try:
        phys = getattr(pltpu.get_tpu_info(), "vmem_capacity_bytes", None)
    except Exception:
        phys = None
    if not phys:
        phys = 64 * 1024 * 1024            # conservative default (v7x: 64 MiB / TensorCore)
    limit = max(32 * 1024 * 1024, min(int(phys * 3 // 4), 96 * 1024 * 1024))
    return limit // 3, limit


def _pick_conv_block(N, H, W, Ci, Cm, y_item, mxu_item, budget):
    """Largest (batch-block, row-band) pair (divisors of N, H) fitting the step budget."""
    w1_bytes = 9 * Ci * Cm * mxu_item                       # single-buffered constant weight

    def step_bytes(nb, hb):
        pix = nb * hb * W
        halo = nb * (hb + 2) * (W + 2) * Ci * mxu_item      # padded-input VMEM scratch
        xin = 2 * (nb * hb * W * Ci + 2 * nb * W * Ci) * mxu_item   # main + 2 halo rows, dbl-buf
        yout = 2 * pix * Cm * y_item                        # double-buffered output block
        patch = pix * 9 * Ci * mxu_item                     # im2col operand
        acc = pix * Cm * 4                                  # f32 matmul result
        return w1_bytes + halo + xin + yout + patch + acc

    best, best_pix = (1, 1), 0
    for nb in _divisors(N):
        for hb in _divisors(H):
            if step_bytes(nb, hb) <= budget and nb * hb > best_pix:
                best, best_pix = (nb, hb), nb * hb
    # TODO(synk): add a W-tile axis (second halo dim) for images where even (1, 1) doesn't fit.
    return best


def _pick_rows_block(M, Cm, Co, y_item, mxu_item, budget):
    """Largest pixel-row block for Kernel B (independent of Kernel A's block)."""
    w2_bytes = Cm * Co * mxu_item

    def step_bytes(bm):
        return (w2_bytes
                + 2 * bm * Cm * y_item          # y1 in (double-buffered)
                + 2 * bm * Co * 4               # out (double-buffered)
                + bm * Cm * 4                   # f32 BN temp
                + bm * Cm * mxu_item            # z cast for the MXU
                + bm * Co * 4)                  # f32 matmul result

    best = None
    for d in _divisors(M):
        if (d % 8 == 0 or d == M) and step_bytes(d) <= budget:
            if best is None or d > best:
                best = d
    if best is None:
        cands = [d for d in _divisors(M) if d % 8 == 0 or d == M]
        best = min(cands) if cands else M
    return best


# ----------------------- Kernel A: conv3x3 (im2col) + partial batch stats -----------------------
def _conv3x3_stats_kernel(x_ref, xtop_ref, xbot_ref, w_ref, y_ref, sum_ref, ssq_ref, xp_ref):
    # x_ref    : (NB, HB, W, Ci)   row-band input block (Ci = lane-padded Cin), bf16/f32
    # xtop_ref : (NB, 1, W, Ci)    row above the band (clamped; zeroed when at the top edge)
    # xbot_ref : (NB, 1, W, Ci)    row below the band (clamped; zeroed when at the bottom edge)
    # w_ref    : (9*Ci, Cm)        conv1 weight in im2col layout (kh, kw, cin) x cmid
    # y_ref    : (NB, HB, W, Cm)   conv output (bf16 or f32)
    # sum_ref, ssq_ref : (1, 1, Cm)  per-step f32 stats partials (reduced in the wrapper)
    # xp_ref   : (NB, HB+2, W+2, Ci)  VMEM scratch holding the zero halo
    NB, HB, W, Ci = x_ref.shape
    Cm = w_ref.shape[-1]
    h_id = pl.program_id(1)
    n_h = pl.num_programs(1)
    dt = xp_ref.dtype

    # Build the 1-pixel halo in VMEM: interior from the block, border rows from the neighbour
    # rows (or zeros at image edges), border columns always zero.  Only the border is rewritten
    # beyond the interior copy — no full-scratch zero pass.
    xp_ref[:, 1:HB + 1, 1:W + 1, :] = x_ref[...]
    xp_ref[:, :, 0:1, :] = jnp.zeros((NB, HB + 2, 1, Ci), dt)
    xp_ref[:, :, W + 1:W + 2, :] = jnp.zeros((NB, HB + 2, 1, Ci), dt)

    @pl.when(h_id == 0)
    def _():
        xp_ref[:, 0:1, 1:W + 1, :] = jnp.zeros((NB, 1, W, Ci), dt)

    @pl.when(h_id > 0)
    def _():
        xp_ref[:, 0:1, 1:W + 1, :] = xtop_ref[...]

    @pl.when(h_id == n_h - 1)
    def _():
        xp_ref[:, HB + 1:HB + 2, 1:W + 1, :] = jnp.zeros((NB, 1, W, Ci), dt)

    @pl.when(h_id < n_h - 1)
    def _():
        xp_ref[:, HB + 1:HB + 2, 1:W + 1, :] = xbot_ref[...]

    # im2col: one (pix, 9*Ci) operand (taps are lane-aligned, concat is pure placement) and a
    # single MXU matmul.  Operands are bf16 by default; accumulation is f32.
    taps = []
    for kh in range(3):
        for kw in range(3):
            if kh == 1 and kw == 1:
                taps.append(x_ref[...])                       # center tap straight from the block
            else:
                taps.append(xp_ref[:, kh:kh + HB, kw:kw + W, :])
    patch = jnp.concatenate(taps, axis=-1).reshape(NB * HB * W, 9 * Ci)
    acc = jnp.dot(patch, w_ref[...], preferred_element_type=jnp.float32)   # (pix, Cm) f32

    # Per-step partial BatchNorm batch statistics (f32); reduced in the wrapper so both grid
    # axes stay "parallel".  NOTE: conv bias b1 is intentionally omitted — training-mode BN
    # absorbs it exactly.
    sum_ref[...] = jnp.sum(acc, axis=0).reshape(1, 1, Cm)
    ssq_ref[...] = jnp.sum(acc * acc, axis=0).reshape(1, 1, Cm)

    y_ref[...] = acc.reshape(NB, HB, W, Cm).astype(y_ref.dtype)


# ------------------------- Kernel B: BN scale/shift + ReLU + 1x1 conv ---------------------------
def _bn_relu_conv1x1_kernel(y_ref, scale_ref, shift_ref, w2_ref, b2_ref, o_ref):
    # y_ref  : (BM, Cm)   conv1 output rows (bf16 or f32)
    # scale_ref, shift_ref : (1, Cm)  fused BN scale/shift (f32)
    # w2_ref : (Cm, Co)   1x1 conv weight (bf16 or f32)
    # b2_ref : (1, Co)    1x1 conv bias (f32)
    # o_ref  : (BM, Co)
    y = y_ref[...].astype(jnp.float32)
    z = jnp.maximum(y * scale_ref[...] + shift_ref[...], 0.0)          # BN + ReLU in f32
    out = jnp.dot(z.astype(w2_ref.dtype), w2_ref[...],
                  preferred_element_type=jnp.float32) + b2_ref[...]
    o_ref[...] = out.astype(o_ref.dtype)


# --------------------------------------------- wrapper -------------------------------------------
def double_conv_end(x_nchw, w1_hwio, b1, gamma, beta, w2_io, b2, eps=1e-5,
                    intermediate_dtype=jnp.bfloat16):
    """DoubleConvEnd forward. x_nchw: (N, Cin, H, W) f32. Returns (N, Cout, H, W)."""
    N, Cin, H, W = x_nchw.shape
    Cmid = w1_hwio.shape[-1]
    Cout = w2_io.shape[-1]

    # bf16 default: native-rate MXU operands + halved intermediate HBM traffic.
    # intermediate_dtype=f32 keeps a fully-f32 exact path.
    mxu_dtype = jnp.dtype(intermediate_dtype)
    y_dtype = jnp.dtype(intermediate_dtype)

    # lane-dense channel widths (padded channels are exact zeros)
    Ci = _round_up(Cin, _LANE)
    Cm = _round_up(Cmid, _LANE)
    Co = _round_up(Cout, _LANE)
    # TODO(synk): for tiny Cin/Cout, pack (kh,kw,cin) jointly into round_up(9*Cin,128) lanes and
    # pad channels inside the kernel instead of in HBM to avoid 128/Cin traffic amplification.

    # Single layout pass over x: NCHW -> NHWC, cast to the MXU dtype, channels lane-padded.
    x = jnp.transpose(x_nchw, (0, 2, 3, 1)).astype(mxu_dtype)
    x = jnp.pad(x, ((0, 0), (0, 0), (0, 0), (0, Ci - Cin)))

    # Conv1 weight (HWIO) -> im2col layout (9*Ci, Cm); padded rows/cols are inert.
    w1p = jnp.pad(w1_hwio, ((0, 0), (0, 0), (0, Ci - Cin), (0, Cm - Cmid)))
    w1_flat = w1p.reshape(9 * Ci, Cm).astype(mxu_dtype)
    del b1   # absorbed exactly by the training-mode BatchNorm batch mean

    gamma_p = jnp.pad(gamma, (0, Cm - Cmid)).astype(jnp.float32)
    beta_p = jnp.pad(beta, (0, Cm - Cmid)).astype(jnp.float32)
    w2p = jnp.pad(w2_io, ((0, Cm - Cmid), (0, Co - Cout))).astype(mxu_dtype)
    b2p = jnp.pad(b2, (0, Co - Cout)).reshape(1, Co).astype(jnp.float32)

    step_budget, vmem_limit = _vmem_budgets()

    # ---- Kernel A: conv3x3 (single im2col matmul) + per-channel partial batch stats ----
    NB, HB = _pick_conv_block(N, H, W, Ci, Cm, y_dtype.itemsize, mxu_dtype.itemsize, step_budget)
    Gn, Gh = N // NB, H // HB

    y1, psum, pssq = pl.pallas_call(
        _conv3x3_stats_kernel,
        out_shape=(jax.ShapeDtypeStruct((N, H, W, Cm), y_dtype),
                   jax.ShapeDtypeStruct((Gn * Gh, 1, Cm), jnp.float32),
                   jax.ShapeDtypeStruct((Gn * Gh, 1, Cm), jnp.float32)),
        grid_spec=pltpu.PrefetchScalarGridSpec(
            num_scalar_prefetch=0,
            grid=(Gn, Gh),
            in_specs=[
                pl.BlockSpec((NB, HB, W, Ci), lambda n, h: (n, h, 0, 0)),
                # halo row above / below the band (clamped at the image edges; unused rows are
                # replaced by zeros inside the kernel)
                pl.BlockSpec((NB, 1, W, Ci),
                             lambda n, h: (n, jnp.maximum(h * HB - 1, 0), 0, 0)),
                pl.BlockSpec((NB, 1, W, Ci),
                             lambda n, h: (n, jnp.minimum((h + 1) * HB, H - 1), 0, 0)),
                # grid-invariant weight: single-buffered
                pl.BlockSpec((9 * Ci, Cm), lambda n, h: (0, 0), pipeline_mode=pl.Buffered(1)),
            ],
            out_specs=[
                pl.BlockSpec((NB, HB, W, Cm), lambda n, h: (n, h, 0, 0)),
                pl.BlockSpec((1, 1, Cm), lambda n, h: (n * Gh + h, 0, 0)),
                pl.BlockSpec((1, 1, Cm), lambda n, h: (n * Gh + h, 0, 0)),
            ],
            scratch_shapes=[pltpu.VMEM((NB, HB + 2, W + 2, Ci), mxu_dtype)],
        ),
        compiler_params=pltpu.CompilerParams(
            dimension_semantics=("parallel", "parallel"),   # partial stats -> fully parallel grid
            vmem_limit_bytes=vmem_limit),
    )(x, x, x, w1_flat)

    # ---- glue: training-mode (biased) batch statistics -> fused BN scale/shift ----
    count = jnp.float32(N * H * W)
    csum = jnp.sum(psum, axis=(0, 1))
    cssq = jnp.sum(pssq, axis=(0, 1))
    mean = csum / count
    # TODO(synk): switch to shifted / Welford partials if activations can have |mean| >> std.
    var = jnp.maximum(cssq / count - mean * mean, 0.0)      # guard f32 cancellation
    inv_std = jax.lax.rsqrt(var + jnp.float32(eps))
    scale = (gamma_p * inv_std).reshape(1, Cm)
    shift = (beta_p - mean * gamma_p * inv_std).reshape(1, Cm)

    # ---- Kernel B: BN + ReLU + 1x1 conv over flattened pixels (own, larger block size) ----
    M = N * H * W
    BM = _pick_rows_block(M, Cm, Co, y_dtype.itemsize, mxu_dtype.itemsize, step_budget)
    y2d = y1.reshape(M, Cm)    # free (row-major) reshape

    out2d = pl.pallas_call(
        _bn_relu_conv1x1_kernel,
        out_shape=jax.ShapeDtypeStruct((M, Co), x_nchw.dtype),
        grid_spec=pltpu.PrefetchScalarGridSpec(
            num_scalar_prefetch=0,
            grid=(M // BM,),
            in_specs=[
                pl.BlockSpec((BM, Cm), lambda i: (i, 0)),
                pl.BlockSpec((1, Cm), lambda i: (0, 0), pipeline_mode=pl.Buffered(1)),
                pl.BlockSpec((1, Cm), lambda i: (0, 0), pipeline_mode=pl.Buffered(1)),
                pl.BlockSpec((Cm, Co), lambda i: (0, 0), pipeline_mode=pl.Buffered(1)),
                pl.BlockSpec((1, Co), lambda i: (0, 0), pipeline_mode=pl.Buffered(1)),
            ],
            out_specs=pl.BlockSpec((BM, Co), lambda i: (i, 0)),
        ),
        compiler_params=pltpu.CompilerParams(
            dimension_semantics=("parallel",),
            vmem_limit_bytes=vmem_limit),
    )(y2d, scale, shift, w2p, b2p)

    # Strip channel padding, return NCHW to match the PyTorch module contract (slice + transpose
    # fuse into a single XLA copy).
    out_nhwc = out2d.reshape(N, H, W, Co)[..., :Cout]
    return jnp.transpose(out_nhwc, (0, 3, 1, 2))


# ------------------------------------ pure-JAX reference -----------------------------------------
def _reference(x_nchw, w1_hwio, b1, gamma, beta, w2_io, b2, eps=1e-5):
    x = jnp.transpose(x_nchw, (0, 2, 3, 1))
    y = jax.lax.conv_general_dilated(
        x, w1_hwio, window_strides=(1, 1), padding=((1, 1), (1, 1)),
        dimension_numbers=("NHWC", "HWIO", "NHWC")) + b1
    mean = y.mean(axis=(0, 1, 2))
    var = y.var(axis=(0, 1, 2))                    # biased, matches BN training normalization
    y = (y - mean) / jnp.sqrt(var + eps) * gamma + beta
    y = jnp.maximum(y, 0.0)
    out = jnp.einsum("nhwc,co->nhwo", y, w2_io) + b2
    return jnp.transpose(out, (0, 3, 1, 2))


if __name__ == "__main__":
    N, Cin, Cmid, Cout, H, W = 2, 4, 8, 4, 16, 16

    key = jax.random.PRNGKey(0)
    k_x, k_w1, k_b1, k_g, k_be, k_w2, k_b2 = jax.random.split(key, 7)

    x = jax.random.normal(k_x, (N, Cin, H, W), jnp.float32)
    # Conv1: PyTorch weight (Cmid, Cin, 3, 3) stored here as HWIO (3, 3, Cin, Cmid)
    w1 = jax.random.normal(k_w1, (3, 3, Cin, Cmid), jnp.float32) * 0.1
    b1 = jax.random.normal(k_b1, (Cmid,), jnp.float32) * 0.1
    # BatchNorm2d affine params (perturbed from PyTorch defaults to exercise the path)
    gamma = 1.0 + 0.1 * jax.random.normal(k_g, (Cmid,), jnp.float32)
    beta = 0.1 * jax.random.normal(k_be, (Cmid,), jnp.float32)
    # Conv2 (1x1): PyTorch weight (Cout, Cmid, 1, 1) stored here as (Cmid, Cout)
    w2 = jax.random.normal(k_w2, (Cmid, Cout), jnp.float32) * 0.1
    b2 = jax.random.normal(k_b2, (Cout,), jnp.float32) * 0.1

    ref = _reference(x, w1, b1, gamma, beta, w2, b2)

    # exact path: f32 operands/intermediate everywhere -> tight tolerance
    out_f32 = jax.block_until_ready(
        double_conv_end(x, w1, b1, gamma, beta, w2, b2, intermediate_dtype=jnp.float32))
    assert out_f32.shape == (N, Cout, H, W)
    assert jnp.allclose(out_f32, ref, rtol=1e-4, atol=1e-4), \
        f"f32 max abs err {jnp.max(jnp.abs(out_f32 - ref))}"

    # default fast path: bf16 MXU operands + bf16 intermediate -> looser tolerance
    out_bf16 = jax.block_until_ready(
        double_conv_end(x, w1, b1, gamma, beta, w2, b2))
    assert out_bf16.shape == (N, Cout, H, W)
    assert jnp.allclose(out_bf16, ref, rtol=3e-2, atol=3e-2), \
        f"bf16 max abs err {jnp.max(jnp.abs(out_bf16 - ref))}"

    print("KERNEL_OK")
</pallas_src>

<mosaic_0001>
module attributes {stable_mosaic.version = 11 : i64} {
  func.func @_conv3x3_stats_kernel(%arg0: i32, %arg1: i32, %arg2: memref<2x16x16x128xf32, #tpu.memory_space<vmem>>, %arg3: memref<2x1x16x128xf32, #tpu.memory_space<vmem>>, %arg4: memref<2x1x16x128xf32, #tpu.memory_space<vmem>>, %arg5: memref<1152x128xf32, #tpu.memory_space<vmem>>, %arg6: memref<2x16x16x128xf32, #tpu.memory_space<vmem>>, %arg7: memref<1x1x128xf32, #tpu.memory_space<vmem>>, %arg8: memref<1x1x128xf32, #tpu.memory_space<vmem>>, %arg9: memref<2x18x18x128xf32, #tpu.memory_space<vmem>>) attributes {dimension_semantics = [#tpu.dimension_semantics<parallel>, #tpu.dimension_semantics<parallel>], iteration_bounds = array<i64: 1, 1>, scalar_prefetch = 0 : i64, scratch_operands = 1 : i64, tpu.core_type = #tpu.core_type<tc>, window_params = [{transform_indices = @transform_0, window_bounds = array<i64: 2, 16, 16, 128>}, {transform_indices = @transform_1, window_bounds = array<i64: 2, 1, 16, 128>}, {transform_indices = @transform_2, window_bounds = array<i64: 2, 1, 16, 128>}, {pipeline_mode = #tpu.pipeline_mode<synchronous>, transform_indices = @transform_3, window_bounds = array<i64: 1152, 128>}, {transform_indices = @transform_4, window_bounds = array<i64: 2, 16, 16, 128>}, {transform_indices = @transform_5, window_bounds = array<i64: 1, 1, 128>}, {transform_indices = @transform_6, window_bounds = array<i64: 1, 1, 128>}]} {
    %c0 = arith.constant 0 : index
    %c0_0 = arith.constant 0 : index
    %c0_1 = arith.constant 0 : index
    %c0_2 = arith.constant 0 : index
    %0 = vector.load %arg2[%c0, %c0_0, %c0_1, %c0_2] : memref<2x16x16x128xf32, #tpu.memory_space<vmem>>, vector<2x16x16x128xf32>
    %c0_3 = arith.constant 0 : index
    %c1 = arith.constant 1 : index
    %c1_4 = arith.constant 1 : index
    %c0_5 = arith.constant 0 : index
    %1 = vector.load %arg9[%c0_3, %c1, %c1_4, %c0_5] : memref<2x18x18x128xf32, #tpu.memory_space<vmem>>, vector<2x16x16x128xf32>
    tpu.vector_store %arg9[%c0_3, %c1, %c1_4, %c0_5], %0 {strides = array<i32>} : memref<2x18x18x128xf32, #tpu.memory_space<vmem>>, vector<2x16x16x128xf32>,
    %cst = arith.constant 0.000000e+00 : f32
    %2 = vector.broadcast %cst : f32 to vector<2x18x1x128xf32>
    %c0_6 = arith.constant 0 : index
    %c0_7 = arith.constant 0 : index
    %c0_8 = arith.constant 0 : index
    %c0_9 = arith.constant 0 : index
    %3 = vector.load %arg9[%c0_6, %c0_7, %c0_8, %c0_9] : memref<2x18x18x128xf32, #tpu.memory_space<vmem>>, vector<2x18x1x128xf32>
    tpu.vector_store %arg9[%c0_6, %c0_7, %c0_8, %c0_9], %2 {strides = array<i32>} : memref<2x18x18x128xf32, #tpu.memory_space<vmem>>, vector<2x18x1x128xf32>,
    %cst_10 = arith.constant 0.000000e+00 : f32
    %4 = vector.broadcast %cst_10 : f32 to vector<2x18x1x128xf32>
    %c0_11 = arith.constant 0 : index
    %c0_12 = arith.constant 0 : index
    %c17 = arith.constant 17 : index
    %c0_13 = arith.constant 0 : index
    %5 = vector.load %arg9[%c0_11, %c0_12, %c17, %c0_13] : memref<2x18x18x128xf32, #tpu.memory_space<vmem>>, vector<2x18x1x128xf32>
    tpu.vector_store %arg9[%c0_11, %c0_12, %c17, %c0_13], %4 {strides = array<i32>} : memref<2x18x18x128xf32, #tpu.memory_space<vmem>>, vector<2x18x1x128xf32>,
    %c0_i32 = arith.constant 0 : i32
    %6 = arith.cmpi eq, %arg1, %c0_i32 : i32
    %7 = arith.extui %6 : i1 to i32
    %c0_i32_14 = arith.constant 0 : i32
    %8 = arith.cmpi ne, %7, %c0_i32_14 : i32
    scf.if %8 {
      %cst_71 = arith.constant 0.000000e+00 : f32
      %40 = vector.broadcast %cst_71 : f32 to vector<2x1x16x128xf32>
      %c0_72 = arith.constant 0 : index
      %c0_73 = arith.constant 0 : index
      %c1_74 = arith.constant 1 : index
      %c0_75 = arith.constant 0 : index
      %41 = vector.load %arg9[%c0_72, %c0_73, %c1_74, %c0_75] : memref<2x18x18x128xf32, #tpu.memory_space<vmem>>, vector<2x1x16x128xf32>
      tpu.vector_store %arg9[%c0_72, %c0_73, %c1_74, %c0_75], %40 {strides = array<i32>} : memref<2x18x18x128xf32, #tpu.memory_space<vmem>>, vector<2x1x16x128xf32>,
    } else {
    }
    %c0_i32_15 = arith.constant 0 : i32
    %9 = arith.cmpi sgt, %arg1, %c0_i32_15 : i32
    %10 = arith.extui %9 : i1 to i32
    %c0_i32_16 = arith.constant 0 : i32
    %11 = arith.cmpi ne, %10, %c0_i32_16 : i32
    scf.if %11 {
      %c0_71 = arith.constant 0 : index
      %c0_72 = arith.constant 0 : index
      %c0_73 = arith.constant 0 : index
      %c0_74 = arith.constant 0 : index
      %40 = vector.load %arg3[%c0_71, %c0_72, %c0_73, %c0_74] : memref<2x1x16x128xf32, #tpu.memory_space<vmem>>, vector<2x1x16x128xf32>
      %c0_75 = arith.constant 0 : index
      %c0_76 = arith.constant 0 : index
      %c1_77 = arith.constant 1 : index
      %c0_78 = arith.constant 0 : index
      %41 = vector.load %arg9[%c0_75, %c0_76, %c1_77, %c0_78] : memref<2x18x18x128xf32, #tpu.memory_space<vmem>>, vector<2x1x16x128xf32>
      tpu.vector_store %arg9[%c0_75, %c0_76, %c1_77, %c0_78], %40 {strides = array<i32>} : memref<2x18x18x128xf32, #tpu.memory_space<vmem>>, vector<2x1x16x128xf32>,
    } else {
    }
    %c0_i32_17 = arith.constant 0 : i32
    %12 = arith.cmpi eq, %arg1, %c0_i32_17 : i32
    %13 = arith.extui %12 : i1 to i32
    %c0_i32_18 = arith.constant 0 : i32
    %14 = arith.cmpi ne, %13, %c0_i32_18 : i32
    scf.if %14 {
      %cst_71 = arith.constant 0.000000e+00 : f32
      %40 = vector.broadcast %cst_71 : f32 to vector<2x1x16x128xf32>
      %c0_72 = arith.constant 0 : index
      %c17_73 = arith.constant 17 : index
      %c1_74 = arith.constant 1 : index
      %c0_75 = arith.constant 0 : index
      %41 = vector.load %arg9[%c0_72, %c17_73, %c1_74, %c0_75] : memref<2x18x18x128xf32, #tpu.memory_space<vmem>>, vector<2x1x16x128xf32>
      tpu.vector_store %arg9[%c0_72, %c17_73, %c1_74, %c0_75], %40 {strides = array<i32>} : memref<2x18x18x128xf32, #tpu.memory_space<vmem>>, vector<2x1x16x128xf32>,
    } else {
    }
    %c0_i32_19 = arith.constant 0 : i32
    %15 = arith.cmpi slt, %arg1, %c0_i32_19 : i32
    %16 = arith.extui %15 : i1 to i32
    %c0_i32_20 = arith.constant 0 : i32
    %17 = arith.cmpi ne, %16, %c0_i32_20 : i32
    scf.if %17 {
      %c0_71 = arith.constant 0 : index
      %c0_72 = arith.constant 0 : index
      %c0_73 = arith.constant 0 : index
      %c0_74 = arith.constant 0 : index
      %40 = vector.load %arg4[%c0_71, %c0_72, %c0_73, %c0_74] : memref<2x1x16x128xf32, #tpu.memory_space<vmem>>, vector<2x1x16x128xf32>
      %c0_75 = arith.constant 0 : index
      %c17_76 = arith.constant 17 : index
      %c1_77 = arith.constant 1 : index
      %c0_78 = arith.constant 0 : index
      %41 = vector.load %arg9[%c0_75, %c17_76, %c1_77, %c0_78] : memref<2x18x18x128xf32, #tpu.memory_space<vmem>>, vector<2x1x16x128xf32>
      tpu.vector_store %arg9[%c0_75, %c17_76, %c1_77, %c0_78], %40 {strides = array<i32>} : memref<2x18x18x128xf32, #tpu.memory_space<vmem>>, vector<2x1x16x128xf32>,
    } else {
    }
    %c0_21 = arith.constant 0 : index
    %c0_22 = arith.constant 0 : index
    %c0_23 = arith.constant 0 : index
    %c0_24 = arith.constant 0 : index
    %18 = vector.load %arg9[%c0_21, %c0_22, %c0_23, %c0_24] : memref<2x18x18x128xf32, #tpu.memory_space<vmem>>, vector<2x16x16x128xf32>
    %c0_25 = arith.constant 0 : index
    %c0_26 = arith.constant 0 : index
    %c1_27 = arith.constant 1 : index
    %c0_28 = arith.constant 0 : index
    %19 = vector.load %arg9[%c0_25, %c0_26, %c1_27, %c0_28] : memref<2x18x18x128xf32, #tpu.memory_space<vmem>>, vector<2x16x16x128xf32>
    %c0_29 = arith.constant 0 : index
    %c0_30 = arith.constant 0 : index
    %c2 = arith.constant 2 : index
    %c0_31 = arith.constant 0 : index
    %20 = vector.load %arg9[%c0_29, %c0_30, %c2, %c0_31] : memref<2x18x18x128xf32, #tpu.memory_space<vmem>>, vector<2x16x16x128xf32>
    %c0_32 = arith.constant 0 : index
    %c1_33 = arith.constant 1 : index
    %c0_34 = arith.constant 0 : index
    %c0_35 = arith.constant 0 : index
    %21 = vector.load %arg9[%c0_32, %c1_33, %c0_34, %c0_35] : memref<2x18x18x128xf32, #tpu.memory_space<vmem>>, vector<2x16x16x128xf32>
    %c0_36 = arith.constant 0 : index
    %c0_37 = arith.constant 0 : index
    %c0_38 = arith.constant 0 : index
    %c0_39 = arith.constant 0 : index
    %22 = vector.load %arg2[%c0_36, %c0_37, %c0_38, %c0_39] : memref<2x16x16x128xf32, #tpu.memory_space<vmem>>, vector<2x16x16x128xf32>
    %c0_40 = arith.constant 0 : index
    %c1_41 = arith.constant 1 : index
    %c2_42 = arith.constant 2 : index
    %c0_43 = arith.constant 0 : index
    %23 = vector.load %arg9[%c0_40, %c1_41, %c2_42, %c0_43] : memref<2x18x18x128xf32, #tpu.memory_space<vmem>>, vector<2x16x16x128xf32>
    %c0_44 = arith.constant 0 : index
    %c2_45 = arith.constant 2 : index
    %c0_46 = arith.constant 0 : index
    %c0_47 = arith.constant 0 : index
    %24 = vector.load %arg9[%c0_44, %c2_45, %c0_46, %c0_47] : memref<2x18x18x128xf32, #tpu.memory_space<vmem>>, vector<2x16x16x128xf32>
    %c0_48 = arith.constant 0 : index
    %c2_49 = arith.constant 2 : index
    %c1_50 = arith.constant 1 : index
    %c0_51 = arith.constant 0 : index
    %25 = vector.load %arg9[%c0_48, %c2_49, %c1_50, %c0_51] : memref<2x18x18x128xf32, #tpu.memory_space<vmem>>, vector<2x16x16x128xf32>
    %c0_52 = arith.constant 0 : index
    %c2_53 = arith.constant 2 : index
    %c2_54 = arith.constant 2 : index
    %c0_55 = arith.constant 0 : index
    %26 = vector.load %arg9[%c0_52, %c2_53, %c2_54, %c0_55] : memref<2x18x18x128xf32, #tpu.memory_space<vmem>>, vector<2x16x16x128xf32>
    %27 = tpu.concatenate %18, %19, %20, %21, %22, %23, %24, %25, %26 in 3 : vector<2x16x16x128xf32>, vector<2x16x16x128xf32>, vector<2x16x16x128xf32>, vector<2x16x16x128xf32>, vector<2x16x16x128xf32>, vector<2x16x16x128xf32>, vector<2x16x16x128xf32>, vector<2x16x16x128xf32>, vector<2x16x16x128xf32> -> vector<2x16x16x1152xf32>
    %28 = vector.shape_cast %27 : vector<2x16x16x1152xf32> to vector<512x1152xf32>
    %c0_56 = arith.constant 0 : index
    %c0_57 = arith.constant 0 : index
    %29 = vector.load %arg5[%c0_56, %c0_57] : memref<1152x128xf32, #tpu.memory_space<vmem>>, vector<1152x128xf32>
    %cst_58 = arith.constant dense<0.000000e+00> : vector<512x128xf32>
    %30 = tpu.matmul %28, %29, %cst_58 {dimension_numbers = #tpu.dot_dimension_numbers<[1], [0], [0], [1], [0, 0, 1, 1], [], []>} : vector<512x1152xf32>, vector<1152x128xf32>, vector<512x128xf32> -> vector<512x128xf32>
    %cst_59 = arith.constant dense<0.000000e+00> : vector<128xf32>
    %31 = vector.multi_reduction <add>, %30, %cst_59 [0] : vector<512x128xf32> to vector<128xf32>
    %32 = vector.shape_cast %31 : vector<128xf32> to vector<1x1x128xf32>
    %c0_60 = arith.constant 0 : index
    %c0_61 = arith.constant 0 : index
    %c0_62 = arith.constant 0 : index
    %33 = vector.load %arg7[%c0_60, %c0_61, %c0_62] : memref<1x1x128xf32, #tpu.memory_space<vmem>>, vector<1x1x128xf32>
    tpu.vector_store %arg7[%c0_60, %c0_61, %c0_62], %32 {strides = array<i32>} : memref<1x1x128xf32, #tpu.memory_space<vmem>>, vector<1x1x128xf32>,
    %34 = arith.mulf %30, %30 : vector<512x128xf32>
    %cst_63 = arith.constant dense<0.000000e+00> : vector<128xf32>
    %35 = vector.multi_reduction <add>, %34, %cst_63 [0] : vector<512x128xf32> to vector<128xf32>
    %36 = vector.shape_cast %35 : vector<128xf32> to vector<1x1x128xf32>
    %c0_64 = arith.constant 0 : index
    %c0_65 = arith.constant 0 : index
    %c0_66 = arith.constant 0 : index
    %37 = vector.load %arg8[%c0_64, %c0_65, %c0_66] : memref<1x1x128xf32, #tpu.memory_space<vmem>>, vector<1x1x128xf32>
    tpu.vector_store %arg8[%c0_64, %c0_65, %c0_66], %36 {strides = array<i32>} : memref<1x1x128xf32, #tpu.memory_space<vmem>>, vector<1x1x128xf32>,
    %38 = vector.shape_cast %30 : vector<512x128xf32> to vector<2x16x16x128xf32>
    %c0_67 = arith.constant 0 : index
    %c0_68 = arith.constant 0 : index
    %c0_69 = arith.constant 0 : index
    %c0_70 = arith.constant 0 : index
    %39 = vector.load %arg6[%c0_67, %c0_68, %c0_69, %c0_70] : memref<2x16x16x128xf32, #tpu.memory_space<vmem>>, vector<2x16x16x128xf32>
    tpu.vector_store %arg6[%c0_67, %c0_68, %c0_69, %c0_70], %38 {strides = array<i32>} : memref<2x16x16x128xf32, #tpu.memory_space<vmem>>, vector<2x16x16x128xf32>,
    return
  }
  func.func @transform_0(%arg0: i32, %arg1: i32) -> (i32, i32, i32, i32) {
    %c0_i32 = arith.constant 0 : i32
    %c0_i32_0 = arith.constant 0 : i32
    %c0_i32_1 = arith.constant 0 : i32
    return %arg0, %arg1, %c0_i32, %c0_i32_0 : i32, i32, i32, i32
  }
  func.func @transform_1(%arg0: i32, %arg1: i32) -> (i32, i32, i32, i32) {
    %c16_i32 = arith.constant 16 : i32
    %0 = arith.muli %arg1, %c16_i32 : i32
    %c1_i32 = arith.constant 1 : i32
    %1 = arith.subi %0, %c1_i32 : i32
    %c0_i32 = arith.constant 0 : i32
    %2 = arith.maxsi %1, %c0_i32 : i32
    %c0_i32_0 = arith.constant 0 : i32
    %c0_i32_1 = arith.constant 0 : i32
    %c0_i32_2 = arith.constant 0 : i32
    return %arg0, %2, %c0_i32_0, %c0_i32_1 : i32, i32, i32, i32
  }
  func.func @transform_2(%arg0: i32, %arg1: i32) -> (i32, i32, i32, i32) {
    %c1_i32 = arith.constant 1 : i32
    %0 = arith.addi %arg1, %c1_i32 : i32
    %c16_i32 = arith.constant 16 : i32
    %1 = arith.muli %0, %c16_i32 : i32
    %c15_i32 = arith.constant 15 : i32
    %2 = arith.minsi %1, %c15_i32 : i32
    %c0_i32 = arith.constant 0 : i32
    %c0_i32_0 = arith.constant 0 : i32
    %c0_i32_1 = arith.constant 0 : i32
    return %arg0, %2, %c0_i32, %c0_i32_0 : i32, i32, i32, i32
  }
  func.func @transform_3(%arg0: i32, %arg1: i32) -> (i32, i32) {
    %c0_i32 = arith.constant 0 : i32
    %c0_i32_0 = arith.constant 0 : i32
    %c0_i32_1 = arith.constant 0 : i32
    return %c0_i32, %c0_i32_0 : i32, i32
  }
  func.func @transform_4(%arg0: i32, %arg1: i32) -> (i32, i32, i32, i32) {
    %c0_i32 = arith.constant 0 : i32
    %c0_i32_0 = arith.constant 0 : i32
    %c0_i32_1 = arith.constant 0 : i32
    return %arg0, %arg1, %c0_i32, %c0_i32_0 : i32, i32, i32, i32
  }
  func.func @transform_5(%arg0: i32, %arg1: i32) -> (i32, i32, i32) {
    %c1_i32 = arith.constant 1 : i32
    %0 = arith.muli %arg0, %c1_i32 : i32
    %1 = arith.addi %0, %arg1 : i32
    %c0_i32 = arith.constant 0 : i32
    %c0_i32_0 = arith.constant 0 : i32
    %c0_i32_1 = arith.constant 0 : i32
    return %1, %c0_i32, %c0_i32_0 : i32, i32, i32
  }
  func.func @transform_6(%arg0: i32, %arg1: i32) -> (i32, i32, i32) {
    %c1_i32 = arith.constant 1 : i32
    %0 = arith.muli %arg0, %c1_i32 : i32
    %1 = arith.addi %0, %arg1 : i32
    %c0_i32 = arith.constant 0 : i32
    %c0_i32_0 = arith.constant 0 : i32
    %c0_i32_1 = arith.constant 0 : i32
    return %1, %c0_i32, %c0_i32_0 : i32, i32, i32
  }
}

</mosaic_0001>

<bundles_post_ra>
// kernel: tpu_custom_call.1
= control target key start
LH: loop header
LB: loop body
LE: loop exit
PB: predicated region body
PF: predicated region fallthrough
CT: control target
= control target key end

     0   :  { %12 = vsyncpa [#allocation4], 0  ;;  %s5778_s0 = inlined_call_operand.hbm [shape: f32[2,16,16,128], index: 0, kind: input, shape index: {}]   ;;  %s5779_s1 = inlined_call_operand.hbm [shape: f32[2,16,16,128], index: 1, kind: input, shape index: {}]   ;;  %s5780_s2 = inlined_call_operand.hbm [shape: f32[2,16,16,128], index: 2, kind: input, shape index: {}]   ;;  %s5781_s3 = inlined_call_operand.hbm [shape: f32[1152,128], index: 3, kind: input, shape index: {}]   ;;  %s5782_s4 = inlined_call_operand.hbm [shape: f32[2,16,16,128], index: 4, kind: output, shape index: {0}]   ;;  %s5783_s5 = inlined_call_operand.hbm [shape: f32[1,1,128], index: 5, kind: output, shape index: {1}]   ;;  %s5784_s6 = inlined_call_operand.hbm [shape: f32[1,1,128], index: 6, kind: output, shape index: {2}]  }
   0x1   :  { %13 = vsyncpa [#allocation7], 0 }
   0x2   :  { %14 = vsyncpa [#allocation10], 0 }
   0x3   :  { %15 = vsyncpa [#allocation5], 0 }
   0x4   :  { %16 = vsyncpa [#allocation13], 0  ;;  %s4305_s21 = smov [#allocation3]   ;;  %s4185_s25 = scalar_lea.hbm %s5778_s0, 8192 }
   0x5   :  { %s22_s22 = sshll.u32 %s4305_s21, 4  ;;  %p4186_p0 = scmp.ne.s32.totalorder %s5778_s0, %s4185_s25  ;;  %s23_s22 = int_to_ptr.vmem [resolvable:$true] %s22_s22 }
   0x6   :  { %p4189_p1 = scmp.lt.u32.totalorder %s4185_s25, %s5778_s0 }
   0x8   :  { %p4191_p2 = pnand %p4189_p1, %p4186_p0 }
   0xa   :  { %4194 = shalt.err (!%p4191_p2)
}
   0xb   :  { %s4195_s30 = scalar_lea.vmem %s23_s22, 8192  ;;  %p4200_p4 = scmp.lt.s32.totalorder %s23_s22, %s23_s22 }
   0xc   :  { %p4196_p3 = scmp.ne.s32.totalorder %s23_s22, %s4195_s30  ;;  %p4201_p5 = scmp.lt.s32.totalorder %s4195_s30, %s4195_s30 }
   0xe   :  { %p4202_p6 = por %p4201_p5, %p4200_p4 }
  0x10   :  { %p4203_p7 = pnand %p4202_p6, %p4196_p3 }
  0x12   :  { %4206 = shalt.err (!%p4203_p7)
}
  0x13   :  { %s4306_s7 = smov 128   ;;  %s4307_s8 = smov 8  }
  0x14   :  { %28 = dma.hbm_to_vmem [thread:$0]  %s5778_s0, 8192, %s23_s22, [#allocation4], %s4306_s7, %s4306_s7, %s4307_s8  }
  0x15   :  { %s45_s11 = sld [smem:[#allocation0]]   ;;  %s4308_s12 = smov [#allocation6]  }
  0x16   :  { %s53_s13 = sshll.u32 %s4308_s12, 4  ;;  %s4309_s14 = smov 4096   ;;  %s54_s13 = int_to_ptr.vmem [resolvable:$true] %s53_s13 }
  0x17   :  { %60 = sst [smem:[#allocation16]] %s4309_s14  ;;  %s4310_s15 = smov 256  }
  0x18   :  { %62 = sst [smem:[#allocation16 + $0x1]] %s4310_s15  ;;  %s4311_s16 = smov 2  }
  0x19   :  { %64 = sst [smem:[#allocation16 + $0x2]] %s4311_s16  ;;  %s4312_s18 = smov 128  }
  0x1a   :  { %66 = sst [smem:[#allocation16 + $0x3]] %s4312_s18  ;;  %s4313_s20 = smov 8  }
  0x1b   :  { %s3363_s17 = sshll.u32 %s45_s11, 26  ;;  %68 = sst [smem:[#allocation16 + $0x4]] %s4312_s18 }
  0x1c   :  { %s3364_s19 = sadd.s32 134217728, %s3363_s17  ;;  %70 = sst [smem:[#allocation16 + $0x5]] %s4313_s20 }
  0x1d   :  { %s4314_s21 = smov [#allocation7]   ;;  %s4315_s23 = smov [#allocation15]  }
  0x1e   :  { %72 = dma.general %s5779_s1, 512, %s54_s13, %s4314_s21, %s4315_s23, [#allocation16], %s3364_s19, 0  }
  0x1f   :  { %s84_s26 = scalar_lea.hbm %s5780_s2, 3840  ;;  %s89_s27 = sld [smem:[#allocation0]]  }
  0x20   :  { %s4316_s28 = smov [#allocation8]   ;;  %s4317_s30 = smov 4096  }
  0x21   :  { %s97_s29 = sshll.u32 %s4316_s28, 4  ;;  %104 = sst [smem:[#allocation18]] %s4317_s30  ;;  %s98_s29 = int_to_ptr.vmem [resolvable:$true] %s97_s29 }
  0x22   :  { %s4318_s9 = smov 256   ;;  %s4319_s10 = smov 2  }
  0x23   :  { %106 = sst [smem:[#allocation18 + $0x1]] %s4318_s9  ;;  %s4320_s12 = smov 128  }
  0x24   :  { %108 = sst [smem:[#allocation18 + $0x2]] %s4319_s10  ;;  %s4321_s1 = smov 8  }
  0x25   :  { %s3365_s11 = sshll.u32 %s89_s27, 26  ;;  %110 = sst [smem:[#allocation18 + $0x3]] %s4320_s12 }
  0x26   :  { %s3366_s14 = sadd.s32 134217728, %s3365_s11  ;;  %112 = sst [smem:[#allocation18 + $0x4]] %s4320_s12 }
  0x27   :  { %114 = sst [smem:[#allocation18 + $0x5]] %s4321_s1  ;;  %s4322_s13 = smov [#allocation7]  }
  0x28   :  { %s4323_s15 = smov [#allocation17]   ;;  %s4324_s2 = smov [#allocation9]  }
  0x29   :  { %116 = dma.general %s84_s26, 512, %s98_s29, %s4322_s13, %s4323_s15, [#allocation18], %s3366_s14, 0  }
  0x2a   :  { %s122_s16 = sshll.u32 %s4324_s2, 4  ;;  %s4207_s19 = scalar_lea.hbm %s5781_s3, 18432  ;;  %s123_s16 = int_to_ptr.vmem [resolvable:$true] %s122_s16 }
  0x2b   :  { %p4208_p8 = scmp.ne.s32.totalorder %s5781_s3, %s4207_s19  ;;  %p4211_p9 = scmp.lt.u32.totalorder %s4207_s19, %s5781_s3 }
  0x2d   :  { %p4213_p10 = pnand %p4211_p9, %p4208_p8 }
  0x2f   :  { %4216 = shalt.err (!%p4213_p10)
}
  0x30   :  { %s4217_s22 = scalar_lea.vmem %s123_s16, 18432  ;;  %p4222_p12 = scmp.lt.s32.totalorder %s123_s16, %s123_s16 }
  0x31   :  { %p4218_p11 = scmp.ne.s32.totalorder %s123_s16, %s4217_s22  ;;  %p4223_p13 = scmp.lt.s32.totalorder %s4217_s22, %s4217_s22 }
  0x33   :  { %p4224_p0 = por %p4223_p13, %p4222_p12 }
  0x35   :  { %p4225_p1 = pnand %p4224_p0, %p4218_p11 }
  0x37   :  { %4228 = shalt.err (!%p4225_p1)
}
  0x38   :  { %128 = dma.hbm_to_vmem [thread:$0]  %s5781_s3, 18432, %s123_s16, [#allocation10], %s4306_s7, %s4306_s7, %s4307_s8  }
  0x39   :  { %4295 = dma.done.wait [#allocation4], 8192  }
  0x3a   :  { %4296 = vsyncadd [#allocation4], 4294959104 }
  0x3b   :  { %4297 = dma.done.wait [#allocation7], 1024  }
  0x3c   :  { %4298 = vsyncadd [#allocation7], 4294966272 }
  0x3d   :  { %4299 = dma.done.wait [#allocation10], 18432  }
  0x3e   :  { %4300 = vsyncadd [#allocation10], 4294948864  ;;  %v4325_v0 = vmov 0.0|0.0   ;;  %v4326_v1 = vmov 0.0   ;;  %v970_v2 = vld [vmem:[#allocation9] sm:$0xff]  ;;  %v971_v3 = vld [vmem:[#allocation9 + $0x8] sm:$0xff] }
  0x3f   :  { %3575 = vmatprep.subr.bf16.mxu1 %v4325_v0  ;;  %3623 = vmatprep.subr.bf16.mxu0 %v4325_v0  ;;  %356 = vst [vmem:[#allocation2 + $0x1] sm:$0xff] %v4326_v1  ;;  %280 = vst [vmem:[#allocation2] sm:$0x1] %v4326_v1  ;;  %v1002_v4 = vld [vmem:[#allocation9 + $0x100] sm:$0xff]  ;;  %v3576_v5 = vpack.c.bf16 %v971_v3, %v970_v2  ;;  %v1003_v6 = vld [vmem:[#allocation9 + $0x108] sm:$0xff]  ;;  %s4327_s3 = smov [#allocation11]  }
  0x40   :  { %281 = vst [vmem:[#allocation2 + $0x18] sm:$0x1] %v4326_v1  ;;  %282 = vst [vmem:[#allocation2 + $0x30] sm:$0x1] %v4326_v1  ;;  %1178 = vmatprep.mubr.f32.mxu1 %v4326_v1  ;;  %v972_v7 = vld [vmem:[#allocation9 + $0x10] sm:$0xff]  ;;  %v973_v8 = vld [vmem:[#allocation9 + $0x18] sm:$0xff]  ;;  %v4484_v9 = vpack.c.bf16 %v1003_v6, %v1002_v4 }
  0x41   :  { %283 = vst [vmem:[#allocation2 + $0x48] sm:$0x1] %v4326_v1  ;;  %284 = vst [vmem:[#allocation2 + $0x60] sm:$0x1] %v4326_v1  ;;  %v1004_v10 = vld [vmem:[#allocation9 + $0x110] sm:$0xff]  ;;  %v1005_v11 = vld [vmem:[#allocation9 + $0x118] sm:$0xff]  ;;  %3577 = vmatpush1.bf16.msra.mxu1 %v3576_v5  ;;  %v3579_v12 = vpack.c.bf16 %v973_v8, %v972_v7 }
  0x42   :  { %285 = vst [vmem:[#allocation2 + $0x78] sm:$0x1] %v4326_v1  ;;  %286 = vst [vmem:[#allocation2 + $0x90] sm:$0x1] %v4326_v1  ;;  %3625 = vmatpush1.bf16.msra.mxu0 %v4484_v9  ;;  %3578 = vmatprep.subr.bf16.mxu1 %v4325_v0  ;;  %v4488_v13 = vpack.c.bf16 %v1005_v11, %v1004_v10  ;;  %v974_v14 = vld [vmem:[#allocation9 + $0x20] sm:$0xff]  ;;  %v975_v15 = vld [vmem:[#allocation9 + $0x28] sm:$0xff] }
  0x43   :  { %287 = vst [vmem:[#allocation2 + $0xa8] sm:$0x1] %v4326_v1  ;;  %288 = vst [vmem:[#allocation2 + $0xc0] sm:$0x1] %v4326_v1  ;;  %3626 = vmatprep.subr.bf16.mxu0 %v4325_v0  ;;  %v1006_v16 = vld [vmem:[#allocation9 + $0x120] sm:$0xff]  ;;  %v1007_v17 = vld [vmem:[#allocation9 + $0x128] sm:$0xff]  ;;  %v3582_v18 = vpack.c.bf16 %v975_v15, %v974_v14 }
  0x44   :  { %289 = vst [vmem:[#allocation2 + $0xd8] sm:$0x1] %v4326_v1  ;;  %290 = vst [vmem:[#allocation2 + $0xf0] sm:$0x1] %v4326_v1  ;;  %v4493_v19 = vpack.c.bf16 %v1007_v17, %v1006_v16  ;;  %v976_v20 = vld [vmem:[#allocation9 + $0x30] sm:$0xff]  ;;  %v977_v21 = vld [vmem:[#allocation9 + $0x38] sm:$0xff] }
  0x45   :  { %291 = vst [vmem:[#allocation2 + $0x108] sm:$0x1] %v4326_v1  ;;  %292 = vst [vmem:[#allocation2 + $0x120] sm:$0x1] %v4326_v1  ;;  %3580 = vmatpush1.bf16.msra.mxu1 %v3579_v12  ;;  %v1008_v22 = vld [vmem:[#allocation9 + $0x130] sm:$0xff]  ;;  %v1009_v23 = vld [vmem:[#allocation9 + $0x138] sm:$0xff]  ;;  %v3585_v24 = vpack.c.bf16 %v977_v21, %v976_v20 }
  0x46   :  { %293 = vst [vmem:[#allocation2 + $0x138] sm:$0x1] %v4326_v1  ;;  %294 = vst [vmem:[#allocation2 + $0x150] sm:$0x1] %v4326_v1  ;;  %3628 = vmatpush1.bf16.msra.mxu0 %v4488_v13  ;;  %3581 = vmatprep.subr.bf16.mxu1 %v4325_v0  ;;  %v4498_v25 = vpack.c.bf16 %v1009_v23, %v1008_v22  ;;  %v978_v26 = vld [vmem:[#allocation9 + $0x40] sm:$0xff]  ;;  %v979_v27 = vld [vmem:[#allocation9 + $0x48] sm:$0xff] }
  0x47   :  { %295 = vst [vmem:[#allocation2 + $0x168] sm:$0x1] %v4326_v1  ;;  %296 = vst [vmem:[#allocation2 + $0x180] sm:$0x1] %v4326_v1  ;;  %3629 = vmatprep.subr.bf16.mxu0 %v4325_v0  ;;  %v1010_v28 = vld [vmem:[#allocation9 + $0x140] sm:$0xff]  ;;  %v1011_v29 = vld [vmem:[#allocation9 + $0x148] sm:$0xff]  ;;  %v3588_v30 = vpack.c.bf16 %v979_v27, %v978_v26 }
  0x48   :  { %297 = vst [vmem:[#allocation2 + $0x198] sm:$0x1] %v4326_v1  ;;  %298 = vst [vmem:[#allocation2 + $0x1b0] sm:$0x1] %v4326_v1  ;;  %v4503_v31 = vpack.c.bf16 %v1011_v29, %v1010_v28  ;;  %v980_v32 = vld [vmem:[#allocation9 + $0x50] sm:$0xff]  ;;  %v981_v33 = vld [vmem:[#allocation9 + $0x58] sm:$0xff] }
  0x49   :  { %299 = vst [vmem:[#allocation2 + $0x1c8] sm:$0x1] %v4326_v1  ;;  %300 = vst [vmem:[#allocation2 + $0x1e0] sm:$0x1] %v4326_v1  ;;  %3583 = vmatpush1.bf16.msra.mxu1 %v3582_v18  ;;  %v1012_v34 = vld [vmem:[#allocation9 + $0x150] sm:$0xff]  ;;  %v1013_v35 = vld [vmem:[#allocation9 + $0x158] sm:$0xff]  ;;  %v3591_v36 = vpack.c.bf16 %v981_v33, %v980_v32 }
  0x4a   :  { %301 = vst [vmem:[#allocation2 + $0x1f8] sm:$0x1] %v4326_v1  ;;  %302 = vst [vmem:[#allocation2 + $0x210] sm:$0x1] %v4326_v1  ;;  %3631 = vmatpush1.bf16.msra.mxu0 %v4493_v19  ;;  %3584 = vmatprep.subr.bf16.mxu1 %v4325_v0  ;;  %v4508_v37 = vpack.c.bf16 %v1013_v35, %v1012_v34  ;;  %v982_v38 = vld [vmem:[#allocation9 + $0x60] sm:$0xff]  ;;  %v983_v39 = vld [vmem:[#allocation9 + $0x68] sm:$0xff] }
  0x4b   :  { %303 = vst [vmem:[#allocation2 + $0x228] sm:$0x1] %v4326_v1  ;;  %304 = vst [vmem:[#allocation2 + $0x240] sm:$0x1] %v4326_v1  ;;  %3632 = vmatprep.subr.bf16.mxu0 %v4325_v0  ;;  %v1014_v40 = vld [vmem:[#allocation9 + $0x160] sm:$0xff]  ;;  %v1015_v41 = vld [vmem:[#allocation9 + $0x168] sm:$0xff]  ;;  %v3594_v43 = vpack.c.bf16 %v983_v39, %v982_v38 }
  0x4c   :  { %305 = vst [vmem:[#allocation2 + $0x258] sm:$0x1] %v4326_v1  ;;  %306 = vst [vmem:[#allocation2 + $0x270] sm:$0x1] %v4326_v1  ;;  %v4511_v42 = vld [vmem:[#allocation3] sm:$0xff]  ;;  %v4514_v44 = vld [vmem:[#allocation3 + $0x8] sm:$0xff]  ;;  %v4518_v45 = vpack.c.bf16 %v1015_v41, %v1014_v40 }
  0x4d   :  { %307 = vst [vmem:[#allocation2 + $0x288] sm:$0x1] %v4326_v1  ;;  %308 = vst [vmem:[#allocation2 + $0x2a0] sm:$0x1] %v4326_v1  ;;  %3586 = vmatpush1.bf16.msra.mxu1 %v3585_v24  ;;  %v984_v46 = vld [vmem:[#allocation9 + $0x70] sm:$0xff]  ;;  %v985_v47 = vld [vmem:[#allocation9 + $0x78] sm:$0xff] }
  0x4e   :  { %309 = vst [vmem:[#allocation2 + $0x2b8] sm:$0x1] %v4326_v1  ;;  %310 = vst [vmem:[#allocation2 + $0x2d0] sm:$0x1] %v4326_v1  ;;  %3634 = vmatpush1.bf16.msra.mxu0 %v4498_v25  ;;  %3587 = vmatprep.subr.bf16.mxu1 %v4325_v0  ;;  %v4521_v48 = vld [vmem:[#allocation3 + $0x10] sm:$0xff]  ;;  %v1017_v50 = vld [vmem:[#allocation9 + $0x178] sm:$0xff]  ;;  %v3597_v53 = vpack.c.bf16 %v985_v47, %v984_v46 }
  0x4f   :  { %311 = vst [vmem:[#allocation2 + $0x2e8] sm:$0x1] %v4326_v1  ;;  %312 = vst [vmem:[#allocation2 + $0x300] sm:$0x1] %v4326_v1  ;;  %3635 = vmatprep.subr.bf16.mxu0 %v4325_v0  ;;  %v1016_v49 = vld [vmem:[#allocation9 + $0x170] sm:$0xff]  ;;  %v4525_v51 = vld [vmem:[#allocation3 + $0x18] sm:$0xff] }
  0x50   :  { %313 = vst [vmem:[#allocation2 + $0x318] sm:$0x1] %v4326_v1  ;;  %314 = vst [vmem:[#allocation2 + $0x330] sm:$0x1] %v4326_v1  ;;  %v4528_v52 = vld [vmem:[#allocation3 + $0x20] sm:$0xff]  ;;  %v4531_v54 = vld [vmem:[#allocation3 + $0x28] sm:$0xff]  ;;  %v4535_v55 = vpack.c.bf16 %v1017_v50, %v1016_v49 }
  0x51   :  { %315 = vst [vmem:[#allocation2 + $0x348] sm:$0x1] %v4326_v1  ;;  %316 = vst [vmem:[#allocation2 + $0x11] sm:$0x1] %v4326_v1  ;;  %3589 = vmatpush1.bf16.msra.mxu1 %v3588_v30  ;;  %v986_v56 = vld [vmem:[#allocation9 + $0x80] sm:$0xff]  ;;  %v987_v57 = vld [vmem:[#allocation9 + $0x88] sm:$0xff] }
  0x52   :  { %317 = vst [vmem:[#allocation2 + $0x29] sm:$0x1] %v4326_v1  ;;  %318 = vst [vmem:[#allocation2 + $0x41] sm:$0x1] %v4326_v1  ;;  %3637 = vmatpush1.bf16.msra.mxu0 %v4503_v31  ;;  %3590 = vmatprep.subr.bf16.mxu1 %v4325_v0  ;;  %v4538_v58 = vld [vmem:[#allocation3 + $0x30] sm:$0xff]  ;;  %v1018_v59 = vld [vmem:[#allocation9 + $0x180] sm:$0xff]  ;;  %v3600_v63 = vpack.c.bf16 %v987_v57, %v986_v56 }
  0x53   :  { %319 = vst [vmem:[#allocation2 + $0x59] sm:$0x1] %v4326_v1  ;;  %320 = vst [vmem:[#allocation2 + $0x71] sm:$0x1] %v4326_v1  ;;  %3638 = vmatprep.subr.bf16.mxu0 %v4325_v0  ;;  %v1019_v60 = vld [vmem:[#allocation9 + $0x188] sm:$0xff]  ;;  %v4545_v62 = vld [vmem:[#allocation3 + $0x38] sm:$0xff] }
  0x54   :  { %321 = vst [vmem:[#allocation2 + $0x89] sm:$0x1] %v4326_v1  ;;  %322 = vst [vmem:[#allocation2 + $0xa1] sm:$0x1] %v4326_v1  ;;  %v4550_v2 = vpack.c.bf16 %v1019_v60, %v1018_v59  ;;  %v988_v3 = vld [vmem:[#allocation9 + $0x90] sm:$0xff]  ;;  %v989_v4 = vld [vmem:[#allocation9 + $0x98] sm:$0xff] }
  0x55   :  { %323 = vst [vmem:[#allocation2 + $0xb9] sm:$0x1] %v4326_v1  ;;  %324 = vst [vmem:[#allocation2 + $0xd1] sm:$0x1] %v4326_v1  ;;  %3592 = vmatpush1.bf16.msra.mxu1 %v3591_v36  ;;  %v4552_v5 = vld [vmem:[#allocation3 + $0x40] sm:$0xff]  ;;  %v1020_v6 = vld [vmem:[#allocation9 + $0x190] sm:$0xff]  ;;  %v3603_v10 = vpack.c.bf16 %v989_v4, %v988_v3 }
  0x56   :  { %325 = vst [vmem:[#allocation2 + $0xe9] sm:$0x1] %v4326_v1  ;;  %326 = vst [vmem:[#allocation2 + $0x101] sm:$0x1] %v4326_v1  ;;  %3640 = vmatpush1.bf16.msra.mxu0 %v4508_v37  ;;  %3593 = vmatprep.subr.bf16.mxu1 %v4325_v0  ;;  %v1021_v7 = vld [vmem:[#allocation9 + $0x198] sm:$0xff]  ;;  %v4556_v8 = vld [vmem:[#allocation3 + $0x48] sm:$0xff] }
  0x57   :  { %327 = vst [vmem:[#allocation2 + $0x119] sm:$0x1] %v4326_v1  ;;  %328 = vst [vmem:[#allocation2 + $0x131] sm:$0x1] %v4326_v1  ;;  %3641 = vmatprep.subr.bf16.mxu0 %v4325_v0  ;;  %v4561_v11 = vpack.c.bf16 %v1021_v7, %v1020_v6  ;;  %v990_v12 = vld [vmem:[#allocation9 + $0xa0] sm:$0xff]  ;;  %v991_v14 = vld [vmem:[#allocation9 + $0xa8] sm:$0xff] }
  0x58   :  { %329 = vst [vmem:[#allocation2 + $0x149] sm:$0x1] %v4326_v1  ;;  %330 = vst [vmem:[#allocation2 + $0x161] sm:$0x1] %v4326_v1  ;;  %v1022_v15 = vld [vmem:[#allocation9 + $0x1a0] sm:$0xff]  ;;  %v1023_v16 = vld [vmem:[#allocation9 + $0x1a8] sm:$0xff]  ;;  %v3606_v18 = vpack.c.bf16 %v991_v14, %v990_v12 }
  0x59   :  { %331 = vst [vmem:[#allocation2 + $0x179] sm:$0x1] %v4326_v1  ;;  %332 = vst [vmem:[#allocation2 + $0x191] sm:$0x1] %v4326_v1  ;;  %3595 = vmatpush1.bf16.msra.mxu1 %v3594_v43  ;;  %v4564_v17 = vld [vmem:[#allocation3 + $0x50] sm:$0xff]  ;;  %v4567_v20 = vld [vmem:[#allocation3 + $0x58] sm:$0xff]  ;;  %v4571_v21 = vpack.c.bf16 %v1023_v16, %v1022_v15 }
  0x5a   :  { %333 = vst [vmem:[#allocation2 + $0x1a9] sm:$0x1] %v4326_v1  ;;  %334 = vst [vmem:[#allocation2 + $0x1c1] sm:$0x1] %v4326_v1  ;;  %3643 = vmatpush1.bf16.msra.mxu0 %v4518_v45  ;;  %3596 = vmatprep.subr.bf16.mxu1 %v4325_v0  ;;  %v992_v22 = vld [vmem:[#allocation9 + $0xb0] sm:$0xff]  ;;  %v993_v23 = vld [vmem:[#allocation9 + $0xb8] sm:$0xff] }
  0x5b   :  { %335 = vst [vmem:[#allocation2 + $0x1d9] sm:$0x1] %v4326_v1  ;;  %336 = vst [vmem:[#allocation2 + $0x1f1] sm:$0x1] %v4326_v1  ;;  %3644 = vmatprep.subr.bf16.mxu0 %v4325_v0  ;;  %v4574_v24 = vld [vmem:[#allocation3 + $0x60] sm:$0xff]  ;;  %v1024_v26 = vld [vmem:[#allocation9 + $0x1b0] sm:$0xff]  ;;  %v3609_v29 = vpack.c.bf16 %v993_v23, %v992_v22 }
  0x5c   :  { %337 = vst [vmem:[#allocation2 + $0x209] sm:$0x1] %v4326_v1  ;;  %338 = vst [vmem:[#allocation2 + $0x221] sm:$0x1] %v4326_v1  ;;  %v1025_v27 = vld [vmem:[#allocation9 + $0x1b8] sm:$0xff]  ;;  %v4578_v28 = vld [vmem:[#allocation3 + $0x68] sm:$0xff] }
  0x5d   :  { %339 = vst [vmem:[#allocation2 + $0x239] sm:$0x1] %v4326_v1  ;;  %340 = vst [vmem:[#allocation2 + $0x251] sm:$0x1] %v4326_v1  ;;  %3598 = vmatpush1.bf16.msra.mxu1 %v3597_v53  ;;  %v4581_v30 = vld [vmem:[#allocation3 + $0x70] sm:$0xff]  ;;  %v4585_v32 = vpack.c.bf16 %v1025_v27, %v1024_v26  ;;  %v994_v33 = vld [vmem:[#allocation9 + $0xc0] sm:$0xff] }
  0x5e   :  { %341 = vst [vmem:[#allocation2 + $0x269] sm:$0x1] %v4326_v1  ;;  %342 = vst [vmem:[#allocation2 + $0x281] sm:$0x1] %v4326_v1  ;;  %3646 = vmatpush1.bf16.msra.mxu0 %v4535_v55  ;;  %3599 = vmatprep.subr.bf16.mxu1 %v4325_v0  ;;  %v995_v34 = vld [vmem:[#allocation9 + $0xc8] sm:$0xff]  ;;  %v4588_v35 = vld [vmem:[#allocation3 + $0x78] sm:$0xff] }
  0x5f   :  { %343 = vst [vmem:[#allocation2 + $0x299] sm:$0x1] %v4326_v1  ;;  %344 = vst [vmem:[#allocation2 + $0x2b1] sm:$0x1] %v4326_v1  ;;  %3647 = vmatprep.subr.bf16.mxu0 %v4325_v0  ;;  %v1026_v36 = vld [vmem:[#allocation9 + $0x1c0] sm:$0xff]  ;;  %v1027_v38 = vld [vmem:[#allocation9 + $0x1c8] sm:$0xff]  ;;  %v3612_v41 = vpack.c.bf16 %v995_v34, %v994_v33 }
  0x60   :  { %345 = vst [vmem:[#allocation2 + $0x2c9] sm:$0x1] %v4326_v1  ;;  %346 = vst [vmem:[#allocation2 + $0x2e1] sm:$0x1] %v4326_v1  ;;  %v4592_v39 = vld [vmem:[#allocation3 + $0x80] sm:$0xff]  ;;  %v4594_v40 = vld [vmem:[#allocation3 + $0x88] sm:$0xff]  ;;  %v4600_v43 = vpack.c.bf16 %v1027_v38, %v1026_v36 }
  0x61   :  { %347 = vst [vmem:[#allocation2 + $0x2f9] sm:$0x1] %v4326_v1  ;;  %348 = vst [vmem:[#allocation2 + $0x311] sm:$0x1] %v4326_v1  ;;  %3601 = vmatpush1.bf16.msra.mxu1 %v3600_v63  ;;  %v996_v46 = vld [vmem:[#allocation9 + $0xd0] sm:$0xff]  ;;  %v997_v47 = vld [vmem:[#allocation9 + $0xd8] sm:$0xff] }
  0x62   :  { %349 = vst [vmem:[#allocation2 + $0x329] sm:$0x1] %v4326_v1  ;;  %350 = vst [vmem:[#allocation2 + $0x341] sm:$0x1] %v4326_v1  ;;  %3649 = vmatpush1.bf16.msra.mxu0 %v4550_v2  ;;  %3602 = vmatprep.subr.bf16.mxu1 %v4325_v0  ;;  %v4602_v49 = vld [vmem:[#allocation3 + $0x90] sm:$0xff]  ;;  %v1029_v53 = vld [vmem:[#allocation9 + $0x1d8] sm:$0xff]  ;;  %v3615_v59 = vpack.c.bf16 %v997_v47, %v996_v46 }
  0x63   :  { %351 = vst [vmem:[#allocation2 + $0x359] sm:$0x1] %v4326_v1  ;;  %357 = vst [vmem:[#allocation2 + $0x9] sm:$0xff] %v4326_v1  ;;  %3650 = vmatprep.subr.bf16.mxu0 %v4325_v0  ;;  %v1028_v50 = vld [vmem:[#allocation9 + $0x1d0] sm:$0xff]  ;;  %v4606_v56 = vld [vmem:[#allocation3 + $0x98] sm:$0xff]  ;;  %s3312_s26 = sshll.u32 %s4327_s3, 4  ;;  %s3313_s26 = int_to_ptr.vmem [resolvable:$true] %s3312_s26 }
  0x64   :  { %358 = vst [vmem:[#allocation2 + $0x1b1] sm:$0xff] %v4326_v1  ;;  %359 = vst [vmem:[#allocation2 + $0x1b9] sm:$0xff] %v4326_v1  ;;  %v4608_v57 = vld [vmem:[#allocation3 + $0xa0] sm:$0xff]  ;;  %v4612_v63 = vld [vmem:[#allocation3 + $0xa8] sm:$0xff]  ;;  %v4618_v4 = vpack.c.bf16 %v1029_v53, %v1028_v50  ;;  %s4229_s27 = scalar_lea.vmem %s3313_s26, 8192  ;;  %p4234_p3 = scmp.lt.s32.totalorder %s3313_s26, %s3313_s26 }
  0x65   :  { %376 = vst [vmem:[#allocation2 + $0x199] sm:$0xff] %v4326_v1  ;;  %377 = vst [vmem:[#allocation2 + $0x1a1] sm:$0xff] %v4326_v1  ;;  %3604 = vmatpush1.bf16.msra.mxu1 %v3603_v10  ;;  %v998_v60 = vld [vmem:[#allocation9 + $0xe0] sm:$0xff]  ;;  %v4614_v3 = vld [vmem:[#allocation3 + $0xb0] sm:$0xff]  ;;  %p4230_p2 = scmp.ne.s32.totalorder %s3313_s26, %s4229_s27  ;;  %p4235_p4 = scmp.lt.s32.totalorder %s4229_s27, %s4229_s27 }
  0x66   :  { %378 = vst [vmem:[#allocation2 + $0x349] sm:$0xff] %v4326_v1  ;;  %379 = vst [vmem:[#allocation2 + $0x351] sm:$0xff] %v4326_v1  ;;  %3652 = vmatpush1.bf16.msra.mxu0 %v4561_v11  ;;  %3605 = vmatprep.subr.bf16.mxu1 %v4325_v0  ;;  %v999_v6 = vld [vmem:[#allocation9 + $0xe8] sm:$0xff]  ;;  %v1030_v7 = vld [vmem:[#allocation9 + $0x1e0] sm:$0xff] }
  0x67   :  { %216 = vst [vmem:[#allocation2 + $0x19] sm:$0xff] %v4511_v42  ;;  %217 = vst [vmem:[#allocation2 + $0x21] sm:$0xff] %v4514_v44  ;;  %3653 = vmatprep.subr.bf16.mxu0 %v4325_v0  ;;  %v1031_v10 = vld [vmem:[#allocation9 + $0x1e8] sm:$0xff]  ;;  %v4623_v12 = vld [vmem:[#allocation3 + $0xb8] sm:$0xff]  ;;  %p4236_p5 = por %p4235_p4, %p4234_p3 }
  0x68   :  { %218 = vst [vmem:[#allocation2 + $0x31] sm:$0xff] %v4521_v48  ;;  %219 = vst [vmem:[#allocation2 + $0x39] sm:$0xff] %v4525_v51  ;;  %v4625_v14 = vld [vmem:[#allocation3 + $0xc0] sm:$0xff]  ;;  %v4627_v15 = vld [vmem:[#allocation3 + $0xc8] sm:$0xff]  ;;  %v4639_v23 = vpack.c.bf16 %v1031_v10, %v1030_v7 }
  0x69   :  { %220 = vst [vmem:[#allocation2 + $0x49] sm:$0xff] %v4528_v52  ;;  %221 = vst [vmem:[#allocation2 + $0x51] sm:$0xff] %v4531_v54  ;;  %3607 = vmatpush1.bf16.msra.mxu1 %v3606_v18  ;;  %v4632_v16 = vld [vmem:[#allocation3 + $0xd0] sm:$0xff]  ;;  %v3618_v18 = vpack.c.bf16 %v999_v6, %v998_v60  ;;  %v4635_v22 = vld [vmem:[#allocation3 + $0xd8] sm:$0xff]  ;;  %p4237_p6 = pnand %p4236_p5, %p4230_p2 }
  0x6a   :  { %222 = vst [vmem:[#allocation2 + $0x61] sm:$0xff] %v4538_v58  ;;  %223 = vst [vmem:[#allocation2 + $0x69] sm:$0xff] %v4545_v62  ;;  %3655 = vmatpush1.bf16.msra.mxu0 %v4571_v21  ;;  %3608 = vmatprep.subr.bf16.mxu1 %v4325_v0  ;;  %v1000_v26 = vld [vmem:[#allocation9 + $0xf0] sm:$0xff]  ;;  %v1001_v27 = vld [vmem:[#allocation9 + $0xf8] sm:$0xff] }
  0x6b   :  { %224 = vst [vmem:[#allocation2 + $0x79] sm:$0xff] %v4552_v5  ;;  %225 = vst [vmem:[#allocation2 + $0x81] sm:$0xff] %v4556_v8  ;;  %3656 = vmatprep.subr.bf16.mxu0 %v4325_v0  ;;  %v1032_v33 = vld [vmem:[#allocation9 + $0x1f0] sm:$0xff]  ;;  %v1033_v34 = vld [vmem:[#allocation9 + $0x1f8] sm:$0xff]  ;;  %v3621_v38 = vpack.c.bf16 %v1001_v27, %v1000_v26 }
  0x6c   :  { %226 = vst [vmem:[#allocation2 + $0x91] sm:$0xff] %v4564_v17  ;;  %227 = vst [vmem:[#allocation2 + $0x99] sm:$0xff] %v4567_v20  ;;  %v4646_v36 = vld [vmem:[#allocation3 + $0xe8] sm:$0xff]  ;;  %v1034_v46 = vld [vmem:[#allocation9 + $0x200] sm:$0xff] }
  0x6d   :  { %228 = vst [vmem:[#allocation2 + $0xa9] sm:$0xff] %v4574_v24  ;;  %229 = vst [vmem:[#allocation2 + $0xb1] sm:$0xff] %v4578_v28  ;;  %3610 = vmatpush1.bf16.msra.mxu1 %v3609_v29  ;;  %v4642_v29 = vld [vmem:[#allocation3 + $0xe0] sm:$0xff]  ;;  %v1035_v47 = vld [vmem:[#allocation9 + $0x208] sm:$0xff] }
  0x6e   :  { %v4541_v61 = vld [vmem:[#allocation2 + $0x18] sm:$0xff]  ;;  %230 = vst [vmem:[#allocation2 + $0xc1] sm:$0xff] %v4581_v30  ;;  %231 = vst [vmem:[#allocation2 + $0xc9] sm:$0xff] %v4588_v35  ;;  %3658 = vmatpush1.bf16.msra.mxu0 %v4585_v32  ;;  %3611 = vmatprep.subr.bf16.mxu1 %v4325_v0  ;;  %v393_v50 = vld [vmem:[#allocation2] sm:$0xff] }
  0x6f   :  { %1563 = vmatprep.mubr.f32.mxu0 %v4541_v61  ;;  %232 = vst [vmem:[#allocation2 + $0xd9] sm:$0xff] %v4592_v39  ;;  %233 = vst [vmem:[#allocation2 + $0xe1] sm:$0xff] %v4594_v40  ;;  %3659 = vmatprep.subr.bf16.mxu0 %v4325_v0  ;;  %v521_v53 = vld [vmem:[#allocation2 + $0x2] sm:$0xff]  ;;  %v1036_v60 = vld [vmem:[#allocation9 + $0x210] sm:$0xff] }
  0x70   :  { %234 = vst [vmem:[#allocation2 + $0xf1] sm:$0xff] %v4602_v49  ;;  %235 = vst [vmem:[#allocation2 + $0xf9] sm:$0xff] %v4606_v56  ;;  %v1037_v6 = vld [vmem:[#allocation9 + $0x218] sm:$0xff]  ;;  %v586_v7 = vld [vmem:[#allocation2 + $0x20] sm:$0xff] }
  0x71   :  { %3613 = vmatpush1.bf16.msra.mxu1 %v3612_v41  ;;  %236 = vst [vmem:[#allocation2 + $0x109] sm:$0xff] %v4608_v57  ;;  %237 = vst [vmem:[#allocation2 + $0x111] sm:$0xff] %v4612_v63  ;;  %v4651_v41 = vpack.c.bf16 %v1033_v34, %v1032_v33  ;;  %v4657_v10 = vld [vmem:[#allocation3 + $0x100] sm:$0xff]  ;;  %v522_v26 = vld [vmem:[#allocation2 + $0xa] sm:$0xff]  ;;  %v3675_v27 = vpack.c.bf16 %v1037_v6, %v1036_v60 }
  0x72   :  { %3661 = vmatpush1.bf16.msra.mxu0 %v4600_v43  ;;  %3614 = vmatprep.subr.bf16.mxu1 %v4325_v0  ;;  %238 = vst [vmem:[#allocation2 + $0x121] sm:$0xff] %v4614_v3  ;;  %239 = vst [vmem:[#allocation2 + $0x129] sm:$0xff] %v4623_v12  ;;  %v587_v33 = vld [vmem:[#allocation2 + $0x30] sm:$0xff]  ;;  %v1038_v34 = vld [vmem:[#allocation9 + $0x220] sm:$0xff] }
  0x73   :  { %3662 = vmatprep.subr.bf16.mxu0 %v4325_v0  ;;  %240 = vst [vmem:[#allocation2 + $0x139] sm:$0xff] %v4625_v14  ;;  %241 = vst [vmem:[#allocation2 + $0x141] sm:$0xff] %v4627_v15  ;;  %v4679_v60 = vld [vmem:[#allocation2 + $0x22] sm:$0xff] }
  0x74   :  { %242 = vst [vmem:[#allocation2 + $0x151] sm:$0xff] %v4632_v16  ;;  %243 = vst [vmem:[#allocation2 + $0x159] sm:$0xff] %v4635_v22 }
  0x75   :  { %3616 = vmatpush1.bf16.msra.mxu1 %v3615_v59  ;;  %244 = vst [vmem:[#allocation2 + $0x169] sm:$0xff] %v4642_v29  ;;  %245 = vst [vmem:[#allocation2 + $0x171] sm:$0xff] %v4646_v36  ;;  %v3672_v59 = vpack.c.bf16 %v1035_v47, %v1034_v46  ;;  %v4664_v46 = vld [vmem:[#allocation3 + $0x108] sm:$0xff]  ;;  %v588_v47 = vld [vmem:[#allocation2 + $0x38] sm:$0xff] }
  0x76   :  { %3664 = vmatpush1.bf16.msra.mxu0 %v4618_v4  ;;  %3617 = vmatprep.subr.bf16.mxu1 %v4325_v0  ;;  %248 = vst [vmem:[#allocation2 + $0x1c9] sm:$0xff] %v4657_v10  ;;  %249 = vst [vmem:[#allocation2 + $0x1d1] sm:$0xff] %v4664_v46 }
  0x77   :  { %3665 = vmatprep.subr.bf16.mxu0 %v4325_v0 }
  0x79   :  { %3619 = vmatpush1.bf16.msra.mxu1 %v3618_v18  ;;  %v394_v18 = vld [vmem:[#allocation2 + $0x8] sm:$0xff] }
  0x7a   :  { %3667 = vmatpush1.bf16.msra.mxu0 %v4639_v23  ;;  %3620 = vmatprep.subr.bf16.mxu1 %v4325_v0 }
  0x7b   :  { %3668 = vmatprep.subr.bf16.mxu0 %v4325_v0 }
  0x7d   :  { %3622 = vmatpush1.bf16.msra.mxu1 %v3621_v38  ;;  %v1039_v38 = vld [vmem:[#allocation9 + $0x228] sm:$0xff] }
  0x7e   :  { %3670 = vmatpush1.bf16.msra.mxu0 %v4651_v41  ;;  %3799 = vmatprep.subr.bf16.mxu1 %v4325_v0 }
  0x7f   :  { %3671 = vmatprep.subr.bf16.mxu0 %v4325_v0 }
  0x80   :  { %1179 = vmatmul.mubr.f32.vlgmr.msra.gmra.mrb[0].mxu1 %v393_v50  ;;  %v1040_v50 = vld [vmem:[#allocation9 + $0x230] sm:$0xff] }
  0x81   :  { %1564 = vmatmul.mubr.f32.vlgmr.msra.gmra.mrb[0].mxu0 %v521_v53  ;;  %3815 = vmatpush1.bf16.msra.mxu1 %v4484_v9  ;;  %v3678_v9 = vpack.c.bf16 %v1039_v38, %v1038_v34  ;;  %v1041_v53 = vld [vmem:[#allocation9 + $0x238] sm:$0xff]  ;;  %v590_v38 = vld [vmem:[#allocation2 + $0x50] sm:$0xff] }
  0x82   :  { %3673 = vmatpush1.bf16.msra.mxu0 %v3672_v59  ;;  %1183 = vmatprep.mubr.f32.mxu1 %v4326_v1  ;;  %v4668_v1 = vld [vmem:[#allocation2 + $0x1a] sm:$0xff]  ;;  %v4674_v59 = vld [vmem:[#allocation3 + $0x110] sm:$0xff]  ;;  %v3681_v6 = vpack.c.bf16 %v1041_v53, %v1040_v50 }
  0x83   :  { %1568 = vmatprep.mubr.f32.mxu0 %v586_v7  ;;  %3674 = vmatprep.subr.bf16.mxu0 %v4325_v0  ;;  %250 = vst [vmem:[#allocation2 + $0x1e1] sm:$0xff] %v4674_v59  ;;  %v4699_v50 = vld [vmem:[#allocation2 + $0x3a] sm:$0xff] }
  0x84   :  { %1184 = vmatmul.mubr.f32.gmra.mrb[2].mxu1 %v394_v18  ;;  %3800 = vmatprep.subr.bf16.mxu1 %v4325_v0  ;;  %v1042_v18 = vld [vmem:[#allocation9 + $0x240] sm:$0xff] }
  0x85   :  { %1569 = vmatmul.mubr.f32.gmra.mrb[2].mxu0 %v522_v26  ;;  %1188 = vmatprep.mubr.f32.mxu1 %v4511_v42  ;;  %v4684_v26 = vld [vmem:[#allocation3 + $0x118] sm:$0xff] }
  0x86   :  { %3676 = vmatpush1.bf16.msra.mxu0 %v3675_v27  ;;  %1573 = vmatprep.mubr.f32.mxu0 %v587_v33  ;;  %5819 = vst [vmem:[#allocation24_spill] sm:$0xff] %v4684_v26  ;;  %251 = vst [vmem:[#allocation2 + $0x1e9] sm:$0xff] %v4684_v26  ;;  %v4689_v27 = vld [vmem:[#allocation2 + $0x32] sm:$0xff]  ;;  %v4777_v26 = vld [vmem:[#allocation3 + $0x160] sm:$0xff] }
  0x87   :  { %3677 = vmatprep.subr.bf16.mxu0 %v4325_v0  ;;  %3816 = vmatpush1.bf16.msra.mxu1 %v4488_v13  ;;  %v589_v13 = vld [vmem:[#allocation2 + $0x48] sm:$0xff]  ;;  %260 = vst [vmem:[#allocation2 + $0x259] sm:$0xff] %v4777_v26 }
  0x88   :  { %1189 = vmatmul.mubr.f32.gmra.mrb[4].mxu1 %v4541_v61  ;;  %3801 = vmatprep.subr.bf16.mxu1 %v4325_v0  ;;  %v1043_v61 = vld [vmem:[#allocation9 + $0x248] sm:$0xff] }
  0x89   :  { %1574 = vmatmul.mubr.f32.gmra.mrb[4].mxu0 %v4668_v1  ;;  %1193 = vmatprep.mubr.f32.mxu1 %v4514_v44  ;;  %v3684_v34 = vpack.c.bf16 %v1043_v61, %v1042_v18  ;;  %v4704_v18 = vld [vmem:[#allocation3 + $0x128] sm:$0xff] }
  0x8a   :  { %3679 = vmatpush1.bf16.msra.mxu0 %v3678_v9  ;;  %1578 = vmatprep.mubr.f32.mxu0 %v588_v47  ;;  %v4694_v9 = vld [vmem:[#allocation3 + $0x120] sm:$0xff]  ;;  %5821 = vst [vmem:[#allocation26_spill] sm:$0xff] %v4704_v18  ;;  %253 = vst [vmem:[#allocation2 + $0x201] sm:$0xff] %v4704_v18  ;;  %v4709_v61 = vld [vmem:[#allocation2 + $0x4a] sm:$0xff] }
  0x8b   :  { %3680 = vmatprep.subr.bf16.mxu0 %v4325_v0  ;;  %3817 = vmatpush1.bf16.msra.mxu1 %v4493_v19  ;;  %v1044_v19 = vld [vmem:[#allocation9 + $0x250] sm:$0xff]  ;;  %5820 = vst [vmem:[#allocation25_spill] sm:$0xff] %v4694_v9  ;;  %252 = vst [vmem:[#allocation2 + $0x1f9] sm:$0xff] %v4694_v9  ;;  %v4724_v18 = vld [vmem:[#allocation3 + $0x138] sm:$0xff] }
  0x8c   :  { %1194 = vmatmul.mubr.f32.gmra.mrb[6].mxu1 %v586_v7  ;;  %3802 = vmatprep.subr.bf16.mxu1 %v4325_v0  ;;  %v1045_v7 = vld [vmem:[#allocation9 + $0x258] sm:$0xff]  ;;  %5823 = vst [vmem:[#allocation28_spill] sm:$0xff] %v4724_v18  ;;  %255 = vst [vmem:[#allocation2 + $0x219] sm:$0xff] %v4724_v18  ;;  %v4744_v18 = vld [vmem:[#allocation3 + $0x148] sm:$0xff] }
  0x8d   :  { %1579 = vmatmul.mubr.f32.gmra.mrb[6].mxu0 %v4679_v60  ;;  %1198 = vmatprep.mubr.f32.mxu1 %v4521_v48  ;;  %v3687_v53 = vpack.c.bf16 %v1045_v7, %v1044_v19  ;;  %v592_v19 = vld [vmem:[#allocation2 + $0x68] sm:$0xff]  ;;  %v4714_v7 = vld [vmem:[#allocation3 + $0x130] sm:$0xff]  ;;  %5825 = vst [vmem:[#allocation30_spill] sm:$0xff] %v4744_v18  ;;  %257 = vst [vmem:[#allocation2 + $0x231] sm:$0xff] %v4744_v18 }
  0x8e   :  { %3682 = vmatpush1.bf16.msra.mxu0 %v3681_v6  ;;  %1583 = vmatprep.mubr.f32.mxu0 %v589_v13  ;;  %v591_v6 = vld [vmem:[#allocation2 + $0x60] sm:$0xff]  ;;  %5822 = vst [vmem:[#allocation27_spill] sm:$0xff] %v4714_v7  ;;  %254 = vst [vmem:[#allocation2 + $0x211] sm:$0xff] %v4714_v7  ;;  %v4764_v18 = vld [vmem:[#allocation3 + $0x158] sm:$0xff] }
  0x8f   :  { %3683 = vmatprep.subr.bf16.mxu0 %v4325_v0  ;;  %3818 = vmatpush1.bf16.msra.mxu1 %v4498_v25  ;;  %v1046_v25 = vld [vmem:[#allocation9 + $0x260] sm:$0xff]  ;;  %259 = vst [vmem:[#allocation2 + $0x249] sm:$0xff] %v4764_v18  ;;  %v4775_v9 = vld [vmem:[#allocation3 + $0xf8] sm:$0xff] }
  0x90   :  { %1199 = vmatmul.mubr.f32.gmra.mrb[8].mxu1 %v587_v33  ;;  %3803 = vmatprep.subr.bf16.mxu1 %v4325_v0  ;;  %v1047_v33 = vld [vmem:[#allocation9 + $0x268] sm:$0xff]  ;;  %v4734_v7 = vld [vmem:[#allocation3 + $0x140] sm:$0xff]  ;;  %5828 = vst [vmem:[#allocation33_spill] sm:$0xff] %v4775_v9  ;;  %247 = vst [vmem:[#allocation2 + $0x189] sm:$0xff] %v4775_v9 }
  0x91   :  { %1584 = vmatmul.mubr.f32.gmra.mrb[8].mxu0 %v4689_v27  ;;  %1203 = vmatprep.mubr.f32.mxu1 %v4525_v51  ;;  %5824 = vst [vmem:[#allocation29_spill] sm:$0xff] %v4734_v7  ;;  %256 = vst [vmem:[#allocation2 + $0x229] sm:$0xff] %v4734_v7  ;;  %v4754_v7 = vld [vmem:[#allocation3 + $0x150] sm:$0xff]  ;;  %v4789_v9 = vld [vmem:[#allocation3 + $0x168] sm:$0xff] }
  0x92   :  { %3685 = vmatpush1.bf16.msra.mxu0 %v3684_v34  ;;  %1588 = vmatprep.mubr.f32.mxu0 %v590_v38  ;;  %v3690_v34 = vpack.c.bf16 %v1047_v33, %v1046_v25  ;;  %v593_v33 = vld [vmem:[#allocation2 + $0x78] sm:$0xff]  ;;  %5826 = vst [vmem:[#allocation31_spill] sm:$0xff] %v4754_v7  ;;  %258 = vst [vmem:[#allocation2 + $0x241] sm:$0xff] %v4754_v7 }
  0x93   :  { %3686 = vmatprep.subr.bf16.mxu0 %v4325_v0  ;;  %3819 = vmatpush1.bf16.msra.mxu1 %v4503_v31  ;;  %v1048_v31 = vld [vmem:[#allocation9 + $0x270] sm:$0xff]  ;;  %v1061_v7 = vld [vmem:[#allocation9 + $0x2d8] sm:$0xff]  ;;  %261 = vst [vmem:[#allocation2 + $0x261] sm:$0xff] %v4789_v9 }
  0x94   :  { %1204 = vmatmul.mubr.f32.gmra.mrb[10].mxu1 %v588_v47  ;;  %3804 = vmatprep.subr.bf16.mxu1 %v4325_v0  ;;  %v1049_v47 = vld [vmem:[#allocation9 + $0x278] sm:$0xff] }
  0x95   :  { %1589 = vmatmul.mubr.f32.gmra.mrb[10].mxu0 %v4699_v50  ;;  %1208 = vmatprep.mubr.f32.mxu1 %v4528_v52  ;;  %v3693_v25 = vpack.c.bf16 %v1049_v47, %v1048_v31  ;;  %v594_v47 = vld [vmem:[#allocation2 + $0x80] sm:$0xff] }
  0x96   :  { %3688 = vmatpush1.bf16.msra.mxu0 %v3687_v53  ;;  %1593 = vmatprep.mubr.f32.mxu0 %v591_v6  ;;  %v4719_v53 = vld [vmem:[#allocation2 + $0x52] sm:$0xff] }
  0x97   :  { %3689 = vmatprep.subr.bf16.mxu0 %v4325_v0  ;;  %3820 = vmatpush1.bf16.msra.mxu1 %v4508_v37  ;;  %v1050_v37 = vld [vmem:[#allocation9 + $0x280] sm:$0xff] }
  0x98   :  { %1209 = vmatmul.mubr.f32.gmra.mrb[12].mxu1 %v589_v13  ;;  %3805 = vmatprep.subr.bf16.mxu1 %v4325_v0  ;;  %v1051_v13 = vld [vmem:[#allocation9 + $0x288] sm:$0xff] }
  0x99   :  { %1594 = vmatmul.mubr.f32.gmra.mrb[12].mxu0 %v4709_v61  ;;  %1213 = vmatprep.mubr.f32.mxu1 %v4531_v54  ;;  %v3696_v31 = vpack.c.bf16 %v1051_v13, %v1050_v37  ;;  %v595_v13 = vld [vmem:[#allocation2 + $0x90] sm:$0xff] }
  0x9a   :  { %3691 = vmatpush1.bf16.msra.mxu0 %v3690_v34  ;;  %1598 = vmatprep.mubr.f32.mxu0 %v592_v19  ;;  %v4729_v34 = vld [vmem:[#allocation2 + $0x62] sm:$0xff] }
  0x9b   :  { %3692 = vmatprep.subr.bf16.mxu0 %v4325_v0  ;;  %3821 = vmatpush1.bf16.msra.mxu1 %v4518_v45  ;;  %v1052_v45 = vld [vmem:[#allocation9 + $0x290] sm:$0xff] }
  0x9c   :  { %1214 = vmatmul.mubr.f32.gmra.mrb[14].mxu1 %v590_v38  ;;  %3806 = vmatprep.subr.bf16.mxu1 %v4325_v0  ;;  %v1053_v38 = vld [vmem:[#allocation9 + $0x298] sm:$0xff] }
  0x9d   :  { %1599 = vmatmul.mubr.f32.gmra.mrb[14].mxu0 %v4719_v53  ;;  %1218 = vmatprep.mubr.f32.mxu1 %v4538_v58  ;;  %v3699_v37 = vpack.c.bf16 %v1053_v38, %v1052_v45  ;;  %v596_v38 = vld [vmem:[#allocation2 + $0x98] sm:$0xff] }
  0x9e   :  { %3694 = vmatpush1.bf16.msra.mxu0 %v3693_v25  ;;  %1603 = vmatprep.mubr.f32.mxu0 %v593_v33  ;;  %v4739_v25 = vld [vmem:[#allocation2 + $0x6a] sm:$0xff] }
  0x9f   :  { %3695 = vmatprep.subr.bf16.mxu0 %v4325_v0  ;;  %3822 = vmatpush1.bf16.msra.mxu1 %v4535_v55  ;;  %v1054_v55 = vld [vmem:[#allocation9 + $0x2a0] sm:$0xff] }
  0xa0   :  { %1219 = vmatmul.mubr.f32.gmra.mrb[16].mxu1 %v591_v6  ;;  %3807 = vmatprep.subr.bf16.mxu1 %v4325_v0  ;;  %v1055_v6 = vld [vmem:[#allocation9 + $0x2a8] sm:$0xff] }
  0xa1   :  { %1604 = vmatmul.mubr.f32.gmra.mrb[16].mxu0 %v4729_v34  ;;  %1223 = vmatprep.mubr.f32.mxu1 %v4545_v62  ;;  %v3702_v45 = vpack.c.bf16 %v1055_v6, %v1054_v55  ;;  %v597_v6 = vld [vmem:[#allocation2 + $0xa8] sm:$0xff] }
  0xa2   :  { %3697 = vmatpush1.bf16.msra.mxu0 %v3696_v31  ;;  %1608 = vmatprep.mubr.f32.mxu0 %v594_v47  ;;  %v4749_v31 = vld [vmem:[#allocation2 + $0x7a] sm:$0xff] }
  0xa3   :  { %3698 = vmatprep.subr.bf16.mxu0 %v4325_v0  ;;  %3823 = vmatpush1.bf16.msra.mxu1 %v4550_v2  ;;  %v1056_v2 = vld [vmem:[#allocation9 + $0x2b0] sm:$0xff] }
  0xa4   :  { %1224 = vmatmul.mubr.f32.gmra.mrb[18].mxu1 %v592_v19  ;;  %3808 = vmatprep.subr.bf16.mxu1 %v4325_v0  ;;  %v1057_v19 = vld [vmem:[#allocation9 + $0x2b8] sm:$0xff] }
  0xa5   :  { %1609 = vmatmul.mubr.f32.gmra.mrb[18].mxu0 %v4739_v25  ;;  %1228 = vmatprep.mubr.f32.mxu1 %v4552_v5  ;;  %v3705_v55 = vpack.c.bf16 %v1057_v19, %v1056_v2  ;;  %v1060_v19 = vld [vmem:[#allocation9 + $0x2d0] sm:$0xff] }
  0xa6   :  { %3700 = vmatpush1.bf16.msra.mxu0 %v3699_v37  ;;  %1613 = vmatprep.mubr.f32.mxu0 %v595_v13  ;;  %v4759_v37 = vld [vmem:[#allocation2 + $0x82] sm:$0xff] }
  0xa7   :  { %3701 = vmatprep.subr.bf16.mxu0 %v4325_v0  ;;  %3824 = vmatpush1.bf16.msra.mxu1 %v4561_v11  ;;  %v1058_v11 = vld [vmem:[#allocation9 + $0x2c0] sm:$0xff] }
  0xa8   :  { %1229 = vmatmul.mubr.f32.gmra.mrb[20].mxu1 %v593_v33  ;;  %3809 = vmatprep.subr.bf16.mxu1 %v4325_v0  ;;  %v1059_v33 = vld [vmem:[#allocation9 + $0x2c8] sm:$0xff] }
  0xa9   :  { %1614 = vmatmul.mubr.f32.gmra.mrb[20].mxu0 %v4749_v31  ;;  %1233 = vmatprep.mubr.f32.mxu1 %v4556_v8  ;;  %v3708_v2 = vpack.c.bf16 %v1059_v33, %v1058_v11  ;;  %v1062_v11 = vld [vmem:[#allocation9 + $0x2e0] sm:$0xff]  ;;  %v1063_v33 = vld [vmem:[#allocation9 + $0x2e8] sm:$0xff] }
  0xaa   :  { %3703 = vmatpush1.bf16.msra.mxu0 %v3702_v45  ;;  %1618 = vmatprep.mubr.f32.mxu0 %v596_v38  ;;  %v4769_v45 = vld [vmem:[#allocation2 + $0x92] sm:$0xff] }
  0xab   :  { %3704 = vmatprep.subr.bf16.mxu0 %v4325_v0  ;;  %3825 = vmatpush1.bf16.msra.mxu1 %v4571_v21  ;;  %v598_v21 = vld [vmem:[#allocation2 + $0xb0] sm:$0xff] }
  0xac   :  { %1234 = vmatmul.mubr.f32.gmra.mrb[22].mxu1 %v594_v47  ;;  %3810 = vmatprep.subr.bf16.mxu1 %v4325_v0  ;;  %v4773_v47 = vld [vmem:[#allocation3 + $0xf0] sm:$0xff] }
  0xad   :  { %1619 = vmatmul.mubr.f32.gmra.mrb[22].mxu0 %v4759_v37  ;;  %1238 = vmatprep.mubr.f32.mxu1 %v4564_v17  ;;  %5827 = vst [vmem:[#allocation32_spill] sm:$0xff] %v4773_v47  ;;  %246 = vst [vmem:[#allocation2 + $0x181] sm:$0xff] %v4773_v47  ;;  %v4799_v47 = vld [vmem:[#allocation3 + $0x170] sm:$0xff] }
  0xae   :  { %3706 = vmatpush1.bf16.msra.mxu0 %v3705_v55  ;;  %1623 = vmatprep.mubr.f32.mxu0 %v597_v6  ;;  %v3711_v55 = vpack.c.bf16 %v1061_v7, %v1060_v19  ;;  %v4795_v7 = vld [vmem:[#allocation2 + $0xaa] sm:$0xff]  ;;  %262 = vst [vmem:[#allocation2 + $0x271] sm:$0xff] %v4799_v47 }
  0xaf   :  { %3707 = vmatprep.subr.bf16.mxu0 %v4325_v0  ;;  %3826 = vmatpush1.bf16.msra.mxu1 %v4585_v32  ;;  %v4785_v32 = vld [vmem:[#allocation2 + $0x9a] sm:$0xff]  ;;  %v600_v19 = vld [vmem:[#allocation2 + $0xc8] sm:$0xff] }
  0xb0   :  { %1239 = vmatmul.mubr.f32.gmra.mrb[24].mxu1 %v595_v13  ;;  %3811 = vmatprep.subr.bf16.mxu1 %v4325_v0  ;;  %v599_v13 = vld [vmem:[#allocation2 + $0xc0] sm:$0xff] }
  0xb1   :  { %1624 = vmatmul.mubr.f32.gmra.mrb[24].mxu0 %v4769_v45  ;;  %1243 = vmatprep.mubr.f32.mxu1 %v4567_v20 }
  0xb2   :  { %3709 = vmatpush1.bf16.msra.mxu0 %v3708_v2  ;;  %1628 = vmatprep.mubr.f32.mxu0 %v598_v21  ;;  %v3714_v2 = vpack.c.bf16 %v1063_v33, %v1062_v11  ;;  %v1066_v33 = vld [vmem:[#allocation9 + $0x300] sm:$0xff] }
  0xb3   :  { %3710 = vmatprep.subr.bf16.mxu0 %v4325_v0  ;;  %3827 = vmatpush1.bf16.msra.mxu1 %v4600_v43  ;;  %v1064_v43 = vld [vmem:[#allocation9 + $0x2f0] sm:$0xff] }
  0xb4   :  { %1244 = vmatmul.mubr.f32.gmra.mrb[26].mxu1 %v596_v38  ;;  %3812 = vmatprep.subr.bf16.mxu1 %v4325_v0  ;;  %v1065_v38 = vld [vmem:[#allocation9 + $0x2f8] sm:$0xff] }
  0xb5   :  { %1629 = vmatmul.mubr.f32.gmra.mrb[26].mxu0 %v4785_v32  ;;  %1248 = vmatprep.mubr.f32.mxu1 %v4574_v24  ;;  %v3717_v11 = vpack.c.bf16 %v1065_v38, %v1064_v43  ;;  %v1068_v43 = vld [vmem:[#allocation9 + $0x310] sm:$0xff]  ;;  %v1069_v38 = vld [vmem:[#allocation9 + $0x318] sm:$0xff] }
  0xb6   :  { %3712 = vmatpush1.bf16.msra.mxu0 %v3711_v55  ;;  %1633 = vmatprep.mubr.f32.mxu0 %v599_v13  ;;  %v4805_v55 = vld [vmem:[#allocation2 + $0xb2] sm:$0xff] }
  0xb7   :  { %3713 = vmatprep.subr.bf16.mxu0 %v4325_v0  ;;  %3828 = vmatpush1.bf16.msra.mxu1 %v4618_v4  ;;  %v1067_v4 = vld [vmem:[#allocation9 + $0x308] sm:$0xff] }
  0xb8   :  { %1249 = vmatmul.mubr.f32.gmra.mrb[28].mxu1 %v597_v6  ;;  %3813 = vmatprep.subr.bf16.mxu1 %v4325_v0  ;;  %v4809_v6 = vld [vmem:[#allocation3 + $0x178] sm:$0xff] }
  0xb9   :  { %1634 = vmatmul.mubr.f32.gmra.mrb[28].mxu0 %v4795_v7  ;;  %1253 = vmatprep.mubr.f32.mxu1 %v4578_v28  ;;  %263 = vst [vmem:[#allocation2 + $0x279] sm:$0xff] %v4809_v6 }
  0xba   :  { %3715 = vmatpush1.bf16.msra.mxu0 %v3714_v2  ;;  %1638 = vmatprep.mubr.f32.mxu0 %v600_v19  ;;  %v3720_v2 = vpack.c.bf16 %v1067_v4, %v1066_v33  ;;  %v4825_v33 = vld [vmem:[#allocation3 + $0x188] sm:$0xff]  ;;  %v4832_v4 = vld [vmem:[#allocation3 + $0x190] sm:$0xff] }
  0xbb   :  { %3716 = vmatprep.subr.bf16.mxu0 %v4325_v0  ;;  %3829 = vmatpush1.bf16.msra.mxu1 %v4639_v23  ;;  %v4818_v23 = vld [vmem:[#allocation3 + $0x180] sm:$0xff]  ;;  %265 = vst [vmem:[#allocation2 + $0x291] sm:$0xff] %v4825_v33  ;;  %266 = vst [vmem:[#allocation2 + $0x2a1] sm:$0xff] %v4832_v4 }
  0xbc   :  { %1254 = vmatmul.mubr.f32.gmra.mrb[30].mxu1 %v598_v21  ;;  %3814 = vmatprep.subr.bf16.mxu1 %v4325_v0  ;;  %264 = vst [vmem:[#allocation2 + $0x289] sm:$0xff] %v4818_v23  ;;  %v1070_v21 = vld [vmem:[#allocation9 + $0x320] sm:$0xff] }
  0xbd   :  { %1639 = vmatmul.mubr.f32.gmra.mrb[30].mxu0 %v4805_v55  ;;  %1258 = vmatprep.mubr.f32.mxu1 %v4581_v30 }
  0xbe   :  { %3718 = vmatpush1.bf16.msra.mxu0 %v3717_v11  ;;  %1948 = vmatprep.mubr.f32.mxu0 %v4668_v1  ;;  %v3723_v1 = vpack.c.bf16 %v1069_v38, %v1068_v43  ;;  %v1071_v11 = vld [vmem:[#allocation9 + $0x328] sm:$0xff]  ;;  %v4839_v43 = vld [vmem:[#allocation3 + $0x198] sm:$0xff]  ;;  %v1076_v38 = vld [vmem:[#allocation9 + $0x350] sm:$0xff] }
  0xbf   :  { %3719 = vmatprep.subr.bf16.mxu0 %v4325_v0  ;;  %3830 = vmatpush1.bf16.msra.mxu1 %v4651_v41  ;;  %v3726_v41 = vpack.c.bf16 %v1071_v11, %v1070_v21  ;;  %267 = vst [vmem:[#allocation2 + $0x2a9] sm:$0xff] %v4839_v43  ;;  %v4846_v21 = vld [vmem:[#allocation3 + $0x1a0] sm:$0xff] }
  0xc0   :  { %1259 = vmatmul.mubr.f32.gmra.mrb[32].mxu1 %v599_v13  ;;  %v1073_v13 = vld [vmem:[#allocation9 + $0x338] sm:$0xff]  ;;  %268 = vst [vmem:[#allocation2 + $0x2b9] sm:$0xff] %v4846_v21  ;;  %v1078_v11 = vld [vmem:[#allocation9 + $0x360] sm:$0xff] }
  0xc1   :  { %1949 = vmatmul.mubr.f32.vlgmr.msra.gmra.mrb[0].mxu0 %v4511_v42  ;;  %1263 = vmatprep.mubr.f32.mxu1 %v4588_v35  ;;  %v411_v42 = vld [vmem:[#allocation2 + $0xd8] sm:$0xff] }
  0xc2   :  { %3721 = vmatpush1.bf16.msra.mxu0 %v3720_v2  ;;  %1953 = vmatprep.mubr.f32.mxu0 %v4679_v60  ;;  %v1072_v60 = vld [vmem:[#allocation9 + $0x330] sm:$0xff]  ;;  %v1075_v2 = vld [vmem:[#allocation9 + $0x348] sm:$0xff] }
  0xc3   :  { %3722 = vmatprep.subr.bf16.mxu0 %v4325_v0 }
  0xc4   :  { %1264 = vmatmul.mubr.f32.gmra.mrb[34].mxu1 %v600_v19  ;;  %v1074_v19 = vld [vmem:[#allocation9 + $0x340] sm:$0xff] }
  0xc5   :  { %1954 = vmatmul.mubr.f32.gmra.mrb[2].mxu0 %v4514_v44  ;;  %1268 = vmatprep.mubr.f32.mxu1 %v4592_v39  ;;  %v412_v44 = vld [vmem:[#allocation2 + $0xe0] sm:$0xff] }
  0xc6   :  { %1958 = vmatprep.mubr.f32.mxu0 %v4689_v27  ;;  %3724 = vmatpush1.bf16.msra.mxu0 %v3723_v1  ;;  %v3729_v27 = vpack.c.bf16 %v1073_v13, %v1072_v60  ;;  %v1077_v1 = vld [vmem:[#allocation9 + $0x358] sm:$0xff]  ;;  %v1080_v60 = vld [vmem:[#allocation9 + $0x370] sm:$0xff] }
  0xc7   :  { %3725 = vmatprep.subr.bf16.mxu0 %v4325_v0  ;;  %v1081_v13 = vld [vmem:[#allocation9 + $0x378] sm:$0xff] }
  0xc8   :  { %1269 = vmatmul.mubr.f32.gmra.mrb[36].mxu1 %v411_v42  ;;  %v1079_v42 = vld [vmem:[#allocation9 + $0x368] sm:$0xff] }
  0xc9   :  { %1959 = vmatmul.mubr.f32.gmra.mrb[4].mxu0 %v4521_v48  ;;  %1273 = vmatprep.mubr.f32.mxu1 %v4594_v40  ;;  %v413_v48 = vld [vmem:[#allocation2 + $0xf0] sm:$0xff] }
  0xca   :  { %1963 = vmatprep.mubr.f32.mxu0 %v4699_v50  ;;  %3727 = vmatpush1.bf16.msra.mxu0 %v3726_v41  ;;  %v3732_v50 = vpack.c.bf16 %v1075_v2, %v1074_v19  ;;  %v4853_v41 = vld [vmem:[#allocation3 + $0x1a8] sm:$0xff]  ;;  %v4867_v2 = vld [vmem:[#allocation3 + $0x1b8] sm:$0xff] }
  0xcb   :  { %3728 = vmatprep.subr.bf16.mxu0 %v4325_v0  ;;  %269 = vst [vmem:[#allocation2 + $0x2c1] sm:$0xff] %v4853_v41  ;;  %v1083_v19 = vld [vmem:[#allocation9 + $0x388] sm:$0xff]  ;;  %271 = vst [vmem:[#allocation2 + $0x2d9] sm:$0xff] %v4867_v2 }
  0xcc   :  { %1274 = vmatmul.mubr.f32.gmra.mrb[38].mxu1 %v412_v44  ;;  %v4860_v44 = vld [vmem:[#allocation3 + $0x1b0] sm:$0xff] }
  0xcd   :  { %1964 = vmatmul.mubr.f32.gmra.mrb[6].mxu0 %v4525_v51  ;;  %1278 = vmatprep.mubr.f32.mxu1 %v4602_v49  ;;  %v414_v51 = vld [vmem:[#allocation2 + $0xf8] sm:$0xff]  ;;  %270 = vst [vmem:[#allocation2 + $0x2d1] sm:$0xff] %v4860_v44 }
  0xce   :  { %1968 = vmatprep.mubr.f32.mxu0 %v4709_v61  ;;  %3730 = vmatpush1.bf16.msra.mxu0 %v3729_v27  ;;  %v3735_v61 = vpack.c.bf16 %v1077_v1, %v1076_v38  ;;  %v1082_v27 = vld [vmem:[#allocation9 + $0x380] sm:$0xff] }
  0xcf   :  { %3731 = vmatprep.subr.bf16.mxu0 %v4325_v0  ;;  %v4874_v38 = vld [vmem:[#allocation3 + $0x1c0] sm:$0xff] }
  0xd0   :  { %1279 = vmatmul.mubr.f32.gmra.mrb[40].mxu1 %v413_v48  ;;  %v1084_v48 = vld [vmem:[#allocation9 + $0x390] sm:$0xff]  ;;  %272 = vst [vmem:[#allocation2 + $0x2e9] sm:$0xff] %v4874_v38  ;;  %v1086_v1 = vld [vmem:[#allocation9 + $0x3a0] sm:$0xff] }
  0xd1   :  { %1969 = vmatmul.mubr.f32.gmra.mrb[8].mxu0 %v4528_v52  ;;  %1283 = vmatprep.mubr.f32.mxu1 %v4606_v56  ;;  %v415_v52 = vld [vmem:[#allocation2 + $0x108] sm:$0xff] }
  0xd2   :  { %1973 = vmatprep.mubr.f32.mxu0 %v4719_v53  ;;  %3733 = vmatpush1.bf16.msra.mxu0 %v3732_v50  ;;  %v3738_v53 = vpack.c.bf16 %v1079_v42, %v1078_v11  ;;  %v1085_v50 = vld [vmem:[#allocation9 + $0x398] sm:$0xff]  ;;  %v4888_v11 = vld [vmem:[#allocation3 + $0x1d0] sm:$0xff]  ;;  %v420_v42 = vld [vmem:[#allocation2 + $0x140] sm:$0xff] }
  0xd3   :  { %3734 = vmatprep.subr.bf16.mxu0 %v4325_v0  ;;  %274 = vst [vmem:[#allocation2 + $0x301] sm:$0xff] %v4888_v11 }
  0xd4   :  { %1284 = vmatmul.mubr.f32.gmra.mrb[42].mxu1 %v414_v51  ;;  %v1087_v51 = vld [vmem:[#allocation9 + $0x3a8] sm:$0xff] }
  0xd5   :  { %1974 = vmatmul.mubr.f32.gmra.mrb[10].mxu0 %v4531_v54  ;;  %1288 = vmatprep.mubr.f32.mxu1 %v4608_v57  ;;  %v416_v54 = vld [vmem:[#allocation2 + $0x110] sm:$0xff] }
  0xd6   :  { %1978 = vmatprep.mubr.f32.mxu0 %v4729_v34  ;;  %3736 = vmatpush1.bf16.msra.mxu0 %v3735_v61  ;;  %v3741_v34 = vpack.c.bf16 %v1081_v13, %v1080_v60  ;;  %v4881_v61 = vld [vmem:[#allocation3 + $0x1c8] sm:$0xff]  ;;  %v426_v13 = vld [vmem:[#allocation2 + $0x1b8] sm:$0xff] }
  0xd7   :  { %3737 = vmatprep.subr.bf16.mxu0 %v4325_v0  ;;  %273 = vst [vmem:[#allocation2 + $0x2f1] sm:$0xff] %v4881_v61  ;;  %v4925_v60 = vld [vmem:[#allocation2 + $0xe2] sm:$0xff] }
  0xd8   :  { %1289 = vmatmul.mubr.f32.gmra.mrb[44].mxu1 %v415_v52  ;;  %v1089_v52 = vld [vmem:[#allocation9 + $0x3b8] sm:$0xff] }
  0xd9   :  { %1979 = vmatmul.mubr.f32.gmra.mrb[12].mxu0 %v4538_v58  ;;  %1293 = vmatprep.mubr.f32.mxu1 %v4612_v63  ;;  %v417_v58 = vld [vmem:[#allocation2 + $0x120] sm:$0xff] }
  0xda   :  { %1983 = vmatprep.mubr.f32.mxu0 %v4739_v25  ;;  %3739 = vmatpush1.bf16.msra.mxu0 %v3738_v53  ;;  %v3744_v25 = vpack.c.bf16 %v1083_v19, %v1082_v27  ;;  %v425_v53 = vld [vmem:[#allocation2 + $0x1b0] sm:$0xff] }
  0xdb   :  { %3740 = vmatprep.subr.bf16.mxu0 %v4325_v0  ;;  %v4931_v27 = vld [vmem:[#allocation2 + $0xf2] sm:$0xff] }
  0xdc   :  { %1294 = vmatmul.mubr.f32.gmra.mrb[46].mxu1 %v416_v54  ;;  %v1090_v54 = vld [vmem:[#allocation9 + $0x3c0] sm:$0xff] }
  0xdd   :  { %1984 = vmatmul.mubr.f32.gmra.mrb[14].mxu0 %v4545_v62  ;;  %1298 = vmatprep.mubr.f32.mxu1 %v4614_v3  ;;  %v418_v62 = vld [vmem:[#allocation2 + $0x128] sm:$0xff] }
  0xde   :  { %1988 = vmatprep.mubr.f32.mxu0 %v4749_v31  ;;  %3742 = vmatpush1.bf16.msra.mxu0 %v3741_v34  ;;  %v3747_v31 = vpack.c.bf16 %v1085_v50, %v1084_v48  ;;  %v4943_v48 = vld [vmem:[#allocation2 + $0x10a] sm:$0xff] }
  0xdf   :  { %3743 = vmatprep.subr.bf16.mxu0 %v4325_v0  ;;  %v1092_v50 = vld [vmem:[#allocation9 + $0x3d0] sm:$0xff] }
  0xe0   :  { %1299 = vmatmul.mubr.f32.gmra.mrb[48].mxu1 %v417_v58  ;;  %v4937_v58 = vld [vmem:[#allocation2 + $0xfa] sm:$0xff] }
  0xe1   :  { %1989 = vmatmul.mubr.f32.gmra.mrb[16].mxu0 %v4552_v5  ;;  %1303 = vmatprep.mubr.f32.mxu1 %v4623_v12  ;;  %v419_v5 = vld [vmem:[#allocation2 + $0x138] sm:$0xff] }
  0xe2   :  { %1993 = vmatprep.mubr.f32.mxu0 %v4759_v37  ;;  %3745 = vmatpush1.bf16.msra.mxu0 %v3744_v25  ;;  %v3750_v37 = vpack.c.bf16 %v1087_v51, %v1086_v1  ;;  %v428_v25 = vld [vmem:[#allocation2 + $0x1d0] sm:$0xff]  ;;  %v4953_v1 = vld [vmem:[#allocation2 + $0x122] sm:$0xff]  ;;  %v431_v51 = vld [vmem:[#allocation2 + $0x1f8] sm:$0xff] }
  0xe3   :  { %3746 = vmatprep.subr.bf16.mxu0 %v4325_v0 }
  0xe4   :  { %1304 = vmatmul.mubr.f32.gmra.mrb[50].mxu1 %v418_v62  ;;  %v1093_v62 = vld [vmem:[#allocation9 + $0x3d8] sm:$0xff] }
  0xe5   :  { %1994 = vmatmul.mubr.f32.gmra.mrb[18].mxu0 %v4556_v8  ;;  %1308 = vmatprep.mubr.f32.mxu1 %v4625_v14  ;;  %v4895_v8 = vld [vmem:[#allocation3 + $0x1d8] sm:$0xff] }
  0xe6   :  { %1998 = vmatprep.mubr.f32.mxu0 %v4769_v45  ;;  %3748 = vmatpush1.bf16.msra.mxu0 %v3747_v31  ;;  %v421_v45 = vld [vmem:[#allocation2 + $0x150] sm:$0xff]  ;;  %275 = vst [vmem:[#allocation2 + $0x309] sm:$0xff] %v4895_v8  ;;  %v3759_v31 = vpack.c.bf16 %v1093_v62, %v1092_v50  ;;  %v438_v50 = vld [vmem:[#allocation2 + $0x248] sm:$0xff] }
  0xe7   :  { %3749 = vmatprep.subr.bf16.mxu0 %v4325_v0  ;;  %v1096_v62 = vld [vmem:[#allocation9 + $0x3f0] sm:$0xff] }
  0xe8   :  { %1309 = vmatmul.mubr.f32.gmra.mrb[52].mxu1 %v419_v5  ;;  %v5831_v5 = vld [vmem:[#allocation26_spill] sm:$0xff] }
  0xe9   :  { %1999 = vmatmul.mubr.f32.gmra.mrb[20].mxu0 %v4564_v17  ;;  %1313 = vmatprep.mubr.f32.mxu1 %v4627_v15  ;;  %v4901_v17 = vld [vmem:[#allocation3 + $0x1e0] sm:$0xff]  ;;  %v422_v15 = vld [vmem:[#allocation2 + $0x158] sm:$0xff] }
  0xea   :  { %2003 = vmatprep.mubr.f32.mxu0 %v4785_v32  ;;  %3751 = vmatpush1.bf16.msra.mxu0 %v3750_v37  ;;  %v1088_v32 = vld [vmem:[#allocation9 + $0x3b0] sm:$0xff]  ;;  %276 = vst [vmem:[#allocation2 + $0x319] sm:$0xff] %v4901_v17  ;;  %v432_v37 = vld [vmem:[#allocation2 + $0x200] sm:$0xff] }
  0xeb   :  { %3752 = vmatprep.subr.bf16.mxu0 %v4325_v0 }
  0xec   :  { %1314 = vmatmul.mubr.f32.gmra.mrb[54].mxu1 %v420_v42  ;;  %v4964_v42 = vld [vmem:[#allocation2 + $0x13a] sm:$0xff] }
  0xed   :  { %2004 = vmatmul.mubr.f32.gmra.mrb[22].mxu0 %v4567_v20  ;;  %1318 = vmatprep.mubr.f32.mxu1 %v4632_v16  ;;  %v3753_v20 = vpack.c.bf16 %v1089_v52, %v1088_v32  ;;  %v4907_v16 = vld [vmem:[#allocation2 + $0xc2] sm:$0xff]  ;;  %v434_v32 = vld [vmem:[#allocation2 + $0x218] sm:$0xff] }
  0xee   :  { %2008 = vmatprep.mubr.f32.mxu0 %v4795_v7  ;;  %v4909_v7 = vld [vmem:[#allocation3 + $0x1e8] sm:$0xff]  ;;  %v1094_v52 = vld [vmem:[#allocation9 + $0x3e0] sm:$0xff] }
  0xef   :  { %3754 = vmatpush1.bf16.msra.mxu0 %v3753_v20  ;;  %277 = vst [vmem:[#allocation2 + $0x321] sm:$0xff] %v4909_v7  ;;  %v1095_v20 = vld [vmem:[#allocation9 + $0x3e8] sm:$0xff] }
  0xf0   :  { %1319 = vmatmul.mubr.f32.gmra.mrb[56].mxu1 %v421_v45  ;;  %3755 = vmatprep.subr.bf16.mxu0 %v4325_v0  ;;  %v433_v45 = vld [vmem:[#allocation2 + $0x210] sm:$0xff] }
  0xf1   :  { %2009 = vmatmul.mubr.f32.gmra.mrb[24].mxu0 %v4574_v24  ;;  %1323 = vmatprep.mubr.f32.mxu1 %v4635_v22  ;;  %v423_v24 = vld [vmem:[#allocation2 + $0x168] sm:$0xff] }
  0xf2   :  { %2013 = vmatprep.mubr.f32.mxu0 %v4805_v55  ;;  %v4916_v22 = vld [vmem:[#allocation2 + $0xca] sm:$0xff] }
  0xf3   :  { %v424_v55 = vld [vmem:[#allocation2 + $0x170] sm:$0xff] }
  0xf4   :  { %1324 = vmatmul.mubr.f32.gmra.mrb[58].mxu1 %v422_v15  ;;  %v4969_v15 = vld [vmem:[#allocation2 + $0x142] sm:$0xff] }
  0xf5   :  { %2014 = vmatmul.mubr.f32.gmra.mrb[26].mxu0 %v4578_v28  ;;  %1328 = vmatprep.mubr.f32.mxu1 %v4642_v29  ;;  %v4921_v28 = vld [vmem:[#allocation2 + $0xda] sm:$0xff] }
  0xf6   :  { %2018 = vmatprep.mubr.f32.mxu0 %v4907_v16  ;;  %v4176_v29 = vld [vmem:[#allocation2 + $0x1] sm:$0xff] }
  0xf8   :  { %1329 = vmatmul.mubr.f32.gmra.mrb[60].mxu1 %v423_v24  ;;  %v3762_v24 = vpack.c.bf16 %v1095_v20, %v1094_v52  ;;  %v744_v52 = vld [vmem:[#allocation2 + $0x18a] sm:$0xff] }
  0xf9   :  { %2019 = vmatmul.mubr.f32.gmra.mrb[28].mxu0 %v4581_v30  ;;  %1333 = vmatprep.mubr.f32.mxu1 %v4646_v36  ;;  %v1098_v30 = vld [vmem:[#allocation9 + $0x400] sm:$0xff]  ;;  %v1099_v36 = vld [vmem:[#allocation9 + $0x408] sm:$0xff] }
  0xfa   :  { %2023 = vmatprep.mubr.f32.mxu0 %v4916_v22  ;;  %v4929_v34 = vpack.c.bf16 %v1099_v36, %v1098_v30  ;;  %v5835_v30 = vld [vmem:[#allocation30_spill] sm:$0xff]  ;;  %v5837_v20 = vld [vmem:[#allocation32_spill] sm:$0xff] }
  0xfb   :  { %v436_v36 = vld [vmem:[#allocation2 + $0x230] sm:$0xff] }
  0xfc   :  { %1334 = vmatmul.mubr.f32.gmra.mrb[62].mxu1 %v424_v55  ;;  %3768 = vmatprep.subr.bf16.mxu1 %v4929_v34  ;;  %v4974_v55 = vld [vmem:[#allocation2 + $0x152] sm:$0xff] }
  0xfd   :  { %2024 = vmatmul.mubr.f32.gmra.mrb[30].mxu0 %v4588_v35  ;;  %1338 = vmatprep.mubr.f32.mxu1 %v4176_v29  ;;  %v1091_v35 = vld [vmem:[#allocation9 + $0x3c8] sm:$0xff] }
  0xfe   :  { %2028 = vmatprep.mubr.f32.mxu0 %v4921_v28  ;;  %v3756_v19 = vpack.c.bf16 %v1091_v35, %v1090_v54  ;;  %v4983_v54 = vld [vmem:[#allocation2 + $0x16a] sm:$0xff]  ;;  %v4179_v35 = vld [vmem:[#allocation2 + $0x159] sm:$0xff] }
 0x100   :  { %1339 = vmatmul.mubr.f32.gmra.mrb[64].mxu1 %v425_v53  ;;  %3757 = vmatpush1.bf16.msra.mxu0 %v3756_v19  ;;  %v435_v53 = vld [vmem:[#allocation2 + $0x228] sm:$0xff]  ;;  %v5836_v19 = vld [vmem:[#allocation31_spill] sm:$0xff] }
 0x101   :  { %2029 = vmatmul.mubr.f32.gmra.mrb[32].mxu0 %v4592_v39  ;;  %1343 = vmatprep.mubr.f32.mxu1 %v4176_v29  ;;  %v427_v39 = vld [vmem:[#allocation2 + $0x1c8] sm:$0xff] }
 0x102   :  { %2033 = vmatprep.mubr.f32.mxu0 %v4925_v60  ;;  %3758 = vmatprep.subr.bf16.mxu0 %v4325_v0  ;;  %v5834_v29 = vld [vmem:[#allocation29_spill] sm:$0xff] }
 0x104   :  { %1344 = vmatmul.mubr.f32.gmra.mrb[66].mxu1 %v426_v13  ;;  %3760 = vmatpush1.bf16.msra.mxu0 %v3759_v31  ;;  %v4178_v13 = vld [vmem:[#allocation2 + $0x151] sm:$0xff] }
 0x105   :  { %2034 = vmatmul.mubr.f32.gmra.mrb[34].mxu0 %v4594_v40  ;;  %1348 = vmatprep.mubr.f32.mxu1 %v4657_v10  ;;  %v429_v40 = vld [vmem:[#allocation2 + $0x1e0] sm:$0xff]  ;;  %v4948_v10 = vld [vmem:[#allocation2 + $0x112] sm:$0xff] }
 0x106   :  { %2038 = vmatprep.mubr.f32.mxu0 %v4931_v27  ;;  %3761 = vmatprep.subr.bf16.mxu0 %v4325_v0  ;;  %v1097_v31 = vld [vmem:[#allocation9 + $0x3f8] sm:$0xff] }
 0x108   :  { %1349 = vmatmul.mubr.f32.gmra.mrb[68].mxu1 %v427_v39  ;;  %3763 = vmatpush1.bf16.msra.mxu0 %v3762_v24  ;;  %v437_v39 = vld [vmem:[#allocation2 + $0x240] sm:$0xff] }
 0x109   :  { %2039 = vmatmul.mubr.f32.gmra.mrb[36].mxu0 %v4602_v49  ;;  %1353 = vmatprep.mubr.f32.mxu1 %v4664_v46  ;;  %v5829_v49 = vld [vmem:[#allocation24_spill] sm:$0xff] }
 0x10a   :  { %2043 = vmatprep.mubr.f32.mxu0 %v4937_v58  ;;  %v430_v46 = vld [vmem:[#allocation2 + $0x1e8] sm:$0xff]  ;;  %3764 = vmatprep.subr.bf16.mxu0 %v4325_v0  ;;  %v4987_v0 = vld [vmem:[#allocation2 + $0x172] sm:$0xff]  ;;  %v5003_v24 = vld [vmem:[#allocation2 + $0x260] sm:$0xff] }
 0x10c   :  { %1354 = vmatmul.mubr.f32.gmra.mrb[70].mxu1 %v428_v25  ;;  %v4989_v25 = vld [vmem:[#allocation3 + $0x1f0] sm:$0xff] }
 0x10d   :  { %2044 = vmatmul.mubr.f32.gmra.mrb[38].mxu0 %v4606_v56  ;;  %1358 = vmatprep.mubr.f32.mxu1 %v4674_v59  ;;  %v5830_v56 = vld [vmem:[#allocation25_spill] sm:$0xff]  ;;  %278 = vst [vmem:[#allocation2 + $0x331] sm:$0xff] %v4989_v25 }
 0x10e   :  { %2048 = vmatprep.mubr.f32.mxu0 %v4943_v48 }
 0x110   :  { %1359 = vmatmul.mubr.f32.gmra.mrb[72].mxu1 %v429_v40  ;;  %v4991_v40 = vld [vmem:[#allocation3 + $0x1f8] sm:$0xff] }
 0x111   :  { %2049 = vmatmul.mubr.f32.gmra.mrb[40].mxu0 %v4608_v57  ;;  %1363 = vmatprep.mubr.f32.mxu1 %v5829_v49  ;;  %v4959_v57 = vld [vmem:[#allocation2 + $0x12a] sm:$0xff]  ;;  %279 = vst [vmem:[#allocation2 + $0x339] sm:$0xff] %v4991_v40 }
 0x112   :  { %2053 = vmatprep.mubr.f32.mxu0 %v4948_v10 }
 0x114   :  { %1364 = vmatmul.mubr.f32.gmra.mrb[74].mxu1 %v430_v46  ;;  %v4180_v46 = vld [vmem:[#allocation2 + $0x169] sm:$0xff] }
 0x115   :  { %2054 = vmatmul.mubr.f32.gmra.mrb[42].mxu0 %v4612_v63  ;;  %1368 = vmatprep.mubr.f32.mxu1 %v5830_v56  ;;  %v5832_v63 = vld [vmem:[#allocation27_spill] sm:$0xff] }
 0x116   :  { %2058 = vmatprep.mubr.f32.mxu0 %v4953_v1 }
 0x118   :  { %1369 = vmatmul.mubr.f32.gmra.mrb[76].mxu1 %v431_v51  ;;  %v743_v51 = vld [vmem:[#allocation2 + $0x182] sm:$0xff] }
 0x119   :  { %2059 = vmatmul.mubr.f32.gmra.mrb[44].mxu0 %v4614_v3  ;;  %1373 = vmatprep.mubr.f32.mxu1 %v5831_v5  ;;  %v5833_v3 = vld [vmem:[#allocation28_spill] sm:$0xff] }
 0x11a   :  { %2063 = vmatprep.mubr.f32.mxu0 %v4959_v57 }
 0x11c   :  { %1374 = vmatmul.mubr.f32.gmra.mrb[78].mxu1 %v432_v37  ;;  %v3765_v37 = vpack.c.bf16 %v1097_v31, %v1096_v62  ;;  %v5024_v62 = vld [vmem:[#allocation2 + $0x288] sm:$0xff] }
 0x11d   :  { %2064 = vmatmul.mubr.f32.gmra.mrb[46].mxu0 %v4623_v12  ;;  %1378 = vmatprep.mubr.f32.mxu1 %v5832_v63  ;;  %v4177_v12 = vld [vmem:[#allocation2 + $0x141] sm:$0xff]  ;;  %v5027_v31 = vld [vmem:[#allocation2 + $0x1ea] sm:$0xff] }
 0x11e   :  { %2068 = vmatprep.mubr.f32.mxu0 %v4964_v42  ;;  %3766 = vmatpush1.bf16.msra.mxu0 %v3765_v37  ;;  %v5035_v37 = vld [vmem:[#allocation2 + $0x1fa] sm:$0xff] }
 0x120   :  { %1379 = vmatmul.mubr.f32.gmra.mrb[80].mxu1 %v433_v45  ;;  %v4181_v45 = vld [vmem:[#allocation2 + $0x171] sm:$0xff] }
 0x121   :  { %2069 = vmatmul.mubr.f32.gmra.mrb[48].mxu0 %v4625_v14  ;;  %1383 = vmatprep.mubr.f32.mxu1 %v5833_v3  ;;  %v4979_v14 = vld [vmem:[#allocation2 + $0x15a] sm:$0xff] }
 0x122   :  { %2073 = vmatprep.mubr.f32.mxu0 %v4969_v15 }
 0x124   :  { %1384 = vmatmul.mubr.f32.gmra.mrb[82].mxu1 %v434_v32  ;;  %v4998_v32 = vld [vmem:[#allocation2 + $0x258] sm:$0xff] }
 0x125   :  { %2074 = vmatmul.mubr.f32.gmra.mrb[50].mxu0 %v4177_v12  ;;  %1388 = vmatprep.mubr.f32.mxu1 %v5834_v29  ;;  %v5005_v12 = vld [vmem:[#allocation2 + $0x1ca] sm:$0xff] }
 0x126   :  { %2078 = vmatprep.mubr.f32.mxu0 %v4974_v55 }
 0x128   :  { %1389 = vmatmul.mubr.f32.gmra.mrb[84].mxu1 %v435_v53  ;;  %v5838_v53 = vld [vmem:[#allocation33_spill] sm:$0xff] }
 0x129   :  { %2079 = vmatmul.mubr.f32.gmra.mrb[52].mxu0 %v4178_v13  ;;  %1393 = vmatprep.mubr.f32.mxu1 %v5835_v30  ;;  %v5010_v13 = vld [vmem:[#allocation2 + $0x270] sm:$0xff] }
 0x12a   :  { %2083 = vmatprep.mubr.f32.mxu0 %v4979_v14 }
 0x12c   :  { %1394 = vmatmul.mubr.f32.gmra.mrb[86].mxu1 %v436_v36  ;;  %v5013_v36 = vld [vmem:[#allocation2 + $0x1d2] sm:$0xff] }
 0x12d   :  { %2084 = vmatmul.mubr.f32.gmra.mrb[54].mxu0 %v4179_v35  ;;  %1398 = vmatprep.mubr.f32.mxu1 %v5836_v19  ;;  %v4182_v35 = vld [vmem:[#allocation2 + $0x1c9] sm:$0xff] }
 0x12e   :  { %2088 = vmatprep.mubr.f32.mxu0 %v4983_v54 }
 0x130   :  { %1399 = vmatmul.mubr.f32.gmra.mrb[88].mxu1 %v437_v39  ;;  %v5017_v39 = vld [vmem:[#allocation2 + $0x278] sm:$0xff] }
 0x131   :  { %2089 = vmatmul.mubr.f32.gmra.mrb[56].mxu0 %v4180_v46  ;;  %1403 = vmatprep.mubr.f32.mxu1 %v4764_v18  ;;  %v5020_v46 = vld [vmem:[#allocation2 + $0x1e2] sm:$0xff] }
 0x132   :  { %2093 = vmatprep.mubr.f32.mxu0 %v4987_v0 }
 0x134   :  { %1404 = vmatmul.mubr.f32.gmra.mrb[90].mxu1 %v438_v50  ;;  %v4183_v50 = vld [vmem:[#allocation2 + $0x1d1] sm:$0xff] }
 0x135   :  { %2094 = vmatmul.mubr.f32.gmra.mrb[58].mxu0 %v4181_v45  ;;  %1408 = vmatprep.mubr.f32.mxu1 %v4777_v26  ;;  %v5040_v45 = vld [vmem:[#allocation2 + $0x2a0] sm:$0xff] }
 0x136   :  { %2098 = vmatprep.mubr.f32.mxu0 %v743_v51  ;;  %v5032_v51 = vld [vmem:[#allocation2 + $0x290] sm:$0xff]  ;;  %5840 = vst [vmem:[#allocation25_spill] sm:$0xff] %v5040_v45 }
 0x137   :  { %5839 = vst [vmem:[#allocation24_spill] sm:$0xff] %v5032_v51 }
 0x138   :  { %1409 = vmatmul.mubr.f32.gmra.mrb[92].mxu1 %v4998_v32 }
 0x139   :  { %2099 = vmatmul.mubr.f32.gmra.mrb[60].mxu0 %v5837_v20  ;;  %1413 = vmatprep.mubr.f32.mxu1 %v4789_v9 }
 0x13a   :  { %2103 = vmatprep.mubr.f32.mxu0 %v744_v52  ;;  %v5043_v52 = vld [vmem:[#allocation2 + $0x202] sm:$0xff] }
 0x13c   :  { %1414 = vmatmul.mubr.f32.gmra.mrb[94].mxu1 %v5003_v24 }
 0x13d   :  { %2104 = vmatmul.mubr.f32.gmra.mrb[62].mxu0 %v5838_v53  ;;  %1418 = vmatprep.mubr.f32.mxu1 %v4799_v47 }
 0x13e   :  { %2108 = vmatprep.mubr.f32.mxu0 %v5005_v12 }
 0x140   :  { %1419 = vmatmul.mubr.f32.gmra.mrb[96].mxu1 %v5010_v13 }
 0x141   :  { %2109 = vmatmul.mubr.f32.gmra.mrb[64].mxu0 %v4182_v35  ;;  %1423 = vmatprep.mubr.f32.mxu1 %v4809_v6  ;;  %v5058_v35 = vld [vmem:[#allocation2 + $0x2b8] sm:$0xff] }
 0x142   :  { %2113 = vmatprep.mubr.f32.mxu0 %v5013_v36  ;;  %5843 = vst [vmem:[#allocation28_spill] sm:$0xff] %v5058_v35 }
 0x144   :  { %1424 = vmatmul.mubr.f32.gmra.mrb[98].mxu1 %v5017_v39 }
 0x145   :  { %2114 = vmatmul.mubr.f32.gmra.mrb[66].mxu0 %v4183_v50  ;;  %1428 = vmatprep.mubr.f32.mxu1 %v4818_v23  ;;  %v5063_v50 = vld [vmem:[#allocation2 + $0x21a] sm:$0xff] }
 0x146   :  { %2118 = vmatprep.mubr.f32.mxu0 %v5020_v46 }
 0x148   :  { %1429 = vmatmul.mubr.f32.gmra.mrb[100].mxu1 %v5024_v62 }
 0x149   :  { %2119 = vmatmul.mubr.f32.gmra.mrb[68].mxu0 %v4674_v59  ;;  %1433 = vmatprep.mubr.f32.mxu1 %v4825_v33  ;;  %v5048_v59 = vld [vmem:[#allocation2 + $0x2a8] sm:$0xff] }
 0x14a   :  { %2123 = vmatprep.mubr.f32.mxu0 %v5027_v31  ;;  %5841 = vst [vmem:[#allocation26_spill] sm:$0xff] %v5048_v59 }
 0x14c   :  { %1434 = vmatmul.mubr.f32.gmra.mrb[102].mxu1 %v5032_v51  ;;  %v1101_v51 = vld [vmem:[#allocation9 + $0x418] sm:$0xff] }
 0x14d   :  { %2124 = vmatmul.mubr.f32.gmra.mrb[70].mxu0 %v5829_v49  ;;  %1438 = vmatprep.mubr.f32.mxu1 %v4832_v4  ;;  %v5053_v49 = vld [vmem:[#allocation2 + $0x212] sm:$0xff] }
 0x14e   :  { %2128 = vmatprep.mubr.f32.mxu0 %v5035_v37 }
 0x150   :  { %1439 = vmatmul.mubr.f32.gmra.mrb[104].mxu1 %v5040_v45 }
 0x151   :  { %2129 = vmatmul.mubr.f32.gmra.mrb[72].mxu0 %v5830_v56  ;;  %1443 = vmatprep.mubr.f32.mxu1 %v4839_v43 }
 0x152   :  { %2133 = vmatprep.mubr.f32.mxu0 %v5043_v52 }
 0x153   :  { %v5051_v20 = vpop.f32.mrb[0].mxu1 }
 0x154   :  { %5842 = vst [vmem:[#allocation27_spill] sm:$0xff] %v5051_v20  ;;  %v1182_v53 = vpop.f32.mrb[1].mxu1  ;;  %1444 = vmatmul.mubr.f32.gmra.mrb[106].mxu1 %v5048_v59  ;;  %v5073_v20 = vld [vmem:[#allocation2 + $0x22a] sm:$0xff] }
 0x155   :  { %2134 = vmatmul.mubr.f32.gmra.mrb[74].mxu0 %v5831_v5  ;;  %1448 = vmatprep.mubr.f32.mxu1 %v4846_v21  ;;  %v5068_v53 = vld [vmem:[#allocation2 + $0x2c0] sm:$0xff] }
 0x156   :  { %2138 = vmatprep.mubr.f32.mxu0 %v5053_v49  ;;  %5845 = vst [vmem:[#allocation30_spill] sm:$0xff] %v5068_v53 }
 0x157   :  { %v5061_v56 = vpop.f32.mrb[2].mxu1 }
 0x158   :  { %5844 = vst [vmem:[#allocation29_spill] sm:$0xff] %v5061_v56  ;;  %v1187_v45 = vpop.f32.mrb[3].mxu1  ;;  %1449 = vmatmul.mubr.f32.gmra.mrb[108].mxu1 %v5058_v35  ;;  %v5083_v56 = vld [vmem:[#allocation2 + $0x232] sm:$0xff] }
 0x159   :  { %2139 = vmatmul.mubr.f32.gmra.mrb[76].mxu0 %v5832_v63  ;;  %1453 = vmatprep.mubr.f32.mxu1 %v4853_v41  ;;  %v5078_v45 = vld [vmem:[#allocation2 + $0x2d0] sm:$0xff] }
 0x15a   :  { %2143 = vmatprep.mubr.f32.mxu0 %v5063_v50  ;;  %5847 = vst [vmem:[#allocation32_spill] sm:$0xff] %v5078_v45 }
 0x15b   :  { %v5071_v5 = vpop.f32.mrb[4].mxu1 }
 0x15c   :  { %5846 = vst [vmem:[#allocation31_spill] sm:$0xff] %v5071_v5  ;;  %v1192_v59 = vpop.f32.mrb[5].mxu1  ;;  %1454 = vmatmul.mubr.f32.gmra.mrb[110].mxu1 %v5068_v53  ;;  %v5093_v5 = vld [vmem:[#allocation2 + $0x242] sm:$0xff] }
 0x15d   :  { %2144 = vmatmul.mubr.f32.gmra.mrb[78].mxu0 %v5833_v3  ;;  %1458 = vmatprep.mubr.f32.mxu1 %v4860_v44  ;;  %v5088_v59 = vld [vmem:[#allocation2 + $0x2d8] sm:$0xff] }
 0x15e   :  { %2148 = vmatprep.mubr.f32.mxu0 %v5073_v20  ;;  %5849 = vst [vmem:[#allocation34_spill] sm:$0xff] %v5088_v59 }
 0x15f   :  { %v5081_v63 = vpop.f32.mrb[6].mxu1 }
 0x160   :  { %5848 = vst [vmem:[#allocation33_spill] sm:$0xff] %v5081_v63  ;;  %v1197_v35 = vpop.f32.mrb[7].mxu1  ;;  %1459 = vmatmul.mubr.f32.gmra.mrb[112].mxu1 %v5078_v45  ;;  %v5103_v63 = vld [vmem:[#allocation2 + $0x24a] sm:$0xff] }
 0x161   :  { %2149 = vmatmul.mubr.f32.gmra.mrb[80].mxu0 %v5834_v29  ;;  %1463 = vmatprep.mubr.f32.mxu1 %v4867_v2  ;;  %v5098_v35 = vld [vmem:[#allocation2 + $0x2e8] sm:$0xff] }
 0x162   :  { %2153 = vmatprep.mubr.f32.mxu0 %v5083_v56  ;;  %5851 = vst [vmem:[#allocation36_spill] sm:$0xff] %v5098_v35 }
 0x163   :  { %v5091_v3 = vpop.f32.mrb[8].mxu1 }
 0x164   :  { %5850 = vst [vmem:[#allocation35_spill] sm:$0xff] %v5091_v3  ;;  %v1202_v53 = vpop.f32.mrb[9].mxu1  ;;  %1464 = vmatmul.mubr.f32.gmra.mrb[114].mxu1 %v5088_v59  ;;  %v5113_v3 = vld [vmem:[#allocation2 + $0x25a] sm:$0xff] }
 0x165   :  { %2154 = vmatmul.mubr.f32.gmra.mrb[82].mxu0 %v5835_v30  ;;  %1468 = vmatprep.mubr.f32.mxu1 %v4874_v38  ;;  %v5108_v53 = vld [vmem:[#allocation2 + $0x2f0] sm:$0xff] }
 0x166   :  { %2158 = vmatprep.mubr.f32.mxu0 %v5093_v5  ;;  %5853 = vst [vmem:[#allocation38_spill] sm:$0xff] %v5108_v53 }
 0x167   :  { %v5101_v29 = vpop.f32.mrb[10].mxu1 }
 0x168   :  { %5852 = vst [vmem:[#allocation37_spill] sm:$0xff] %v5101_v29  ;;  %v1207_v45 = vpop.f32.mrb[11].mxu1  ;;  %1469 = vmatmul.mubr.f32.gmra.mrb[116].mxu1 %v5098_v35  ;;  %v5123_v29 = vld [vmem:[#allocation2 + $0x262] sm:$0xff] }
 0x169   :  { %2159 = vmatmul.mubr.f32.gmra.mrb[84].mxu0 %v5836_v19  ;;  %1473 = vmatprep.mubr.f32.mxu1 %v4881_v61  ;;  %v5118_v45 = vld [vmem:[#allocation2 + $0x300] sm:$0xff] }
 0x16a   :  { %2163 = vmatprep.mubr.f32.mxu0 %v5103_v63  ;;  %5855 = vst [vmem:[#allocation40_spill] sm:$0xff] %v5118_v45 }
 0x16b   :  { %v5111_v30 = vpop.f32.mrb[12].mxu1 }
 0x16c   :  { %5854 = vst [vmem:[#allocation39_spill] sm:$0xff] %v5111_v30  ;;  %v1212_v59 = vpop.f32.mrb[13].mxu1  ;;  %1474 = vmatmul.mubr.f32.gmra.mrb[118].mxu1 %v5108_v53  ;;  %v5133_v30 = vld [vmem:[#allocation2 + $0x272] sm:$0xff] }
 0x16d   :  { %2164 = vmatmul.mubr.f32.gmra.mrb[86].mxu0 %v4764_v18  ;;  %1478 = vmatprep.mubr.f32.mxu1 %v4888_v11  ;;  %v5128_v59 = vld [vmem:[#allocation2 + $0x308] sm:$0xff]  ;;  %5859 = vst [vmem:[#allocation44_spill] sm:$0xff] %v5133_v30 }
 0x16e   :  { %2168 = vmatprep.mubr.f32.mxu0 %v5113_v3  ;;  %5857 = vst [vmem:[#allocation42_spill] sm:$0xff] %v5128_v59 }
 0x16f   :  { %v5121_v19 = vpop.f32.mrb[14].mxu1 }
 0x170   :  { %5856 = vst [vmem:[#allocation41_spill] sm:$0xff] %v5121_v19  ;;  %v1217_v35 = vpop.f32.mrb[15].mxu1  ;;  %1479 = vmatmul.mubr.f32.gmra.mrb[120].mxu1 %v5118_v45  ;;  %v5143_v19 = vld [vmem:[#allocation2 + $0x27a] sm:$0xff] }
 0x171   :  { %2169 = vmatmul.mubr.f32.gmra.mrb[88].mxu0 %v4777_v26  ;;  %1483 = vmatprep.mubr.f32.mxu1 %v4895_v8  ;;  %v5138_v35 = vld [vmem:[#allocation2 + $0x318] sm:$0xff]  ;;  %5862 = vst [vmem:[#allocation47_spill] sm:$0xff] %v5143_v19 }
 0x172   :  { %2173 = vmatprep.mubr.f32.mxu0 %v5123_v29  ;;  %5860 = vst [vmem:[#allocation45_spill] sm:$0xff] %v5138_v35 }
 0x173   :  { %v5131_v18 = vpop.f32.mrb[16].mxu1 }
 0x174   :  { %5858 = vst [vmem:[#allocation43_spill] sm:$0xff] %v5131_v18  ;;  %v1222_v53 = vpop.f32.mrb[17].mxu1  ;;  %1484 = vmatmul.mubr.f32.gmra.mrb[122].mxu1 %v5128_v59  ;;  %v5155_v59 = vld [vmem:[#allocation2 + $0x28a] sm:$0xff] }
 0x175   :  { %2174 = vmatmul.mubr.f32.gmra.mrb[90].mxu0 %v4789_v9  ;;  %1488 = vmatprep.mubr.f32.mxu1 %v4901_v17  ;;  %v5148_v53 = vld [vmem:[#allocation2 + $0x320] sm:$0xff]  ;;  %v5151_v9 = vld [vmem:[#allocation2 + $0xd8] sm:$0xff]  ;;  %5865 = vst [vmem:[#allocation50_spill] sm:$0xff] %v5155_v59 }
 0x176   :  { %2178 = vmatprep.mubr.f32.mxu0 %v5133_v30  ;;  %5863 = vst [vmem:[#allocation48_spill] sm:$0xff] %v5148_v53 }
 0x177   :  { %v5141_v26 = vpop.f32.mrb[18].mxu1 }
 0x178   :  { %5861 = vst [vmem:[#allocation46_spill] sm:$0xff] %v5141_v26  ;;  %v1227_v45 = vpop.f32.mrb[19].mxu1  ;;  %1489 = vmatmul.mubr.f32.gmra.mrb[124].mxu1 %v5138_v35  ;;  %v5163_v35 = vld [vmem:[#allocation2 + $0xe0] sm:$0xff] }
 0x179   :  { %2179 = vmatmul.mubr.f32.gmra.mrb[92].mxu0 %v4799_v47  ;;  %1493 = vmatprep.mubr.f32.mxu1 %v4909_v7  ;;  %v1100_v45 = vld [vmem:[#allocation9 + $0x410] sm:$0xff] }
 0x17a   :  { %2183 = vmatprep.mubr.f32.mxu0 %v5143_v19  ;;  %v5165_v19 = vld [vmem:[#allocation2 + $0x292] sm:$0xff] }
 0x17b   :  { %v5153_v18 = vpop.f32.mrb[20].mxu1 }
 0x17c   :  { %5864 = vst [vmem:[#allocation49_spill] sm:$0xff] %v5153_v18  ;;  %v1232_v26 = vpop.f32.mrb[21].mxu1  ;;  %1494 = vmatmul.mubr.f32.gmra.mrb[126].mxu1 %v5148_v53  ;;  %v3771_v18 = vpack.c.bf16 %v1101_v51, %v1100_v45  ;;  %v1103_v53 = vld [vmem:[#allocation9 + $0x428] sm:$0xff]  ;;  %v1105_v45 = vld [vmem:[#allocation9 + $0x438] sm:$0xff] }
 0x17d   :  { %2184 = vmatmul.mubr.f32.gmra.mrb[94].mxu0 %v4809_v6  ;;  %1643 = vmatprep.mubr.f32.mxu1 %v5151_v9  ;;  %v1102_v26 = vld [vmem:[#allocation9 + $0x420] sm:$0xff]  ;;  %v5172_v6 = vld [vmem:[#allocation2 + $0xf0] sm:$0xff] }
 0x17e   :  { %2188 = vmatprep.mubr.f32.mxu0 %v5155_v59  ;;  %v5176_v59 = vld [vmem:[#allocation2 + $0x2a2] sm:$0xff]  ;;  %v3775_v51 = vpack.c.bf16 %v1103_v53, %v1102_v26 }
 0x17f   :  { %v5161_v47 = vpop.f32.mrb[22].mxu1 }
 0x180   :  { %5866 = vst [vmem:[#allocation51_spill] sm:$0xff] %v5161_v47  ;;  %v1237_v30 = vpop.f32.mrb[23].mxu1  ;;  %1644 = vmatmul.mubr.f32.vlgmr.msra.gmra.mrb[32].mxu1 %v4907_v16  ;;  %v1104_v16 = vld [vmem:[#allocation9 + $0x430] sm:$0xff] }
 0x181   :  { %2189 = vmatmul.mubr.f32.gmra.mrb[96].mxu0 %v4818_v23  ;;  %3770 = vmatpush3.bf16.msra.mxu1 %v4929_v34  ;;  %v5182_v23 = vld [vmem:[#allocation2 + $0xf8] sm:$0xff]  ;;  %v3779_v53 = vpack.c.bf16 %v1105_v45, %v1104_v16 }
 0x182   :  { %1648 = vmatprep.mubr.f32.mxu1 %v5163_v35  ;;  %2193 = vmatprep.mubr.f32.mxu0 %v5165_v19 }
 0x183   :  { %v5174_v47 = vpop.f32.mrb[24].mxu1  ;;  %3772 = vmatprep.subr.bf16.mxu1 %v3771_v18 }
 0x184   :  { %5867 = vst [vmem:[#allocation52_spill] sm:$0xff] %v5174_v47  ;;  %v1242_v30 = vpop.f32.mrb[25].mxu1  ;;  %1649 = vmatmul.mubr.f32.gmra.mrb[34].mxu1 %v4916_v22  ;;  %v5186_v47 = vld [vmem:[#allocation2 + $0x2aa] sm:$0xff]  ;;  %v1106_v22 = vld [vmem:[#allocation9 + $0x440] sm:$0xff] }
 0x185   :  { %2194 = vmatmul.mubr.f32.gmra.mrb[98].mxu0 %v4825_v33  ;;  %1653 = vmatprep.mubr.f32.mxu1 %v5172_v6  ;;  %v1107_v30 = vld [vmem:[#allocation9 + $0x448] sm:$0xff] }
 0x186   :  { %2198 = vmatprep.mubr.f32.mxu0 %v5176_v59  ;;  %3774 = vmatpush3.bf16.msra.mxu1 %v3771_v18  ;;  %v5192_v33 = vld [vmem:[#allocation2 + $0x108] sm:$0xff]  ;;  %v3783_v16 = vpack.c.bf16 %v1107_v30, %v1106_v22 }
 0x187   :  { %v5184_v34 = vpop.f32.mrb[26].mxu1  ;;  %3776 = vmatprep.subr.bf16.mxu1 %v3775_v51 }
 0x188   :  { %5868 = vst [vmem:[#allocation53_spill] sm:$0xff] %v5184_v34  ;;  %v1247_v26 = vpop.f32.mrb[27].mxu1  ;;  %1654 = vmatmul.mubr.f32.gmra.mrb[36].mxu1 %v4921_v28  ;;  %v5196_v34 = vld [vmem:[#allocation2 + $0x2ba] sm:$0xff]  ;;  %v1108_v28 = vld [vmem:[#allocation9 + $0x450] sm:$0xff] }
 0x189   :  { %2199 = vmatmul.mubr.f32.gmra.mrb[100].mxu0 %v4832_v4  ;;  %1658 = vmatprep.mubr.f32.mxu1 %v5182_v23  ;;  %v1109_v26 = vld [vmem:[#allocation9 + $0x458] sm:$0xff]  ;;  %v5202_v4 = vld [vmem:[#allocation2 + $0x110] sm:$0xff] }
 0x18a   :  { %2203 = vmatprep.mubr.f32.mxu0 %v5186_v47  ;;  %3778 = vmatpush3.bf16.msra.mxu1 %v3775_v51  ;;  %v3787_v22 = vpack.c.bf16 %v1109_v26, %v1108_v28  ;;  %v1113_v28 = vld [vmem:[#allocation9 + $0x478] sm:$0xff] }
 0x18b   :  { %v5194_v18 = vpop.f32.mrb[28].mxu1  ;;  %3780 = vmatprep.subr.bf16.mxu1 %v3779_v53  ;;  %v5262_v26 = vld [vmem:[#allocation2 + $0x31a] sm:$0xff] }
 0x18c   :  { %5869 = vst [vmem:[#allocation54_spill] sm:$0xff] %v5194_v18  ;;  %v1252_v45 = vpop.f32.mrb[29].mxu1  ;;  %1659 = vmatmul.mubr.f32.gmra.mrb[38].mxu1 %v4925_v60  ;;  %v5206_v18 = vld [vmem:[#allocation2 + $0x2c2] sm:$0xff] }
 0x18d   :  { %2204 = vmatmul.mubr.f32.gmra.mrb[102].mxu0 %v4839_v43  ;;  %1663 = vmatprep.mubr.f32.mxu1 %v5192_v33  ;;  %v1110_v43 = vld [vmem:[#allocation9 + $0x460] sm:$0xff]  ;;  %v1111_v60 = vld [vmem:[#allocation9 + $0x468] sm:$0xff] }
 0x18e   :  { %2208 = vmatprep.mubr.f32.mxu0 %v5196_v34  ;;  %3782 = vmatpush3.bf16.msra.mxu1 %v3779_v53  ;;  %v5212_v45 = vld [vmem:[#allocation2 + $0x120] sm:$0xff]  ;;  %v5214_v53 = vld [vmem:[#allocation2 + $0x2d2] sm:$0xff] }
 0x18f   :  { %v5204_v51 = vpop.f32.mrb[30].mxu1  ;;  %3784 = vmatprep.subr.bf16.mxu1 %v3783_v16 }
 0x190   :  { %5870 = vst [vmem:[#allocation55_spill] sm:$0xff] %v5204_v51  ;;  %v1257_v30 = vpop.f32.mrb[31].mxu1  ;;  %1664 = vmatmul.mubr.f32.gmra.mrb[40].mxu1 %v4931_v27  ;;  %v3791_v51 = vpack.c.bf16 %v1111_v60, %v1110_v43  ;;  %v5222_v27 = vld [vmem:[#allocation2 + $0x2da] sm:$0xff] }
 0x191   :  { %2209 = vmatmul.mubr.f32.gmra.mrb[104].mxu0 %v4846_v21  ;;  %1668 = vmatprep.mubr.f32.mxu1 %v5202_v4  ;;  %v5220_v21 = vld [vmem:[#allocation2 + $0x128] sm:$0xff]  ;;  %v618_v30 = vld [vmem:[#allocation2 + $0x1d0] sm:$0xff]  ;;  %v843_v43 = vld [vmem:[#allocation2 + $0x39] sm:$0xff] }
 0x192   :  { %2213 = vmatprep.mubr.f32.mxu0 %v5206_v18  ;;  %3786 = vmatpush3.bf16.msra.mxu1 %v3783_v16  ;;  %v5244_v16 = vld [vmem:[#allocation2 + $0x150] sm:$0xff]  ;;  %v5288_v60 = vld [vmem:[#allocation2 + $0x1e0] sm:$0xff] }
 0x193   :  { %3788 = vmatprep.subr.bf16.mxu1 %v3787_v22 }
 0x194   :  { %1669 = vmatmul.mubr.f32.gmra.mrb[42].mxu1 %v4937_v58  ;;  %v5228_v58 = vld [vmem:[#allocation2 + $0x138] sm:$0xff] }
 0x195   :  { %2214 = vmatmul.mubr.f32.gmra.mrb[106].mxu0 %v4853_v41  ;;  %1673 = vmatprep.mubr.f32.mxu1 %v5212_v45  ;;  %v5230_v41 = vld [vmem:[#allocation2 + $0x2ea] sm:$0xff] }
 0x196   :  { %2218 = vmatprep.mubr.f32.mxu0 %v5214_v53  ;;  %3790 = vmatpush3.bf16.msra.mxu1 %v3787_v22  ;;  %v776_v22 = vld [vmem:[#allocation2 + $0x33a] sm:$0xff] }
 0x197   :  { %3792 = vmatprep.subr.bf16.mxu1 %v3791_v51 }
 0x198   :  { %1674 = vmatmul.mubr.f32.gmra.mrb[44].mxu1 %v4943_v48  ;;  %v5236_v48 = vld [vmem:[#allocation2 + $0x140] sm:$0xff] }
 0x199   :  { %2219 = vmatmul.mubr.f32.gmra.mrb[108].mxu0 %v4860_v44  ;;  %1678 = vmatprep.mubr.f32.mxu1 %v5220_v21  ;;  %v5238_v44 = vld [vmem:[#allocation2 + $0x2f2] sm:$0xff] }
 0x19a   :  { %2223 = vmatprep.mubr.f32.mxu0 %v5222_v27  ;;  %3794 = vmatpush3.bf16.msra.mxu1 %v3791_v51  ;;  %v5281_v51 = vld [vmem:[#allocation2 + $0x188] sm:$0xff] }
 0x19c   :  { %1679 = vmatmul.mubr.f32.gmra.mrb[46].mxu1 %v4948_v10  ;;  %v5246_v10 = vld [vmem:[#allocation2 + $0x302] sm:$0xff] }
 0x19d   :  { %2224 = vmatmul.mubr.f32.gmra.mrb[110].mxu0 %v4867_v2  ;;  %1683 = vmatprep.mubr.f32.mxu1 %v5228_v58  ;;  %v5252_v2 = vld [vmem:[#allocation2 + $0x158] sm:$0xff] }
 0x19e   :  { %2228 = vmatprep.mubr.f32.mxu0 %v5230_v41 }
 0x1a0   :  { %1684 = vmatmul.mubr.f32.gmra.mrb[48].mxu1 %v4953_v1  ;;  %v5254_v1 = vld [vmem:[#allocation2 + $0x30a] sm:$0xff] }
 0x1a1   :  { %2229 = vmatmul.mubr.f32.gmra.mrb[112].mxu0 %v4874_v38  ;;  %1688 = vmatprep.mubr.f32.mxu1 %v5236_v48  ;;  %v1112_v38 = vld [vmem:[#allocation9 + $0x470] sm:$0xff] }
 0x1a2   :  { %2233 = vmatprep.mubr.f32.mxu0 %v5238_v44 }
 0x1a4   :  { %1689 = vmatmul.mubr.f32.gmra.mrb[50].mxu1 %v4959_v57  ;;  %v5260_v57 = vld [vmem:[#allocation2 + $0x168] sm:$0xff] }
 0x1a5   :  { %2234 = vmatmul.mubr.f32.gmra.mrb[114].mxu0 %v4881_v61  ;;  %1693 = vmatprep.mubr.f32.mxu1 %v5244_v16  ;;  %v3795_v61 = vpack.c.bf16 %v1113_v28, %v1112_v38  ;;  %v844_v38 = vld [vmem:[#allocation2 + $0x49] sm:$0xff]  ;;  %v845_v28 = vld [vmem:[#allocation2 + $0x51] sm:$0xff] }
 0x1a6   :  { %2238 = vmatprep.mubr.f32.mxu0 %v5246_v10 }
 0x1a7   :  { %3796 = vmatprep.subr.bf16.mxu1 %v3795_v61 }
 0x1a8   :  { %1694 = vmatmul.mubr.f32.gmra.mrb[52].mxu1 %v4964_v42  ;;  %v5270_v42 = vld [vmem:[#allocation2 + $0x322] sm:$0xff] }
 0x1a9   :  { %2239 = vmatmul.mubr.f32.gmra.mrb[116].mxu0 %v4888_v11  ;;  %1698 = vmatprep.mubr.f32.mxu1 %v5252_v2  ;;  %v5268_v11 = vld [vmem:[#allocation2 + $0x170] sm:$0xff] }
 0x1aa   :  { %2243 = vmatprep.mubr.f32.mxu0 %v5254_v1  ;;  %3798 = vmatpush3.bf16.msra.mxu1 %v3795_v61  ;;  %v781_v61 = vld [vmem:[#allocation2 + $0x50] sm:$0xff] }
 0x1ac   :  { %1699 = vmatmul.mubr.f32.gmra.mrb[54].mxu1 %v4969_v15  ;;  %v5276_v15 = vld [vmem:[#allocation2 + $0x180] sm:$0xff] }
 0x1ad   :  { %2244 = vmatmul.mubr.f32.gmra.mrb[118].mxu0 %v4895_v8  ;;  %1703 = vmatprep.mubr.f32.mxu1 %v5260_v57  ;;  %v775_v8 = vld [vmem:[#allocation2 + $0x332] sm:$0xff] }
 0x1ae   :  { %2248 = vmatprep.mubr.f32.mxu0 %v5262_v26 }
 0x1b0   :  { %1704 = vmatmul.mubr.f32.gmra.mrb[56].mxu1 %v4974_v55  ;;  %v842_v55 = vld [vmem:[#allocation2 + $0x31] sm:$0xff] }
 0x1b1   :  { %2249 = vmatmul.mubr.f32.gmra.mrb[120].mxu0 %v4901_v17  ;;  %1708 = vmatprep.mubr.f32.mxu1 %v5268_v11  ;;  %v617_v17 = vld [vmem:[#allocation2 + $0x1c8] sm:$0xff] }
 0x1b2   :  { %2253 = vmatprep.mubr.f32.mxu0 %v5270_v42 }
 0x1b4   :  { %1709 = vmatmul.mubr.f32.gmra.mrb[58].mxu1 %v4979_v14  ;;  %v778_v14 = vld [vmem:[#allocation2 + $0x30] sm:$0xff] }
 0x1b5   :  { %2254 = vmatmul.mubr.f32.gmra.mrb[122].mxu0 %v4909_v7  ;;  %1713 = vmatprep.mubr.f32.mxu1 %v5276_v15  ;;  %v553_v7 = vld [vmem:[#allocation2 + $0x1b2] sm:$0xff] }
 0x1b6   :  { %2258 = vmatprep.mubr.f32.mxu0 %v775_v8  ;;  %v5295_v8 = vld [vmem:[#allocation2 + $0x1f8] sm:$0xff] }
 0x1b8   :  { %1714 = vmatmul.mubr.f32.gmra.mrb[60].mxu1 %v4983_v54  ;;  %v554_v54 = vld [vmem:[#allocation2 + $0x1ba] sm:$0xff] }
 0x1b9   :  { %2259 = vmatmul.mubr.f32.gmra.mrb[124].mxu0 %v4989_v25  ;;  %1718 = vmatprep.mubr.f32.mxu1 %v5281_v51  ;;  %v779_v25 = vld [vmem:[#allocation2 + $0x38] sm:$0xff] }
 0x1ba   :  { %2263 = vmatprep.mubr.f32.mxu0 %v776_v22  ;;  %v846_v22 = vld [vmem:[#allocation2 + $0x61] sm:$0xff] }
 0x1bc   :  { %1719 = vmatmul.mubr.f32.gmra.mrb[62].mxu1 %v4987_v0  ;;  %v780_v0 = vld [vmem:[#allocation2 + $0x48] sm:$0xff] }
 0x1bd   :  { %2264 = vmatmul.mubr.f32.gmra.mrb[126].mxu0 %v4991_v40  ;;  %1723 = vmatprep.mubr.f32.mxu1 %v617_v17  ;;  %v5291_v40 = vld [vmem:[#allocation2 + $0x1e8] sm:$0xff]  ;;  %v782_v17 = vld [vmem:[#allocation2 + $0x60] sm:$0xff] }
 0x1be   :  { %2333 = vmatprep.mubr.f32.mxu0 %v842_v55  ;;  %v5299_v55 = vld [vmem:[#allocation2 + $0x200] sm:$0xff] }
 0x1c0   :  { %1724 = vmatmul.mubr.f32.gmra.mrb[64].mxu1 %v553_v7  ;;  %v847_v7 = vld [vmem:[#allocation2 + $0x69] sm:$0xff] }
 0x1c1   :  { %2334 = vmatmul.mubr.f32.vlgmr.msra.gmra.mrb[0].mxu0 %v778_v14  ;;  %1728 = vmatprep.mubr.f32.mxu1 %v618_v30  ;;  %v5303_v14 = vld [vmem:[#allocation2 + $0x210] sm:$0xff]  ;;  %v848_v30 = vld [vmem:[#allocation2 + $0x79] sm:$0xff] }
 0x1c2   :  { %2338 = vmatprep.mubr.f32.mxu0 %v843_v43  ;;  %v5307_v43 = vld [vmem:[#allocation2 + $0x218] sm:$0xff] }
 0x1c4   :  { %1729 = vmatmul.mubr.f32.gmra.mrb[66].mxu1 %v554_v54  ;;  %v849_v54 = vld [vmem:[#allocation2 + $0x81] sm:$0xff] }
 0x1c5   :  { %2339 = vmatmul.mubr.f32.gmra.mrb[2].mxu0 %v779_v25  ;;  %1733 = vmatprep.mubr.f32.mxu1 %v5288_v60  ;;  %v5311_v25 = vld [vmem:[#allocation2 + $0x228] sm:$0xff] }
 0x1c6   :  { %2343 = vmatprep.mubr.f32.mxu0 %v844_v38  ;;  %v850_v38 = vld [vmem:[#allocation2 + $0x91] sm:$0xff] }
 0x1c8   :  { %1734 = vmatmul.mubr.f32.gmra.mrb[68].mxu1 %v5005_v12  ;;  %v783_v12 = vld [vmem:[#allocation2 + $0x68] sm:$0xff] }
 0x1c9   :  { %2344 = vmatmul.mubr.f32.gmra.mrb[4].mxu0 %v780_v0  ;;  %1738 = vmatprep.mubr.f32.mxu1 %v5291_v40  ;;  %v5315_v0 = vld [vmem:[#allocation2 + $0x230] sm:$0xff] }
 0x1ca   :  { %2348 = vmatprep.mubr.f32.mxu0 %v845_v28  ;;  %v851_v28 = vld [vmem:[#allocation2 + $0x99] sm:$0xff] }
 0x1cc   :  { %1739 = vmatmul.mubr.f32.gmra.mrb[70].mxu1 %v5013_v36  ;;  %v784_v36 = vld [vmem:[#allocation2 + $0x78] sm:$0xff] }
 0x1cd   :  { %2349 = vmatmul.mubr.f32.gmra.mrb[6].mxu0 %v781_v61  ;;  %1743 = vmatprep.mubr.f32.mxu1 %v5295_v8  ;;  %v5319_v61 = vld [vmem:[#allocation2 + $0x240] sm:$0xff] }
 0x1ce   :  { %2353 = vmatprep.mubr.f32.mxu0 %v846_v22  ;;  %v852_v22 = vld [vmem:[#allocation2 + $0xa9] sm:$0xff] }
 0x1d0   :  { %1744 = vmatmul.mubr.f32.gmra.mrb[72].mxu1 %v5020_v46  ;;  %v785_v46 = vld [vmem:[#allocation2 + $0x80] sm:$0xff] }
 0x1d1   :  { %2354 = vmatmul.mubr.f32.gmra.mrb[8].mxu0 %v782_v17  ;;  %1748 = vmatprep.mubr.f32.mxu1 %v5299_v55  ;;  %v5323_v17 = vld [vmem:[#allocation2 + $0x248] sm:$0xff] }
 0x1d2   :  { %2358 = vmatprep.mubr.f32.mxu0 %v847_v7  ;;  %v853_v7 = vld [vmem:[#allocation2 + $0xb1] sm:$0xff] }
 0x1d4   :  { %1749 = vmatmul.mubr.f32.gmra.mrb[74].mxu1 %v5027_v31  ;;  %v786_v31 = vld [vmem:[#allocation2 + $0x90] sm:$0xff] }
 0x1d5   :  { %2359 = vmatmul.mubr.f32.gmra.mrb[10].mxu0 %v783_v12  ;;  %1753 = vmatprep.mubr.f32.mxu1 %v5303_v14  ;;  %v854_v12 = vld [vmem:[#allocation2 + $0xc1] sm:$0xff] }
 0x1d6   :  { %2363 = vmatprep.mubr.f32.mxu0 %v848_v30  ;;  %v855_v30 = vld [vmem:[#allocation2 + $0xc9] sm:$0xff] }
 0x1d8   :  { %1754 = vmatmul.mubr.f32.gmra.mrb[76].mxu1 %v5035_v37  ;;  %v787_v37 = vld [vmem:[#allocation2 + $0x98] sm:$0xff] }
 0x1d9   :  { %2364 = vmatmul.mubr.f32.gmra.mrb[12].mxu0 %v784_v36  ;;  %1758 = vmatprep.mubr.f32.mxu1 %v5307_v43  ;;  %v856_v36 = vld [vmem:[#allocation2 + $0xd9] sm:$0xff] }
 0x1da   :  { %2368 = vmatprep.mubr.f32.mxu0 %v849_v54  ;;  %v5878_v54 = vld [vmem:[#allocation30_spill] sm:$0xff] }
 0x1dc   :  { %1759 = vmatmul.mubr.f32.gmra.mrb[78].mxu1 %v5043_v52  ;;  %v788_v52 = vld [vmem:[#allocation2 + $0xa8] sm:$0xff] }
 0x1dd   :  { %2369 = vmatmul.mubr.f32.gmra.mrb[14].mxu0 %v785_v46  ;;  %1763 = vmatprep.mubr.f32.mxu1 %v5311_v25  ;;  %v5879_v46 = vld [vmem:[#allocation32_spill] sm:$0xff] }
 0x1de   :  { %2373 = vmatprep.mubr.f32.mxu0 %v850_v38  ;;  %v908_v38 = vld [vmem:[#allocation2 + $0x4a] sm:$0xff] }
 0x1e0   :  { %1764 = vmatmul.mubr.f32.gmra.mrb[80].mxu1 %v5053_v49  ;;  %v789_v49 = vld [vmem:[#allocation2 + $0xb0] sm:$0xff] }
 0x1e1   :  { %2374 = vmatmul.mubr.f32.gmra.mrb[16].mxu0 %v786_v31  ;;  %1768 = vmatprep.mubr.f32.mxu1 %v5315_v0  ;;  %v875_v31 = vld [vmem:[#allocation2 + $0x1e9] sm:$0xff] }
 0x1e2   :  { %2378 = vmatprep.mubr.f32.mxu0 %v851_v28  ;;  %v910_v28 = vld [vmem:[#allocation2 + $0x62] sm:$0xff] }
 0x1e4   :  { %1769 = vmatmul.mubr.f32.gmra.mrb[82].mxu1 %v5063_v50  ;;  %v790_v50 = vld [vmem:[#allocation2 + $0xc0] sm:$0xff] }
 0x1e5   :  { %2379 = vmatmul.mubr.f32.gmra.mrb[18].mxu0 %v787_v37  ;;  %1773 = vmatprep.mubr.f32.mxu1 %v5319_v61  ;;  %v876_v37 = vld [vmem:[#allocation2 + $0x1f9] sm:$0xff] }
 0x1e6   :  { %2383 = vmatprep.mubr.f32.mxu0 %v852_v22  ;;  %v911_v22 = vld [vmem:[#allocation2 + $0x6a] sm:$0xff] }
 0x1e8   :  { %1774 = vmatmul.mubr.f32.gmra.mrb[84].mxu1 %v5073_v20  ;;  %v791_v20 = vld [vmem:[#allocation2 + $0xc8] sm:$0xff] }
 0x1e9   :  { %2384 = vmatmul.mubr.f32.gmra.mrb[20].mxu0 %v788_v52  ;;  %1778 = vmatprep.mubr.f32.mxu1 %v5323_v17  ;;  %v877_v52 = vld [vmem:[#allocation2 + $0x201] sm:$0xff] }
 0x1ea   :  { %2388 = vmatprep.mubr.f32.mxu0 %v853_v7  ;;  %v913_v7 = vld [vmem:[#allocation2 + $0x82] sm:$0xff] }
 0x1ec   :  { %1779 = vmatmul.mubr.f32.gmra.mrb[86].mxu1 %v5083_v56  ;;  %v857_v56 = vld [vmem:[#allocation2 + $0xe1] sm:$0xff] }
 0x1ed   :  { %2389 = vmatmul.mubr.f32.gmra.mrb[22].mxu0 %v789_v49  ;;  %1783 = vmatprep.mubr.f32.mxu1 %v4998_v32  ;;  %v858_v32 = vld [vmem:[#allocation2 + $0xf1] sm:$0xff] }
 0x1ee   :  { %2393 = vmatprep.mubr.f32.mxu0 %v854_v12  ;;  %v878_v49 = vld [vmem:[#allocation2 + $0x211] sm:$0xff]  ;;  %v915_v12 = vld [vmem:[#allocation2 + $0x9a] sm:$0xff] }
 0x1f0   :  { %1784 = vmatmul.mubr.f32.gmra.mrb[88].mxu1 %v5093_v5  ;;  %v5871_v5 = vld [vmem:[#allocation44_spill] sm:$0xff] }
 0x1f1   :  { %2394 = vmatmul.mubr.f32.gmra.mrb[24].mxu0 %v790_v50  ;;  %1788 = vmatprep.mubr.f32.mxu1 %v5003_v24  ;;  %v859_v24 = vld [vmem:[#allocation2 + $0xf9] sm:$0xff] }
 0x1f2   :  { %2398 = vmatprep.mubr.f32.mxu0 %v855_v30  ;;  %v879_v50 = vld [vmem:[#allocation2 + $0x219] sm:$0xff] }
 0x1f3   :  { %v917_v30 = vld [vmem:[#allocation2 + $0xb2] sm:$0xff] }
 0x1f4   :  { %1789 = vmatmul.mubr.f32.gmra.mrb[90].mxu1 %v5103_v63  ;;  %v860_v63 = vld [vmem:[#allocation2 + $0x109] sm:$0xff] }
 0x1f5   :  { %2399 = vmatmul.mubr.f32.gmra.mrb[26].mxu0 %v791_v20  ;;  %1793 = vmatprep.mubr.f32.mxu1 %v5010_v13  ;;  %v5872_v13 = vld [vmem:[#allocation24_spill] sm:$0xff] }
 0x1f6   :  { %2403 = vmatprep.mubr.f32.mxu0 %v856_v36  ;;  %v880_v36 = vld [vmem:[#allocation2 + $0x229] sm:$0xff] }
 0x1f8   :  { %1794 = vmatmul.mubr.f32.gmra.mrb[92].mxu1 %v5113_v3  ;;  %v5873_v3 = vld [vmem:[#allocation47_spill] sm:$0xff] }
 0x1f9   :  { %2404 = vmatmul.mubr.f32.gmra.mrb[28].mxu0 %v5151_v9  ;;  %1798 = vmatprep.mubr.f32.mxu1 %v5017_v39  ;;  %v5874_v39 = vld [vmem:[#allocation25_spill] sm:$0xff]  ;;  %v862_v9 = vld [vmem:[#allocation2 + $0x121] sm:$0xff] }
 0x1fa   :  { %2408 = vmatprep.mubr.f32.mxu0 %v857_v56 }
 0x1fc   :  { %1799 = vmatmul.mubr.f32.gmra.mrb[94].mxu1 %v5123_v29  ;;  %v861_v29 = vld [vmem:[#allocation2 + $0x111] sm:$0xff] }
 0x1fd   :  { %2409 = vmatmul.mubr.f32.gmra.mrb[30].mxu0 %v5163_v35  ;;  %1803 = vmatprep.mubr.f32.mxu1 %v5024_v62  ;;  %v5875_v35 = vld [vmem:[#allocation50_spill] sm:$0xff] }
 0x1fe   :  { %2413 = vmatprep.mubr.f32.mxu0 %v858_v32  ;;  %v5876_v62 = vld [vmem:[#allocation26_spill] sm:$0xff] }
 0x1ff   :  { %v920_v32 = vld [vmem:[#allocation2 + $0xda] sm:$0xff] }
 0x200   :  { %1804 = vmatmul.mubr.f32.gmra.mrb[96].mxu1 %v5871_v5  ;;  %v881_v5 = vld [vmem:[#allocation2 + $0x231] sm:$0xff] }
 0x201   :  { %2414 = vmatmul.mubr.f32.gmra.mrb[32].mxu0 %v5172_v6  ;;  %1808 = vmatprep.mubr.f32.mxu1 %v5872_v13  ;;  %v5877_v6 = vld [vmem:[#allocation28_spill] sm:$0xff] }
 0x202   :  { %2418 = vmatprep.mubr.f32.mxu0 %v859_v24 }
 0x204   :  { %1809 = vmatmul.mubr.f32.gmra.mrb[98].mxu1 %v5873_v3 }
 0x205   :  { %2419 = vmatmul.mubr.f32.gmra.mrb[34].mxu0 %v5182_v23  ;;  %1813 = vmatprep.mubr.f32.mxu1 %v5874_v39  ;;  %v863_v23 = vld [vmem:[#allocation2 + $0x129] sm:$0xff]  ;;  %v882_v39 = vld [vmem:[#allocation2 + $0x241] sm:$0xff] }
 0x206   :  { %2423 = vmatprep.mubr.f32.mxu0 %v860_v63  ;;  %v922_v63 = vld [vmem:[#allocation2 + $0xf2] sm:$0xff] }
 0x208   :  { %1814 = vmatmul.mubr.f32.gmra.mrb[100].mxu1 %v5875_v35  ;;  %v924_v35 = vld [vmem:[#allocation2 + $0x10a] sm:$0xff] }
 0x209   :  { %2424 = vmatmul.mubr.f32.gmra.mrb[36].mxu0 %v5192_v33  ;;  %1818 = vmatprep.mubr.f32.mxu1 %v5876_v62  ;;  %v864_v33 = vld [vmem:[#allocation2 + $0x139] sm:$0xff] }
 0x20a   :  { %2428 = vmatprep.mubr.f32.mxu0 %v861_v29 }
 0x20c   :  { %1819 = vmatmul.mubr.f32.gmra.mrb[102].mxu1 %v5165_v19  ;;  %v865_v19 = vld [vmem:[#allocation2 + $0x141] sm:$0xff] }
 0x20d   :  { %2429 = vmatmul.mubr.f32.gmra.mrb[38].mxu0 %v5202_v4  ;;  %1823 = vmatprep.mubr.f32.mxu1 %v5877_v6  ;;  %v5880_v4 = vld [vmem:[#allocation34_spill] sm:$0xff] }
 0x20e   :  { %2433 = vmatprep.mubr.f32.mxu0 %v862_v9  ;;  %v883_v9 = vld [vmem:[#allocation2 + $0x249] sm:$0xff] }
 0x210   :  { %1824 = vmatmul.mubr.f32.gmra.mrb[104].mxu1 %v5176_v59  ;;  %v866_v59 = vld [vmem:[#allocation2 + $0x151] sm:$0xff] }
 0x211   :  { %2434 = vmatmul.mubr.f32.gmra.mrb[40].mxu0 %v5212_v45  ;;  %1828 = vmatprep.mubr.f32.mxu1 %v5878_v54  ;;  %v5881_v45 = vld [vmem:[#allocation36_spill] sm:$0xff] }
 0x212   :  { %2438 = vmatprep.mubr.f32.mxu0 %v863_v23  ;;  %v926_v23 = vld [vmem:[#allocation2 + $0x122] sm:$0xff] }
 0x214   :  { %1829 = vmatmul.mubr.f32.gmra.mrb[106].mxu1 %v5186_v47  ;;  %v867_v47 = vld [vmem:[#allocation2 + $0x159] sm:$0xff] }
 0x215   :  { %2439 = vmatmul.mubr.f32.gmra.mrb[42].mxu0 %v5220_v21  ;;  %1833 = vmatprep.mubr.f32.mxu1 %v5879_v46  ;;  %v5882_v21 = vld [vmem:[#allocation38_spill] sm:$0xff] }
 0x216   :  { %2443 = vmatprep.mubr.f32.mxu0 %v864_v33  ;;  %v884_v33 = vld [vmem:[#allocation2 + $0x259] sm:$0xff] }
 0x218   :  { %1834 = vmatmul.mubr.f32.gmra.mrb[108].mxu1 %v5196_v34  ;;  %v868_v34 = vld [vmem:[#allocation2 + $0x169] sm:$0xff] }
 0x219   :  { %2444 = vmatmul.mubr.f32.gmra.mrb[44].mxu0 %v5228_v58  ;;  %1838 = vmatprep.mubr.f32.mxu1 %v5880_v4  ;;  %v5883_v58 = vld [vmem:[#allocation40_spill] sm:$0xff]  ;;  %v928_v4 = vld [vmem:[#allocation2 + $0x13a] sm:$0xff] }
 0x21a   :  { %2448 = vmatprep.mubr.f32.mxu0 %v865_v19  ;;  %v820_v19 = vld [vmem:[#allocation2 + $0x258] sm:$0xff] }
 0x21c   :  { %1839 = vmatmul.mubr.f32.gmra.mrb[110].mxu1 %v5206_v18  ;;  %v869_v18 = vld [vmem:[#allocation2 + $0x171] sm:$0xff] }
 0x21d   :  { %2449 = vmatmul.mubr.f32.gmra.mrb[46].mxu0 %v5236_v48  ;;  %1843 = vmatprep.mubr.f32.mxu1 %v5881_v45  ;;  %v5884_v48 = vld [vmem:[#allocation42_spill] sm:$0xff]  ;;  %v885_v45 = vld [vmem:[#allocation2 + $0x261] sm:$0xff] }
 0x21e   :  { %2453 = vmatprep.mubr.f32.mxu0 %v866_v59 }
 0x220   :  { %1844 = vmatmul.mubr.f32.gmra.mrb[112].mxu1 %v5214_v53  ;;  %v870_v53 = vld [vmem:[#allocation2 + $0x181] sm:$0xff] }
 0x221   :  { %2454 = vmatmul.mubr.f32.gmra.mrb[48].mxu0 %v5244_v16  ;;  %1848 = vmatprep.mubr.f32.mxu1 %v5882_v21  ;;  %v5885_v16 = vld [vmem:[#allocation45_spill] sm:$0xff]  ;;  %v821_v21 = vld [vmem:[#allocation2 + $0x260] sm:$0xff] }
 0x222   :  { %2458 = vmatprep.mubr.f32.mxu0 %v867_v47  ;;  %v929_v47 = vld [vmem:[#allocation2 + $0x142] sm:$0xff] }
 0x224   :  { %1849 = vmatmul.mubr.f32.gmra.mrb[114].mxu1 %v5222_v27  ;;  %v871_v27 = vld [vmem:[#allocation2 + $0x189] sm:$0xff] }
 0x225   :  { %2459 = vmatmul.mubr.f32.gmra.mrb[50].mxu0 %v5252_v2  ;;  %1853 = vmatprep.mubr.f32.mxu1 %v5883_v58  ;;  %v5886_v2 = vld [vmem:[#allocation48_spill] sm:$0xff] }
 0x226   :  { %2463 = vmatprep.mubr.f32.mxu0 %v868_v34  ;;  %v930_v34 = vld [vmem:[#allocation2 + $0x152] sm:$0xff] }
 0x228   :  { %1854 = vmatmul.mubr.f32.gmra.mrb[116].mxu1 %v5230_v41  ;;  %v5378_v41 = vld [vmem:[#allocation2 + $0x330] sm:$0xff] }
 0x229   :  { %2464 = vmatmul.mubr.f32.gmra.mrb[52].mxu0 %v5260_v57  ;;  %1858 = vmatprep.mubr.f32.mxu1 %v5884_v48  ;;  %v808_v57 = vld [vmem:[#allocation2 + $0x198] sm:$0xff] }
 0x22a   :  { %2468 = vmatprep.mubr.f32.mxu0 %v869_v18  ;;  %v886_v18 = vld [vmem:[#allocation2 + $0x271] sm:$0xff]  ;;  %v931_v48 = vld [vmem:[#allocation2 + $0x15a] sm:$0xff] }
 0x22c   :  { %1859 = vmatmul.mubr.f32.gmra.mrb[118].mxu1 %v5238_v44  ;;  %v5383_v44 = vld [vmem:[#allocation2 + $0x1] sm:$0xff] }
 0x22d   :  { %2469 = vmatmul.mubr.f32.gmra.mrb[54].mxu0 %v5268_v11  ;;  %1863 = vmatprep.mubr.f32.mxu1 %v5885_v16  ;;  %v5386_v11 = vld [vmem:[#allocation2 + $0x338] sm:$0xff]  ;;  %v932_v16 = vld [vmem:[#allocation2 + $0x16a] sm:$0xff] }
 0x22e   :  { %2473 = vmatprep.mubr.f32.mxu0 %v870_v53  ;;  %v822_v53 = vld [vmem:[#allocation2 + $0x270] sm:$0xff] }
 0x230   :  { %1864 = vmatmul.mubr.f32.gmra.mrb[120].mxu1 %v5246_v10  ;;  %v809_v10 = vld [vmem:[#allocation2 + $0x1a0] sm:$0xff] }
 0x231   :  { %2474 = vmatmul.mubr.f32.gmra.mrb[56].mxu0 %v5276_v15  ;;  %1868 = vmatprep.mubr.f32.mxu1 %v5886_v2  ;;  %v874_v15 = vld [vmem:[#allocation2 + $0x1e1] sm:$0xff]  ;;  %v887_v2 = vld [vmem:[#allocation2 + $0x279] sm:$0xff] }
 0x232   :  { %2478 = vmatprep.mubr.f32.mxu0 %v871_v27 }
 0x234   :  { %1869 = vmatmul.mubr.f32.gmra.mrb[122].mxu1 %v5254_v1  ;;  %v906_v1 = vld [vmem:[#allocation2 + $0x32] sm:$0xff] }
 0x235   :  { %2479 = vmatmul.mubr.f32.gmra.mrb[58].mxu0 %v5281_v51  ;;  %1873 = vmatprep.mubr.f32.mxu1 %v5378_v41  ;;  %v907_v51 = vld [vmem:[#allocation2 + $0x3a] sm:$0xff] }
 0x236   :  { %2483 = vmatprep.mubr.f32.mxu0 %v5383_v44 }
 0x238   :  { %1874 = vmatmul.mubr.f32.gmra.mrb[124].mxu1 %v5262_v26  ;;  %v909_v26 = vld [vmem:[#allocation2 + $0x52] sm:$0xff] }
 0x239   :  { %2484 = vmatmul.mubr.f32.gmra.mrb[60].mxu0 %v808_v57  ;;  %1878 = vmatprep.mubr.f32.mxu1 %v5386_v11 }
 0x23a   :  { %2488 = vmatprep.mubr.f32.mxu0 %v5383_v44 }
 0x23c   :  { %1879 = vmatmul.mubr.f32.gmra.mrb[126].mxu1 %v5270_v42  ;;  %v912_v42 = vld [vmem:[#allocation2 + $0x7a] sm:$0xff] }
 0x23d   :  { %2489 = vmatmul.mubr.f32.gmra.mrb[62].mxu0 %v809_v10  ;;  %3479 = vmatprep.mubr.f32.mxu1 %v906_v1  ;;  %v933_v10 = vld [vmem:[#allocation2 + $0x172] sm:$0xff] }
 0x23e   :  { %2493 = vmatprep.mubr.f32.mxu0 %v874_v15  ;;  %v823_v1 = vld [vmem:[#allocation2 + $0x278] sm:$0xff]  ;;  %v934_v15 = vld [vmem:[#allocation2 + $0x182] sm:$0xff] }
 0x240   :  { %3480 = vmatmul.mubr.f32.vlgmr.msra.gmra.mrb[128].mxu1 %v907_v51 }
 0x241   :  { %2494 = vmatmul.mubr.f32.gmra.mrb[64].mxu0 %v5288_v60  ;;  %3482 = vmatprep.mubr.f32.mxu1 %v908_v38  ;;  %v914_v60 = vld [vmem:[#allocation2 + $0x92] sm:$0xff]  ;;  %v888_v38 = vld [vmem:[#allocation2 + $0x289] sm:$0xff] }
 0x242   :  { %2498 = vmatprep.mubr.f32.mxu0 %v875_v31 }
 0x244   :  { %3483 = vmatmul.mubr.f32.gmra.mrb[130].mxu1 %v909_v26  ;;  %v935_v26 = vld [vmem:[#allocation2 + $0x18a] sm:$0xff] }
 0x245   :  { %2499 = vmatmul.mubr.f32.gmra.mrb[66].mxu0 %v5291_v40  ;;  %3485 = vmatprep.mubr.f32.mxu1 %v910_v28  ;;  %v916_v40 = vld [vmem:[#allocation2 + $0xaa] sm:$0xff] }
 0x246   :  { %2503 = vmatprep.mubr.f32.mxu0 %v876_v37  ;;  %v824_v28 = vld [vmem:[#allocation2 + $0x288] sm:$0xff]  ;;  %v936_v37 = vld [vmem:[#allocation2 + $0x19a] sm:$0xff] }
 0x248   :  { %3486 = vmatmul.mubr.f32.gmra.mrb[132].mxu1 %v911_v22 }
 0x249   :  { %2504 = vmatmul.mubr.f32.gmra.mrb[68].mxu0 %v5295_v8  ;;  %3488 = vmatprep.mubr.f32.mxu1 %v912_v42  ;;  %v918_v8 = vld [vmem:[#allocation2 + $0xc2] sm:$0xff]  ;;  %v889_v42 = vld [vmem:[#allocation2 + $0x291] sm:$0xff] }
 0x24a   :  { %2508 = vmatprep.mubr.f32.mxu0 %v877_v52 }
 0x24c   :  { %3489 = vmatmul.mubr.f32.gmra.mrb[134].mxu1 %v913_v7  ;;  %v937_v7 = vld [vmem:[#allocation2 + $0x1a2] sm:$0xff] }
 0x24d   :  { %2509 = vmatmul.mubr.f32.gmra.mrb[70].mxu0 %v5299_v55  ;;  %3491 = vmatprep.mubr.f32.mxu1 %v914_v60  ;;  %v919_v55 = vld [vmem:[#allocation2 + $0xca] sm:$0xff] }
 0x24e   :  { %2513 = vmatprep.mubr.f32.mxu0 %v878_v49  ;;  %v825_v60 = vld [vmem:[#allocation2 + $0x290] sm:$0xff]  ;;  %v938_v49 = vld [vmem:[#allocation2 + $0x1e2] sm:$0xff] }
 0x250   :  { %3492 = vmatmul.mubr.f32.gmra.mrb[136].mxu1 %v915_v12 }
 0x251   :  { %2514 = vmatmul.mubr.f32.gmra.mrb[72].mxu0 %v5303_v14  ;;  %3494 = vmatprep.mubr.f32.mxu1 %v916_v40  ;;  %v921_v14 = vld [vmem:[#allocation2 + $0xe2] sm:$0xff] }
 0x252   :  { %2518 = vmatprep.mubr.f32.mxu0 %v879_v50  ;;  %v890_v40 = vld [vmem:[#allocation2 + $0x2a1] sm:$0xff] }
 0x253   :  { %v5397_v20 = vpop.f32.mrb[32].mxu1 }
 0x254   :  { %v1647_v56 = vpop.f32.mrb[33].mxu1  ;;  %3495 = vmatmul.mubr.f32.gmra.mrb[138].mxu1 %v917_v30  ;;  %v939_v30 = vld [vmem:[#allocation2 + $0x1ea] sm:$0xff] }
 0x255   :  { %2519 = vmatmul.mubr.f32.gmra.mrb[74].mxu0 %v5307_v43  ;;  %3497 = vmatprep.mubr.f32.mxu1 %v918_v8  ;;  %v923_v43 = vld [vmem:[#allocation2 + $0xfa] sm:$0xff] }
 0x256   :  { %2523 = vmatprep.mubr.f32.mxu0 %v880_v36  ;;  %v826_v8 = vld [vmem:[#allocation2 + $0x2a0] sm:$0xff] }
 0x257   :  { %v5400_v24 = vpop.f32.mrb[34].mxu1  ;;  %v940_v36 = vld [vmem:[#allocation2 + $0x1fa] sm:$0xff] }
 0x258   :  { %v1652_v13 = vpop.f32.mrb[35].mxu1  ;;  %3498 = vmatmul.mubr.f32.gmra.mrb[140].mxu1 %v919_v55  ;;  %v891_v55 = vld [vmem:[#allocation2 + $0x2a9] sm:$0xff] }
 0x259   :  { %2524 = vmatmul.mubr.f32.gmra.mrb[76].mxu0 %v5311_v25  ;;  %3500 = vmatprep.mubr.f32.mxu1 %v920_v32  ;;  %v925_v25 = vld [vmem:[#allocation2 + $0x112] sm:$0xff]  ;;  %v827_v13 = vld [vmem:[#allocation2 + $0x2a8] sm:$0xff] }
 0x25a   :  { %2528 = vmatprep.mubr.f32.mxu0 %v881_v5  ;;  %v941_v5 = vld [vmem:[#allocation2 + $0x202] sm:$0xff] }
 0x25b   :  { %v5403_v3 = vpop.f32.mrb[36].mxu1 }
 0x25c   :  { %v1657_v29 = vpop.f32.mrb[37].mxu1  ;;  %3501 = vmatmul.mubr.f32.gmra.mrb[142].mxu1 %v921_v14  ;;  %v942_v14 = vld [vmem:[#allocation2 + $0x212] sm:$0xff] }
 0x25d   :  { %2529 = vmatmul.mubr.f32.gmra.mrb[78].mxu0 %v5315_v0  ;;  %3503 = vmatprep.mubr.f32.mxu1 %v922_v63  ;;  %v927_v0 = vld [vmem:[#allocation2 + $0x12a] sm:$0xff] }
 0x25e   :  { %2533 = vmatprep.mubr.f32.mxu0 %v882_v39  ;;  %v892_v39 = vld [vmem:[#allocation2 + $0x2b9] sm:$0xff] }
 0x25f   :  { %v5406_v62 = vpop.f32.mrb[38].mxu1 }
 0x260   :  { %v1662_v6 = vpop.f32.mrb[39].mxu1  ;;  %3504 = vmatmul.mubr.f32.gmra.mrb[144].mxu1 %v923_v43  ;;  %v943_v43 = vld [vmem:[#allocation2 + $0x21a] sm:$0xff] }
 0x261   :  { %2534 = vmatmul.mubr.f32.gmra.mrb[80].mxu0 %v5319_v61  ;;  %3506 = vmatprep.mubr.f32.mxu1 %v924_v35  ;;  %v828_v35 = vld [vmem:[#allocation2 + $0x2b8] sm:$0xff] }
 0x262   :  { %2538 = vmatprep.mubr.f32.mxu0 %v883_v9  ;;  %v944_v9 = vld [vmem:[#allocation2 + $0x22a] sm:$0xff] }
 0x263   :  { %v5409_v54 = vpop.f32.mrb[40].mxu1 }
 0x264   :  { %v1667_v46 = vpop.f32.mrb[41].mxu1  ;;  %3507 = vmatmul.mubr.f32.gmra.mrb[146].mxu1 %v925_v25  ;;  %v893_v25 = vld [vmem:[#allocation2 + $0x2c1] sm:$0xff] }
 0x265   :  { %2539 = vmatmul.mubr.f32.gmra.mrb[82].mxu0 %v5323_v17  ;;  %3509 = vmatprep.mubr.f32.mxu1 %v926_v23  ;;  %v829_v46 = vld [vmem:[#allocation2 + $0x2c0] sm:$0xff] }
 0x266   :  { %2543 = vmatprep.mubr.f32.mxu0 %v884_v33  ;;  %v945_v33 = vld [vmem:[#allocation2 + $0x232] sm:$0xff] }
 0x267   :  { %v5412_v59 = vpop.f32.mrb[42].mxu1 }
 0x268   :  { %v1672_v61 = vpop.f32.mrb[43].mxu1  ;;  %3510 = vmatmul.mubr.f32.gmra.mrb[148].mxu1 %v927_v0  ;;  %v946_v0 = vld [vmem:[#allocation2 + $0x242] sm:$0xff] }
 0x269   :  { %2544 = vmatmul.mubr.f32.gmra.mrb[84].mxu0 %v820_v19  ;;  %3512 = vmatprep.mubr.f32.mxu1 %v928_v4  ;;  %v894_v4 = vld [vmem:[#allocation2 + $0x2d1] sm:$0xff] }
 0x26a   :  { %2548 = vmatprep.mubr.f32.mxu0 %v885_v45  ;;  %v947_v61 = vld [vmem:[#allocation2 + $0x24a] sm:$0xff] }
 0x26b   :  { %v5414_v58 = vpop.f32.mrb[44].mxu1 }
 0x26c   :  { %v1677_v17 = vpop.f32.mrb[45].mxu1  ;;  %3513 = vmatmul.mubr.f32.gmra.mrb[150].mxu1 %v929_v47  ;;  %v830_v47 = vld [vmem:[#allocation2 + $0x2d0] sm:$0xff] }
 0x26d   :  { %2549 = vmatmul.mubr.f32.gmra.mrb[86].mxu0 %v821_v21  ;;  %3515 = vmatprep.mubr.f32.mxu1 %v930_v34  ;;  %v948_v21 = vld [vmem:[#allocation2 + $0x25a] sm:$0xff] }
 0x26e   :  { %2553 = vmatprep.mubr.f32.mxu0 %v886_v18  ;;  %v895_v18 = vld [vmem:[#allocation2 + $0x2d9] sm:$0xff] }
 0x26f   :  { %v5416_v27 = vpop.f32.mrb[46].mxu1 }
 0x270   :  { %v1682_v57 = vpop.f32.mrb[47].mxu1  ;;  %3516 = vmatmul.mubr.f32.gmra.mrb[152].mxu1 %v931_v48  ;;  %v949_v48 = vld [vmem:[#allocation2 + $0x262] sm:$0xff] }
 0x271   :  { %2554 = vmatmul.mubr.f32.gmra.mrb[88].mxu0 %v822_v53  ;;  %3518 = vmatprep.mubr.f32.mxu1 %v932_v16  ;;  %v831_v53 = vld [vmem:[#allocation2 + $0x2d8] sm:$0xff]  ;;  %v896_v57 = vld [vmem:[#allocation2 + $0x2e9] sm:$0xff] }
 0x272   :  { %2558 = vmatprep.mubr.f32.mxu0 %v887_v2  ;;  %v950_v16 = vld [vmem:[#allocation2 + $0x272] sm:$0xff] }
 0x273   :  { %v5418_v51 = vpop.f32.mrb[48].mxu1 }
 0x274   :  { %v1687_v31 = vpop.f32.mrb[49].mxu1  ;;  %3519 = vmatmul.mubr.f32.gmra.mrb[154].mxu1 %v933_v10 }
 0x275   :  { %2559 = vmatmul.mubr.f32.gmra.mrb[90].mxu0 %v823_v1  ;;  %3521 = vmatprep.mubr.f32.mxu1 %v934_v15  ;;  %v5887_v15 = vld [vmem:[#allocation27_spill] sm:$0xff] }
 0x276   :  { %2563 = vmatprep.mubr.f32.mxu0 %v888_v38 }
 0x277   :  { %v5420_v22 = vpop.f32.mrb[50].mxu1 }
 0x278   :  { %v1692_v52 = vpop.f32.mrb[51].mxu1  ;;  %3522 = vmatmul.mubr.f32.gmra.mrb[156].mxu1 %v935_v26  ;;  %v951_v26 = vld [vmem:[#allocation2 + $0x27a] sm:$0xff] }
 0x279   :  { %2564 = vmatmul.mubr.f32.gmra.mrb[92].mxu0 %v824_v28  ;;  %3524 = vmatprep.mubr.f32.mxu1 %v936_v37  ;;  %v832_v28 = vld [vmem:[#allocation2 + $0x2e8] sm:$0xff]  ;;  %v897_v52 = vld [vmem:[#allocation2 + $0x2f1] sm:$0xff] }
 0x27a   :  { %2568 = vmatprep.mubr.f32.mxu0 %v889_v42  ;;  %v952_v37 = vld [vmem:[#allocation2 + $0x28a] sm:$0xff] }
 0x27b   :  { %v5422_v12 = vpop.f32.mrb[52].mxu1 }
 0x27c   :  { %v1697_v50 = vpop.f32.mrb[53].mxu1  ;;  %3525 = vmatmul.mubr.f32.gmra.mrb[158].mxu1 %v937_v7 }
 0x27d   :  { %2569 = vmatmul.mubr.f32.gmra.mrb[94].mxu0 %v825_v60  ;;  %3527 = vmatprep.mubr.f32.mxu1 %v938_v49  ;;  %v5888_v49 = vld [vmem:[#allocation29_spill] sm:$0xff] }
 0x27e   :  { %2573 = vmatprep.mubr.f32.mxu0 %v890_v40 }
 0x27f   :  { %v5424_v56 = vpop.f32.mrb[54].mxu1 }
 0x280   :  { %v1702_v32 = vpop.f32.mrb[55].mxu1  ;;  %3528 = vmatmul.mubr.f32.gmra.mrb[160].mxu1 %v939_v30  ;;  %v953_v30 = vld [vmem:[#allocation2 + $0x292] sm:$0xff] }
 0x281   :  { %2574 = vmatmul.mubr.f32.gmra.mrb[96].mxu0 %v826_v8  ;;  %3530 = vmatprep.mubr.f32.mxu1 %v940_v36  ;;  %v833_v8 = vld [vmem:[#allocation2 + $0x2f0] sm:$0xff]  ;;  %v954_v36 = vld [vmem:[#allocation2 + $0x2a2] sm:$0xff] }
 0x282   :  { %2578 = vmatprep.mubr.f32.mxu0 %v891_v55  ;;  %v898_v32 = vld [vmem:[#allocation2 + $0x301] sm:$0xff] }
 0x283   :  { %v5426_v63 = vpop.f32.mrb[56].mxu1 }
 0x284   :  { %v1707_v29 = vpop.f32.mrb[57].mxu1  ;;  %3531 = vmatmul.mubr.f32.gmra.mrb[162].mxu1 %v941_v5 }
 0x285   :  { %2579 = vmatmul.mubr.f32.gmra.mrb[98].mxu0 %v827_v13  ;;  %3533 = vmatprep.mubr.f32.mxu1 %v942_v14  ;;  %v5889_v14 = vld [vmem:[#allocation31_spill] sm:$0xff] }
 0x286   :  { %2583 = vmatprep.mubr.f32.mxu0 %v892_v39 }
 0x287   :  { %v5428_v6 = vpop.f32.mrb[58].mxu1 }
 0x288   :  { %v1712_v23 = vpop.f32.mrb[59].mxu1  ;;  %3534 = vmatmul.mubr.f32.gmra.mrb[164].mxu1 %v943_v43  ;;  %v955_v43 = vld [vmem:[#allocation2 + $0x2aa] sm:$0xff] }
 0x289   :  { %2584 = vmatmul.mubr.f32.gmra.mrb[100].mxu0 %v828_v35  ;;  %3536 = vmatprep.mubr.f32.mxu1 %v944_v9  ;;  %v834_v35 = vld [vmem:[#allocation2 + $0x300] sm:$0xff]  ;;  %v899_v23 = vld [vmem:[#allocation2 + $0x309] sm:$0xff] }
 0x28a   :  { %2588 = vmatprep.mubr.f32.mxu0 %v893_v25  ;;  %v956_v9 = vld [vmem:[#allocation2 + $0x2ba] sm:$0xff] }
 0x28b   :  { %v5430_v19 = vpop.f32.mrb[60].mxu1 }
 0x28c   :  { %v1717_v45 = vpop.f32.mrb[61].mxu1  ;;  %3537 = vmatmul.mubr.f32.gmra.mrb[166].mxu1 %v945_v33 }
 0x28d   :  { %2589 = vmatmul.mubr.f32.gmra.mrb[102].mxu0 %v829_v46  ;;  %3539 = vmatprep.mubr.f32.mxu1 %v946_v0  ;;  %v5890_v0 = vld [vmem:[#allocation33_spill] sm:$0xff] }
 0x28e   :  { %2593 = vmatprep.mubr.f32.mxu0 %v894_v4 }
 0x28f   :  { %v5432_v34 = vpop.f32.mrb[62].mxu1 }
 0x290   :  { %v1722_v17 = vpop.f32.mrb[63].mxu1  ;;  %3540 = vmatmul.mubr.f32.gmra.mrb[168].mxu1 %v947_v61  ;;  %v957_v61 = vld [vmem:[#allocation2 + $0x2c2] sm:$0xff] }
 0x291   :  { %2594 = vmatmul.mubr.f32.gmra.mrb[104].mxu0 %v830_v47  ;;  %3542 = vmatprep.mubr.f32.mxu1 %v948_v21  ;;  %v835_v47 = vld [vmem:[#allocation2 + $0x308] sm:$0xff]  ;;  %v958_v21 = vld [vmem:[#allocation2 + $0x2d2] sm:$0xff] }
 0x292   :  { %2598 = vmatprep.mubr.f32.mxu0 %v895_v18  ;;  %v900_v17 = vld [vmem:[#allocation2 + $0x319] sm:$0xff] }
 0x293   :  { %v5434_v2 = vpop.f32.mrb[64].mxu1 }
 0x294   :  { %v2335_v10 = vpop.f32.mrb[0].mxu0  ;;  %v1727_v1 = vpop.f32.mrb[65].mxu1  ;;  %3543 = vmatmul.mubr.f32.gmra.mrb[170].mxu1 %v949_v48 }
 0x295   :  { %v5437_v38 = vadd.f32 %v2335_v10, %v5887_v15  ;;  %v2337_v31 = vpop.f32.mrb[1].mxu0  ;;  %2599 = vmatmul.mubr.f32.gmra.mrb[106].mxu0 %v831_v53  ;;  %3545 = vmatprep.mubr.f32.mxu1 %v950_v16  ;;  %v5891_v16 = vld [vmem:[#allocation35_spill] sm:$0xff] }
 0x296   :  { %2603 = vmatprep.mubr.f32.mxu0 %v896_v57  ;;  %v959_v1 = vld [vmem:[#allocation2 + $0x2da] sm:$0xff]  ;;  %v960_v31 = vld [vmem:[#allocation2 + $0x2ea] sm:$0xff] }
 0x297   :  { %v5439_v42 = vpop.f32.mrb[66].mxu1  ;;  %v836_v15 = vld [vmem:[#allocation2 + $0x318] sm:$0xff] }
 0x298   :  { %v2340_v7 = vpop.f32.mrb[2].mxu0  ;;  %v1732_v60 = vpop.f32.mrb[67].mxu1  ;;  %3546 = vmatmul.mubr.f32.gmra.mrb[172].mxu1 %v951_v26 }
 0x299   :  { %v5442_v40 = vadd.f32 %v2340_v7, %v5888_v49  ;;  %v2342_v50 = vpop.f32.mrb[3].mxu0  ;;  %2604 = vmatmul.mubr.f32.gmra.mrb[108].mxu0 %v832_v28  ;;  %3548 = vmatprep.mubr.f32.mxu1 %v952_v37  ;;  %v901_v28 = vld [vmem:[#allocation2 + $0x321] sm:$0xff]  ;;  %v5892_v7 = vld [vmem:[#allocation37_spill] sm:$0xff] }
 0x29a   :  { %2608 = vmatprep.mubr.f32.mxu0 %v897_v52  ;;  %v961_v50 = vld [vmem:[#allocation2 + $0x2f2] sm:$0xff] }
 0x29b   :  { %v5444_v55 = vpop.f32.mrb[68].mxu1 }
 0x29c   :  { %v2345_v5 = vpop.f32.mrb[4].mxu0  ;;  %v1737_v13 = vpop.f32.mrb[69].mxu1  ;;  %3549 = vmatmul.mubr.f32.gmra.mrb[174].mxu1 %v953_v30  ;;  %v837_v30 = vld [vmem:[#allocation2 + $0x320] sm:$0xff] }
 0x29d   :  { %v5447_v39 = vadd.f32 %v2345_v5, %v5889_v14  ;;  %v2347_v29 = vpop.f32.mrb[5].mxu0  ;;  %2609 = vmatmul.mubr.f32.gmra.mrb[110].mxu0 %v833_v8  ;;  %3551 = vmatprep.mubr.f32.mxu1 %v954_v36  ;;  %v962_v8 = vld [vmem:[#allocation2 + $0x302] sm:$0xff] }
 0x29e   :  { %2613 = vmatprep.mubr.f32.mxu0 %v898_v32  ;;  %v902_v32 = vld [vmem:[#allocation2 + $0x331] sm:$0xff]  ;;  %v5893_v14 = vld [vmem:[#allocation39_spill] sm:$0xff] }
 0x29f   :  { %v5449_v25 = vpop.f32.mrb[70].mxu1 }
 0x2a0   :  { %v2350_v33 = vpop.f32.mrb[6].mxu0  ;;  %v1742_v46 = vpop.f32.mrb[71].mxu1  ;;  %3552 = vmatmul.mubr.f32.gmra.mrb[176].mxu1 %v955_v43 }
 0x2a1   :  { %v5452_v4 = vadd.f32 %v2350_v33, %v5890_v0  ;;  %v2352_v45 = vpop.f32.mrb[7].mxu0  ;;  %2614 = vmatmul.mubr.f32.gmra.mrb[112].mxu0 %v834_v35  ;;  %3554 = vmatprep.mubr.f32.mxu1 %v956_v9  ;;  %v963_v35 = vld [vmem:[#allocation2 + $0x30a] sm:$0xff]  ;;  %v964_v9 = vld [vmem:[#allocation2 + $0x31a] sm:$0xff] }
 0x2a2   :  { %2618 = vmatprep.mubr.f32.mxu0 %v899_v23  ;;  %v903_v33 = vld [vmem:[#allocation2 + $0x339] sm:$0xff]  ;;  %v5894_v45 = vld [vmem:[#allocation41_spill] sm:$0xff] }
 0x2a3   :  { %v5454_v18 = vpop.f32.mrb[72].mxu1 }
 0x2a4   :  { %v2355_v48 = vpop.f32.mrb[8].mxu0  ;;  %v1747_v53 = vpop.f32.mrb[73].mxu1  ;;  %3555 = vmatmul.mubr.f32.gmra.mrb[178].mxu1 %v957_v61 }
 0x2a5   :  { %v5457_v57 = vadd.f32 %v2355_v48, %v5891_v16  ;;  %v2357_v10 = vpop.f32.mrb[9].mxu0  ;;  %2619 = vmatmul.mubr.f32.gmra.mrb[114].mxu0 %v835_v47  ;;  %3557 = vmatprep.mubr.f32.mxu1 %v958_v21  ;;  %v965_v21 = vld [vmem:[#allocation2 + $0x322] sm:$0xff] }
 0x2a6   :  { %2623 = vmatprep.mubr.f32.mxu0 %v900_v17  ;;  %v966_v17 = vld [vmem:[#allocation2 + $0x332] sm:$0xff]  ;;  %v5895_v10 = vld [vmem:[#allocation43_spill] sm:$0xff] }
 0x2a7   :  { %v5459_v26 = vpop.f32.mrb[74].mxu1 }
 0x2a8   :  { %v2360_v37 = vpop.f32.mrb[10].mxu0  ;;  %v1752_v52 = vpop.f32.mrb[75].mxu1  ;;  %3558 = vmatmul.mubr.f32.gmra.mrb[180].mxu1 %v959_v1 }
 0x2a9   :  { %v5462_v60 = vadd.f32 %v2360_v37, %v5892_v7  ;;  %v2362_v49 = vpop.f32.mrb[11].mxu0  ;;  %2624 = vmatmul.mubr.f32.gmra.mrb[116].mxu0 %v836_v15  ;;  %3560 = vmatprep.mubr.f32.mxu1 %v960_v31  ;;  %v967_v31 = vld [vmem:[#allocation2 + $0x33a] sm:$0xff] }
 0x2aa   :  { %2628 = vmatprep.mubr.f32.mxu0 %v901_v28  ;;  %v968_v28 = vld [vmem:[#allocation2 + $0x34a] sm:$0xff]  ;;  %v5896_v49 = vld [vmem:[#allocation46_spill] sm:$0xff] }
 0x2ab   :  { %v5464_v36 = vpop.f32.mrb[76].mxu1 }
 0x2ac   :  { %v2365_v5 = vpop.f32.mrb[12].mxu0  ;;  %v1757_v13 = vpop.f32.mrb[77].mxu1  ;;  %3561 = vmatmul.mubr.f32.gmra.mrb[182].mxu1 %v961_v50 }
 0x2ad   :  { %v5467_v29 = vadd.f32 %v2365_v5, %v5893_v14  ;;  %v2367_v43 = vpop.f32.mrb[13].mxu0  ;;  %2629 = vmatmul.mubr.f32.gmra.mrb[118].mxu0 %v837_v30  ;;  %3563 = vmatprep.mubr.f32.mxu1 %v962_v8  ;;  %v969_v8 = vld [vmem:[#allocation2 + $0x352] sm:$0xff] }
 0x2ae   :  { %2633 = vmatprep.mubr.f32.mxu0 %v902_v32  ;;  %v5897_v14 = vld [vmem:[#allocation49_spill] sm:$0xff] }
 0x2af   :  { %v5469_v23 = vpop.f32.mrb[78].mxu1 }
 0x2b0   :  { %v2370_v46 = vpop.f32.mrb[14].mxu0  ;;  %v1762_v0 = vpop.f32.mrb[79].mxu1  ;;  %3564 = vmatmul.mubr.f32.gmra.mrb[184].mxu1 %v963_v35 }
 0x2b1   :  { %v5472_v61 = vadd.f32 %v2370_v46, %v5894_v45  ;;  %v2372_v47 = vpop.f32.mrb[15].mxu0  ;;  %2634 = vmatmul.mubr.f32.gmra.mrb[120].mxu0 %v5378_v41  ;;  %3566 = vmatprep.mubr.f32.mxu1 %v964_v9  ;;  %v840_v41 = vld [vmem:[#allocation2 + $0x348] sm:$0xff]  ;;  %v5898_v0 = vld [vmem:[#allocation51_spill] sm:$0xff] }
 0x2b2   :  { %2638 = vmatprep.mubr.f32.mxu0 %v903_v33 }
 0x2b3   :  { %v5475_v48 = vpop.f32.mrb[80].mxu1 }
 0x2b4   :  { %v2375_v53 = vpop.f32.mrb[16].mxu0  ;;  %v1767_v16 = vpop.f32.mrb[81].mxu1  ;;  %3567 = vmatmul.mubr.f32.gmra.mrb[186].mxu1 %v965_v21 }
 0x2b5   :  { %v5478_v1 = vadd.f32 %v2375_v53, %v5895_v10  ;;  %v2377_v15 = vpop.f32.mrb[17].mxu0  ;;  %2639 = vmatmul.mubr.f32.gmra.mrb[122].mxu0 %v5386_v11  ;;  %3569 = vmatprep.mubr.f32.mxu1 %v966_v17  ;;  %v841_v11 = vld [vmem:[#allocation2 + $0x350] sm:$0xff]  ;;  %v5899_v53 = vld [vmem:[#allocation52_spill] sm:$0xff] }
 0x2b6   :  { %2643 = vmatprep.mubr.f32.mxu0 %v5383_v44 }
 0x2b7   :  { %v5482_v37 = vpop.f32.mrb[82].mxu1 }
 0x2b8   :  { %v2380_v52 = vpop.f32.mrb[18].mxu0  ;;  %v1772_v7 = vpop.f32.mrb[83].mxu1  ;;  %3570 = vmatmul.mubr.f32.gmra.mrb[188].mxu1 %v967_v31 }
 0x2b9   :  { %v5485_v50 = vadd.f32 %v2380_v52, %v5896_v49  ;;  %v2382_v30 = vpop.f32.mrb[19].mxu0  ;;  %2644 = vmatmul.mubr.f32.gmra.mrb[124].mxu0 %v840_v41  ;;  %3572 = vmatprep.mubr.f32.mxu1 %v968_v28  ;;  %v5900_v28 = vld [vmem:[#allocation53_spill] sm:$0xff] }
 0x2ba   :  { %2648 = vmatprep.mubr.f32.mxu0 %v5383_v44 }
 0x2bb   :  { %v5488_v32 = vpop.f32.mrb[84].mxu1 }
 0x2bc   :  { %v2385_v5 = vpop.f32.mrb[20].mxu0  ;;  %v1777_v13 = vpop.f32.mrb[85].mxu1  ;;  %3573 = vmatmul.mubr.f32.gmra.mrb[190].mxu1 %v969_v8 }
 0x2bd   :  { %v5491_v43 = vadd.f32 %v2385_v5, %v5897_v14  ;;  %v2387_v35 = vpop.f32.mrb[21].mxu0  ;;  %2649 = vmatmul.mubr.f32.gmra.mrb[126].mxu0 %v841_v11  ;;  %v5901_v11 = vld [vmem:[#allocation54_spill] sm:$0xff] }
 0x2bf   :  { %v5493_v9 = vpop.f32.mrb[86].mxu1 }
 0x2c0   :  { %v2390_v33 = vpop.f32.mrb[22].mxu0  ;;  %v1782_v46 = vpop.f32.mrb[87].mxu1 }
 0x2c1   :  { %v5496_v45 = vadd.f32 %v2390_v33, %v5898_v0  ;;  %v2392_v47 = vpop.f32.mrb[23].mxu0  ;;  %v5902_v46 = vld [vmem:[#allocation55_spill] sm:$0xff] }
 0x2c3   :  { %v5498_v44 = vpop.f32.mrb[88].mxu1 }
 0x2c4   :  { %v2395_v21 = vpop.f32.mrb[24].mxu0  ;;  %v1787_v17 = vpop.f32.mrb[89].mxu1 }
 0x2c5   :  { %v5501_v16 = vadd.f32 %v2395_v21, %v5899_v53  ;;  %v2397_v10 = vpop.f32.mrb[25].mxu0 }
 0x2c7   :  { %v5503_v15 = vpop.f32.mrb[90].mxu1 }
 0x2c8   :  { %v2400_v31 = vpop.f32.mrb[26].mxu0  ;;  %v1792_v41 = vpop.f32.mrb[91].mxu1 }
 0x2c9   :  { %v5506_v52 = vadd.f32 %v2400_v31, %v5900_v28  ;;  %v2402_v7 = vpop.f32.mrb[27].mxu0 }
 0x2cb   :  { %v5508_v49 = vpop.f32.mrb[92].mxu1 }
 0x2cc   :  { %v2405_v30 = vpop.f32.mrb[28].mxu0  ;;  %v1797_v8 = vpop.f32.mrb[93].mxu1 }
 0x2cd   :  { %v5511_v5 = vadd.f32 %v2405_v30, %v5901_v11  ;;  %v2407_v13 = vpop.f32.mrb[29].mxu0 }
 0x2cf   :  { %v5513_v14 = vpop.f32.mrb[94].mxu1 }
 0x2d0   :  { %v2410_v35 = vpop.f32.mrb[30].mxu0  ;;  %v1802_v33 = vpop.f32.mrb[95].mxu1 }
 0x2d1   :  { %v5516_v0 = vadd.f32 %v2410_v35, %v5902_v46  ;;  %v2412_v47 = vpop.f32.mrb[31].mxu0 }
 0x2d3   :  { %v5518_v21 = vpop.f32.mrb[96].mxu1 }
 0x2d4   :  { %5903 = vst [vmem:[#allocation44_spill] sm:$0xff] %v5518_v21  ;;  %v2415_v17 = vpop.f32.mrb[32].mxu0  ;;  %v1807_v53 = vpop.f32.mrb[97].mxu1 }
 0x2d5   :  { %v5521_v10 = vadd.f32 %v2415_v17, %v5397_v20  ;;  %v2417_v31 = vpop.f32.mrb[33].mxu0 }
 0x2d7   :  { %v5523_v41 = vpop.f32.mrb[98].mxu1 }
 0x2d8   :  { %5904 = vst [vmem:[#allocation24_spill] sm:$0xff] %v5523_v41  ;;  %v2420_v28 = vpop.f32.mrb[34].mxu0  ;;  %v1812_v7 = vpop.f32.mrb[99].mxu1 }
 0x2d9   :  { %v5526_v30 = vadd.f32 %v2420_v28, %v5400_v24  ;;  %v2422_v8 = vpop.f32.mrb[35].mxu0 }
 0x2db   :  { %v5528_v11 = vpop.f32.mrb[100].mxu1 }
 0x2dc   :  { %5905 = vst [vmem:[#allocation47_spill] sm:$0xff] %v5528_v11  ;;  %v2425_v13 = vpop.f32.mrb[36].mxu0  ;;  %v1817_v35 = vpop.f32.mrb[101].mxu1 }
 0x2dd   :  { %v5531_v33 = vadd.f32 %v2425_v13, %v5403_v3  ;;  %v2427_v46 = vpop.f32.mrb[37].mxu0 }
 0x2df   :  { %v5533_v47 = vpop.f32.mrb[102].mxu1 }
 0x2e0   :  { %5906 = vst [vmem:[#allocation25_spill] sm:$0xff] %v5533_v47  ;;  %v2430_v20 = vpop.f32.mrb[38].mxu0  ;;  %v1822_v17 = vpop.f32.mrb[103].mxu1 }
 0x2e1   :  { %v5536_v53 = vadd.f32 %v2430_v20, %v5406_v62  ;;  %v2432_v31 = vpop.f32.mrb[39].mxu0 }
 0x2e3   :  { %v5538_v7 = vpop.f32.mrb[104].mxu1 }
 0x2e4   :  { %5907 = vst [vmem:[#allocation50_spill] sm:$0xff] %v5538_v7  ;;  %v2435_v24 = vpop.f32.mrb[40].mxu0  ;;  %v1827_v28 = vpop.f32.mrb[105].mxu1 }
 0x2e5   :  { %v5541_v8 = vadd.f32 %v2435_v24, %v5409_v54  ;;  %v2437_v35 = vpop.f32.mrb[41].mxu0 }
 0x2e7   :  { %v5543_v11 = vpop.f32.mrb[106].mxu1 }
 0x2e8   :  { %5908 = vst [vmem:[#allocation26_spill] sm:$0xff] %v5543_v11  ;;  %v2440_v3 = vpop.f32.mrb[42].mxu0  ;;  %v1832_v13 = vpop.f32.mrb[107].mxu1 }
 0x2e9   :  { %v5546_v46 = vadd.f32 %v2440_v3, %v5412_v59  ;;  %v2442_v17 = vpop.f32.mrb[43].mxu0 }
 0x2eb   :  { %v5548_v47 = vpop.f32.mrb[108].mxu1 }
 0x2ec   :  { %5909 = vst [vmem:[#allocation28_spill] sm:$0xff] %v5548_v47  ;;  %v2445_v62 = vpop.f32.mrb[44].mxu0  ;;  %v1837_v20 = vpop.f32.mrb[109].mxu1 }
 0x2ed   :  { %v5551_v31 = vadd.f32 %v2445_v62, %v5414_v58  ;;  %v2447_v28 = vpop.f32.mrb[45].mxu0 }
 0x2ef   :  { %v5553_v7 = vpop.f32.mrb[110].mxu1 }
 0x2f0   :  { %5910 = vst [vmem:[#allocation30_spill] sm:$0xff] %v5553_v7  ;;  %v2450_v54 = vpop.f32.mrb[46].mxu0  ;;  %v1842_v24 = vpop.f32.mrb[111].mxu1 }
 0x2f1   :  { %v5556_v35 = vadd.f32 %v2450_v54, %v5416_v27  ;;  %v2452_v13 = vpop.f32.mrb[47].mxu0 }
 0x2f3   :  { %v5558_v11 = vpop.f32.mrb[112].mxu1 }
 0x2f4   :  { %5911 = vst [vmem:[#allocation32_spill] sm:$0xff] %v5558_v11  ;;  %v2455_v59 = vpop.f32.mrb[48].mxu0  ;;  %v1847_v3 = vpop.f32.mrb[113].mxu1 }
 0x2f5   :  { %v5561_v17 = vadd.f32 %v2455_v59, %v5418_v51  ;;  %v2457_v20 = vpop.f32.mrb[49].mxu0 }
 0x2f7   :  { %v5563_v47 = vpop.f32.mrb[114].mxu1 }
 0x2f8   :  { %5912 = vst [vmem:[#allocation34_spill] sm:$0xff] %v5563_v47  ;;  %v2460_v58 = vpop.f32.mrb[50].mxu0  ;;  %v1852_v62 = vpop.f32.mrb[115].mxu1 }
 0x2f9   :  { %v5566_v28 = vadd.f32 %v2460_v58, %v5420_v22  ;;  %v2462_v24 = vpop.f32.mrb[51].mxu0 }
 0x2fb   :  { %v5568_v7 = vpop.f32.mrb[116].mxu1 }
 0x2fc   :  { %5913 = vst [vmem:[#allocation36_spill] sm:$0xff] %v5568_v7  ;;  %v2465_v27 = vpop.f32.mrb[52].mxu0  ;;  %v1857_v54 = vpop.f32.mrb[117].mxu1 }
 0x2fd   :  { %v5571_v13 = vadd.f32 %v2465_v27, %v5422_v12  ;;  %v2467_v3 = vpop.f32.mrb[53].mxu0 }
 0x2ff   :  { %v5573_v11 = vpop.f32.mrb[118].mxu1 }
 0x300   :  { %5914 = vst [vmem:[#allocation38_spill] sm:$0xff] %v5573_v11  ;;  %v2470_v51 = vpop.f32.mrb[54].mxu0  ;;  %v1862_v59 = vpop.f32.mrb[119].mxu1 }
 0x301   :  { %v5576_v20 = vadd.f32 %v2470_v51, %v5424_v56  ;;  %v2472_v62 = vpop.f32.mrb[55].mxu0 }
 0x303   :  { %v5578_v47 = vpop.f32.mrb[120].mxu1 }
 0x304   :  { %5915 = vst [vmem:[#allocation40_spill] sm:$0xff] %v5578_v47  ;;  %v2475_v22 = vpop.f32.mrb[56].mxu0  ;;  %v1867_v58 = vpop.f32.mrb[121].mxu1 }
 0x305   :  { %v5581_v24 = vadd.f32 %v2475_v22, %v5426_v63  ;;  %v2477_v54 = vpop.f32.mrb[57].mxu0 }
 0x307   :  { %v5583_v7 = vpop.f32.mrb[122].mxu1 }
 0x308   :  { %5916 = vst [vmem:[#allocation42_spill] sm:$0xff] %v5583_v7  ;;  %v2480_v12 = vpop.f32.mrb[58].mxu0  ;;  %v1872_v27 = vpop.f32.mrb[123].mxu1 }
 0x309   :  { %v5586_v3 = vadd.f32 %v2480_v12, %v5428_v6  ;;  %v2482_v59 = vpop.f32.mrb[59].mxu0 }
 0x30b   :  { %v5588_v11 = vpop.f32.mrb[124].mxu1 }
 0x30c   :  { %5917 = vst [vmem:[#allocation45_spill] sm:$0xff] %v5588_v11  ;;  %v2485_v56 = vpop.f32.mrb[60].mxu0  ;;  %v1877_v51 = vpop.f32.mrb[125].mxu1 }
 0x30d   :  { %v5591_v62 = vadd.f32 %v2485_v56, %v5430_v19  ;;  %v2487_v58 = vpop.f32.mrb[61].mxu0 }
 0x30f   :  { %v5593_v47 = vpop.f32.mrb[126].mxu1 }
 0x310   :  { %5918 = vst [vmem:[#allocation48_spill] sm:$0xff] %v5593_v47  ;;  %v2490_v63 = vpop.f32.mrb[62].mxu0  ;;  %v1882_v22 = vpop.f32.mrb[127].mxu1 }
 0x311   :  { %v5596_v54 = vadd.f32 %v2490_v63, %v5432_v34  ;;  %v2492_v27 = vpop.f32.mrb[63].mxu0 }
 0x313   :  { %v3481_v7 = vpop.f32.mrb[128].mxu1 }
 0x314   :  { %v2495_v6 = vpop.f32.mrb[64].mxu0  ;;  %v2726_v12 = vadd.f32 %v5442_v40, %v3481_v7  ;;  %v2720_v59 = vpop.f32.mrb[129].mxu1 }
 0x315   :  { %v5600_v11 = vadd.f32 %v2495_v6, %v5434_v2  ;;  %v2497_v51 = vpop.f32.mrb[65].mxu0  ;;  %v2721_v19 = vadd.f32 %v5437_v38, %v2720_v59 }
 0x316   :  { %v3110_v56 = vmul.f32 %v2726_v12, %v2726_v12  ;;  %3244 = vst [vmem:[#allocation11 + $0x8] sm:$0xff] %v2726_v12 }
 0x317   :  { %5919 = vst [vmem:[#allocation27_spill] sm:$0xff] %v5600_v11  ;;  %v3039_v58 = vadd.f32 %v2726_v12, %v2721_v19  ;;  %v3109_v47 = vmul.f32 %v2721_v19, %v2721_v19  ;;  %3243 = vst [vmem:[#allocation11] sm:$0xff] %v2721_v19  ;;  %v3484_v22 = vpop.f32.mrb[130].mxu1 }
 0x318   :  { %v2500_v34 = vpop.f32.mrb[66].mxu0  ;;  %v2736_v63 = vadd.f32 %v5452_v4, %v3484_v22  ;;  %v2730_v27 = vpop.f32.mrb[131].mxu1 }
 0x319   :  { %v3173_v41 = vadd.f32 %v3110_v56, %v3109_v47  ;;  %v5605_v40 = vadd.f32 %v2500_v34, %v5439_v42  ;;  %v2502_v7 = vpop.f32.mrb[67].mxu0  ;;  %v2731_v2 = vadd.f32 %v5447_v39, %v2730_v27 }
 0x31a   :  { %3246 = vst [vmem:[#allocation11 + $0x18] sm:$0xff] %v2736_v63  ;;  %v3112_v12 = vmul.f32 %v2736_v63, %v2736_v63 }
 0x31b   :  { %v3040_v6 = vadd.f32 %v3039_v58, %v2731_v2  ;;  %v3111_v38 = vmul.f32 %v2731_v2, %v2731_v2  ;;  %3245 = vst [vmem:[#allocation11 + $0x10] sm:$0xff] %v2731_v2  ;;  %v3487_v59 = vpop.f32.mrb[132].mxu1 }
 0x31c   :  { %v2505_v51 = vpop.f32.mrb[68].mxu0  ;;  %v2746_v19 = vadd.f32 %v5462_v60, %v3487_v59  ;;  %v2740_v11 = vpop.f32.mrb[133].mxu1 }
 0x31d   :  { %v3041_v21 = vadd.f32 %v3040_v6, %v2736_v63  ;;  %v3174_v4 = vadd.f32 %v3173_v41, %v3111_v38  ;;  %v5610_v47 = vadd.f32 %v2505_v51, %v5444_v55  ;;  %v2507_v42 = vpop.f32.mrb[69].mxu0  ;;  %v2741_v56 = vadd.f32 %v5457_v57, %v2740_v11 }
 0x31e   :  { %3248 = vst [vmem:[#allocation11 + $0x28] sm:$0xff] %v2746_v19  ;;  %v3114_v27 = vmul.f32 %v2746_v19, %v2746_v19 }
 0x31f   :  { %v3175_v39 = vadd.f32 %v3174_v4, %v3112_v12  ;;  %v3042_v22 = vadd.f32 %v3041_v21, %v2741_v56  ;;  %v3113_v58 = vmul.f32 %v2741_v56, %v2741_v56  ;;  %3247 = vst [vmem:[#allocation11 + $0x20] sm:$0xff] %v2741_v56  ;;  %v3490_v34 = vpop.f32.mrb[134].mxu1 }
 0x320   :  { %v2510_v7 = vpop.f32.mrb[70].mxu0  ;;  %v2756_v2 = vadd.f32 %v5472_v61, %v3490_v34  ;;  %v2750_v60 = vpop.f32.mrb[135].mxu1 }
 0x321   :  { %v3176_v59 = vadd.f32 %v3175_v39, %v3113_v58  ;;  %v5615_v41 = vadd.f32 %v2510_v7, %v5449_v25  ;;  %v2512_v55 = vpop.f32.mrb[71].mxu0  ;;  %v2751_v63 = vadd.f32 %v5467_v29, %v2750_v60  ;;  %v3043_v6 = vadd.f32 %v3042_v22, %v2746_v19 }
 0x322   :  { %3250 = vst [vmem:[#allocation11 + $0x38] sm:$0xff] %v2756_v2  ;;  %v3116_v12 = vmul.f32 %v2756_v2, %v2756_v2 }
 0x323   :  { %v3044_v57 = vadd.f32 %v3043_v6, %v2751_v63  ;;  %v3115_v11 = vmul.f32 %v2751_v63, %v2751_v63  ;;  %v3177_v21 = vadd.f32 %v3176_v59, %v3114_v27  ;;  %3249 = vst [vmem:[#allocation11 + $0x30] sm:$0xff] %v2751_v63  ;;  %v3493_v38 = vpop.f32.mrb[136].mxu1 }
 0x324   :  { %v2515_v51 = vpop.f32.mrb[72].mxu0  ;;  %v2766_v4 = vadd.f32 %v5485_v50, %v3493_v38  ;;  %v2760_v61 = vpop.f32.mrb[137].mxu1 }
 0x325   :  { %v3178_v42 = vadd.f32 %v3177_v21, %v3115_v11  ;;  %v5620_v56 = vadd.f32 %v2515_v51, %v5454_v18  ;;  %v2517_v25 = vpop.f32.mrb[73].mxu0  ;;  %v2761_v39 = vadd.f32 %v5478_v1, %v2760_v61  ;;  %v3045_v29 = vadd.f32 %v3044_v57, %v2756_v2 }
 0x326   :  { %3252 = vst [vmem:[#allocation11 + $0x48] sm:$0xff] %v2766_v4  ;;  %v3118_v27 = vmul.f32 %v2766_v4, %v2766_v4 }
 0x327   :  { %v3046_v19 = vadd.f32 %v3045_v29, %v2761_v39  ;;  %v3117_v22 = vmul.f32 %v2761_v39, %v2761_v39  ;;  %v3179_v58 = vadd.f32 %v3178_v42, %v3116_v12  ;;  %3251 = vst [vmem:[#allocation11 + $0x40] sm:$0xff] %v2761_v39  ;;  %v3496_v34 = vpop.f32.mrb[138].mxu1 }
 0x328   :  { %v2520_v7 = vpop.f32.mrb[74].mxu0  ;;  %v2776_v60 = vadd.f32 %v5496_v45, %v3496_v34  ;;  %v2770_v50 = vpop.f32.mrb[139].mxu1 }
 0x329   :  { %v3180_v59 = vadd.f32 %v3179_v58, %v3117_v22  ;;  %v5625_v55 = vadd.f32 %v2520_v7, %v5459_v26  ;;  %v2522_v18 = vpop.f32.mrb[75].mxu0  ;;  %v2771_v63 = vadd.f32 %v5491_v43, %v2770_v50  ;;  %v3047_v1 = vadd.f32 %v3046_v19, %v2766_v4 }
 0x32a   :  { %3254 = vst [vmem:[#allocation11 + $0x58] sm:$0xff] %v2776_v60  ;;  %v3120_v21 = vmul.f32 %v2776_v60, %v2776_v60 }
 0x32b   :  { %v3048_v2 = vadd.f32 %v3047_v1, %v2771_v63  ;;  %v3119_v6 = vmul.f32 %v2771_v63, %v2771_v63  ;;  %v3181_v57 = vadd.f32 %v3180_v59, %v3118_v27  ;;  %3253 = vst [vmem:[#allocation11 + $0x50] sm:$0xff] %v2771_v63  ;;  %v3499_v11 = vpop.f32.mrb[140].mxu1 }
 0x32c   :  { %v2525_v38 = vpop.f32.mrb[76].mxu0  ;;  %v2786_v12 = vadd.f32 %v5506_v52, %v3499_v11  ;;  %v2780_v45 = vpop.f32.mrb[141].mxu1 }
 0x32d   :  { %v3182_v51 = vadd.f32 %v3181_v57, %v3119_v6  ;;  %v5630_v61 = vadd.f32 %v2525_v38, %v5464_v36  ;;  %v2527_v26 = vpop.f32.mrb[77].mxu0  ;;  %v2781_v42 = vadd.f32 %v5501_v16, %v2780_v45  ;;  %v3049_v43 = vadd.f32 %v3048_v2, %v2776_v60 }
 0x32e   :  { %3256 = vst [vmem:[#allocation11 + $0x68] sm:$0xff] %v2786_v12  ;;  %v3122_v19 = vmul.f32 %v2786_v12, %v2786_v12 }
 0x32f   :  { %v3050_v4 = vadd.f32 %v3049_v43, %v2781_v42  ;;  %v3121_v25 = vmul.f32 %v2781_v42, %v2781_v42  ;;  %v3183_v39 = vadd.f32 %v3182_v51, %v3120_v21  ;;  %3255 = vst [vmem:[#allocation11 + $0x60] sm:$0xff] %v2781_v42  ;;  %v3502_v29 = vpop.f32.mrb[142].mxu1 }
 0x330   :  { %v2530_v22 = vpop.f32.mrb[78].mxu0  ;;  %v2796_v58 = vadd.f32 %v5516_v0, %v3502_v29  ;;  %v2790_v52 = vpop.f32.mrb[143].mxu1 }
 0x331   :  { %v3184_v34 = vadd.f32 %v3183_v39, %v3121_v25  ;;  %v5635_v27 = vadd.f32 %v2530_v22, %v5469_v23  ;;  %v2532_v36 = vpop.f32.mrb[79].mxu0  ;;  %v2791_v7 = vadd.f32 %v5511_v5, %v2790_v52  ;;  %v3051_v16 = vadd.f32 %v3050_v4, %v2786_v12 }
 0x332   :  { %3258 = vst [vmem:[#allocation11 + $0x78] sm:$0xff] %v2796_v58  ;;  %v3124_v63 = vmul.f32 %v2796_v58, %v2796_v58 }
 0x333   :  { %v3052_v60 = vadd.f32 %v3051_v16, %v2791_v7  ;;  %v3123_v50 = vmul.f32 %v2791_v7, %v2791_v7  ;;  %v3185_v59 = vadd.f32 %v3184_v34, %v3122_v19  ;;  %3257 = vst [vmem:[#allocation11 + $0x70] sm:$0xff] %v2791_v7  ;;  %v3505_v18 = vpop.f32.mrb[144].mxu1 }
 0x334   :  { %v2535_v1 = vpop.f32.mrb[80].mxu0  ;;  %v2806_v2 = vadd.f32 %v5526_v30, %v3505_v18  ;;  %v2800_v0 = vpop.f32.mrb[145].mxu1 }
 0x335   :  { %v3186_v6 = vadd.f32 %v3185_v59, %v3123_v50  ;;  %v5640_v57 = vadd.f32 %v2535_v1, %v5475_v48  ;;  %v2537_v23 = vpop.f32.mrb[81].mxu0  ;;  %v2801_v11 = vadd.f32 %v5521_v10, %v2800_v0  ;;  %v3053_v5 = vadd.f32 %v3052_v60, %v2796_v58 }
 0x336   :  { %3260 = vst [vmem:[#allocation11 + $0x88] sm:$0xff] %v2806_v2  ;;  %v3126_v51 = vmul.f32 %v2806_v2, %v2806_v2 }
 0x337   :  { %v3054_v21 = vadd.f32 %v3053_v5, %v2801_v11  ;;  %v3125_v38 = vmul.f32 %v2801_v11, %v2801_v11  ;;  %v3187_v12 = vadd.f32 %v3186_v6, %v3124_v63  ;;  %3259 = vst [vmem:[#allocation11 + $0x80] sm:$0xff] %v2801_v11  ;;  %v3508_v45 = vpop.f32.mrb[146].mxu1 }
 0x338   :  { %v2540_v26 = vpop.f32.mrb[82].mxu0  ;;  %v2816_v42 = vadd.f32 %v5536_v53, %v3508_v45  ;;  %v2810_v30 = vpop.f32.mrb[147].mxu1 }
 0x339   :  { %v3188_v43 = vadd.f32 %v3187_v12, %v3125_v38  ;;  %v5645_v4 = vadd.f32 %v2540_v26, %v5482_v37  ;;  %v2542_v48 = vpop.f32.mrb[83].mxu0  ;;  %v2811_v25 = vadd.f32 %v5531_v33, %v2810_v30  ;;  %v3055_v10 = vadd.f32 %v3054_v21, %v2806_v2 }
 0x33a   :  { %3262 = vst [vmem:[#allocation11 + $0x98] sm:$0xff] %v2816_v42  ;;  %v3128_v58 = vmul.f32 %v2816_v42, %v2816_v42 }
 0x33b   :  { %v3056_v39 = vadd.f32 %v3055_v10, %v2811_v25  ;;  %v3127_v29 = vmul.f32 %v2811_v25, %v2811_v25  ;;  %v3189_v19 = vadd.f32 %v3188_v43, %v3126_v51  ;;  %3261 = vst [vmem:[#allocation11 + $0x90] sm:$0xff] %v2811_v25  ;;  %v3511_v22 = vpop.f32.mrb[148].mxu1 }
 0x33c   :  { %v2545_v52 = vpop.f32.mrb[84].mxu0  ;;  %v2826_v34 = vadd.f32 %v5546_v46, %v3511_v22  ;;  %v2820_v53 = vpop.f32.mrb[149].mxu1 }
 0x33d   :  { %v3190_v36 = vadd.f32 %v3189_v19, %v3127_v29  ;;  %v5650_v7 = vadd.f32 %v2545_v52, %v5488_v32  ;;  %v2547_v37 = vpop.f32.mrb[85].mxu0  ;;  %v2821_v16 = vadd.f32 %v5541_v8, %v2820_v53  ;;  %v3057_v33 = vadd.f32 %v3056_v39, %v2816_v42 }
 0x33e   :  { %3264 = vst [vmem:[#allocation11 + $0xa8] sm:$0xff] %v2826_v34  ;;  %v3130_v63 = vmul.f32 %v2826_v34, %v2826_v34 }
 0x33f   :  { %v3058_v60 = vadd.f32 %v3057_v33, %v2821_v16  ;;  %v3129_v50 = vmul.f32 %v2821_v16, %v2821_v16  ;;  %v3191_v59 = vadd.f32 %v3190_v36, %v3128_v58  ;;  %3263 = vst [vmem:[#allocation11 + $0xa0] sm:$0xff] %v2821_v16  ;;  %v3514_v18 = vpop.f32.mrb[150].mxu1 }
 0x340   :  { %v2550_v1 = vpop.f32.mrb[86].mxu0  ;;  %v2836_v2 = vadd.f32 %v5556_v35, %v3514_v18  ;;  %v2830_v46 = vpop.f32.mrb[151].mxu1 }
 0x341   :  { %v3192_v0 = vadd.f32 %v3191_v59, %v3129_v50  ;;  %v5655_v6 = vadd.f32 %v2550_v1, %v5493_v9  ;;  %v2552_v32 = vpop.f32.mrb[87].mxu0  ;;  %v2831_v23 = vadd.f32 %v5551_v31, %v2830_v46  ;;  %v3059_v8 = vadd.f32 %v3058_v60, %v2826_v34 }
 0x342   :  { %3266 = vst [vmem:[#allocation11 + $0xb8] sm:$0xff] %v2836_v2  ;;  %v3132_v12 = vmul.f32 %v2836_v2, %v2836_v2 }
 0x343   :  { %v3060_v11 = vadd.f32 %v3059_v8, %v2831_v23  ;;  %v3131_v5 = vmul.f32 %v2831_v23, %v2831_v23  ;;  %v3193_v21 = vadd.f32 %v3192_v0, %v3130_v63  ;;  %3265 = vst [vmem:[#allocation11 + $0xb0] sm:$0xff] %v2831_v23  ;;  %v3517_v38 = vpop.f32.mrb[152].mxu1 }
 0x344   :  { %v2555_v45 = vpop.f32.mrb[88].mxu0  ;;  %v2846_v51 = vadd.f32 %v5566_v28, %v3517_v38  ;;  %v2840_v35 = vpop.f32.mrb[153].mxu1 }
 0x345   :  { %v3194_v26 = vadd.f32 %v3193_v21, %v3131_v5  ;;  %v5660_v42 = vadd.f32 %v2555_v45, %v5498_v44  ;;  %v2557_v9 = vpop.f32.mrb[89].mxu0  ;;  %v2841_v30 = vadd.f32 %v5561_v17, %v2840_v35  ;;  %v3061_v31 = vadd.f32 %v3060_v11, %v2836_v2 }
 0x346   :  { %3268 = vst [vmem:[#allocation11 + $0xc8] sm:$0xff] %v2846_v51  ;;  %v3134_v39 = vmul.f32 %v2846_v51, %v2846_v51 }
 0x347   :  { %v3062_v43 = vadd.f32 %v3061_v31, %v2841_v30  ;;  %v3133_v48 = vmul.f32 %v2841_v30, %v2841_v30  ;;  %v3195_v25 = vadd.f32 %v3194_v26, %v3132_v12  ;;  %3267 = vst [vmem:[#allocation11 + $0xc0] sm:$0xff] %v2841_v30  ;;  %v3520_v10 = vpop.f32.mrb[154].mxu1  ;;  %v5920_v30 = vld [vmem:[#allocation44_spill] sm:$0xff] }
 0x348   :  { %v2560_v29 = vpop.f32.mrb[90].mxu0  ;;  %v2856_v19 = vadd.f32 %v5576_v20, %v3520_v10  ;;  %v2850_v28 = vpop.f32.mrb[155].mxu1 }
 0x349   :  { %v3196_v22 = vadd.f32 %v3195_v25, %v3133_v48  ;;  %v5665_v58 = vadd.f32 %v2560_v29, %v5503_v15  ;;  %v2562_v44 = vpop.f32.mrb[91].mxu0  ;;  %v2851_v52 = vadd.f32 %v5571_v13, %v2850_v28  ;;  %v3063_v17 = vadd.f32 %v3062_v43, %v2846_v51  ;;  %v5921_v43 = vld [vmem:[#allocation27_spill] sm:$0xff] }
 0x34a   :  { %3270 = vst [vmem:[#allocation11 + $0xd8] sm:$0xff] %v2856_v19  ;;  %v3136_v16 = vmul.f32 %v2856_v19, %v2856_v19 }
 0x34b   :  { %v3064_v34 = vadd.f32 %v3063_v17, %v2851_v52  ;;  %v3135_v53 = vmul.f32 %v2851_v52, %v2851_v52  ;;  %v3197_v36 = vadd.f32 %v3196_v22, %v3134_v39  ;;  %3269 = vst [vmem:[#allocation11 + $0xd0] sm:$0xff] %v2851_v52  ;;  %v3523_v37 = vpop.f32.mrb[156].mxu1  ;;  %v5922_v52 = vld [vmem:[#allocation24_spill] sm:$0xff] }
 0x34c   :  { %v2565_v33 = vpop.f32.mrb[92].mxu0  ;;  %v2866_v60 = vadd.f32 %v5586_v3, %v3523_v37  ;;  %v2860_v20 = vpop.f32.mrb[157].mxu1 }
 0x34d   :  { %v3198_v50 = vadd.f32 %v3197_v36, %v3135_v53  ;;  %v5670_v59 = vadd.f32 %v2565_v33, %v5508_v49  ;;  %v2567_v15 = vpop.f32.mrb[93].mxu0  ;;  %v2861_v18 = vadd.f32 %v5581_v24, %v2860_v20  ;;  %v3065_v13 = vadd.f32 %v3064_v34, %v2856_v19 }
 0x34e   :  { %3272 = vst [vmem:[#allocation11 + $0xe8] sm:$0xff] %v2866_v60  ;;  %v3138_v0 = vmul.f32 %v2866_v60, %v2866_v60 }
 0x34f   :  { %v3066_v63 = vadd.f32 %v3065_v13, %v2861_v18  ;;  %v3137_v1 = vmul.f32 %v2861_v18, %v2861_v18  ;;  %v3199_v2 = vadd.f32 %v3198_v50, %v3136_v16  ;;  %3271 = vst [vmem:[#allocation11 + $0xe0] sm:$0xff] %v2861_v18  ;;  %v3526_v46 = vpop.f32.mrb[158].mxu1  ;;  %v5923_v13 = vld [vmem:[#allocation47_spill] sm:$0xff] }
 0x350   :  { %v2570_v32 = vpop.f32.mrb[94].mxu0  ;;  %v2876_v23 = vadd.f32 %v5596_v54, %v3526_v46  ;;  %v2870_v3 = vpop.f32.mrb[159].mxu1 }
 0x351   :  { %v3200_v8 = vadd.f32 %v3199_v2, %v3137_v1  ;;  %v5675_v11 = vadd.f32 %v2570_v32, %v5513_v14  ;;  %v2572_v49 = vpop.f32.mrb[95].mxu0  ;;  %v2871_v5 = vadd.f32 %v5591_v62, %v2870_v3  ;;  %v3067_v24 = vadd.f32 %v3066_v63, %v2866_v60 }
 0x352   :  { %3274 = vst [vmem:[#allocation11 + $0xf8] sm:$0xff] %v2876_v23  ;;  %v3140_v51 = vmul.f32 %v2876_v23, %v2876_v23 }
 0x353   :  { %v3068_v21 = vadd.f32 %v3067_v24, %v2871_v5  ;;  %v3139_v38 = vmul.f32 %v2871_v5, %v2871_v5  ;;  %v3201_v12 = vadd.f32 %v3200_v8, %v3138_v0  ;;  %3273 = vst [vmem:[#allocation11 + $0xf0] sm:$0xff] %v2871_v5  ;;  %v3529_v45 = vpop.f32.mrb[160].mxu1  ;;  %v5924_v24 = vld [vmem:[#allocation25_spill] sm:$0xff] }
 0x354   :  { %v2575_v35 = vpop.f32.mrb[96].mxu0  ;;  %v2886_v26 = vadd.f32 %v5605_v40, %v3529_v45  ;;  %v2880_v54 = vpop.f32.mrb[161].mxu1 }
 0x355   :  { %v3202_v9 = vadd.f32 %v3201_v12, %v3139_v38  ;;  %v5680_v31 = vadd.f32 %v2575_v35, %v5920_v30  ;;  %v2577_v14 = vpop.f32.mrb[97].mxu0  ;;  %v2881_v48 = vadd.f32 %v5921_v43, %v2880_v54  ;;  %v3069_v62 = vadd.f32 %v3068_v21, %v2876_v23  ;;  %v5925_v43 = vld [vmem:[#allocation50_spill] sm:$0xff] }
 0x356   :  { %3276 = vst [vmem:[#allocation11 + $0x108] sm:$0xff] %v2886_v26  ;;  %v3142_v19 = vmul.f32 %v2886_v26, %v2886_v26 }
 0x357   :  { %v3070_v25 = vadd.f32 %v3069_v62, %v2881_v48  ;;  %v3141_v10 = vmul.f32 %v2881_v48, %v2881_v48  ;;  %v3203_v39 = vadd.f32 %v3202_v9, %v3140_v51  ;;  %3275 = vst [vmem:[#allocation11 + $0x100] sm:$0xff] %v2881_v48  ;;  %v3532_v29 = vpop.f32.mrb[162].mxu1 }
 0x358   :  { %v2580_v28 = vpop.f32.mrb[98].mxu0  ;;  %v2896_v22 = vadd.f32 %v5615_v41, %v3532_v29  ;;  %v2890_v40 = vpop.f32.mrb[163].mxu1 }
 0x359   :  { %v3204_v44 = vadd.f32 %v3203_v39, %v3141_v10  ;;  %v5685_v17 = vadd.f32 %v2580_v28, %v5922_v52  ;;  %v2582_v34 = vpop.f32.mrb[99].mxu0  ;;  %v2891_v53 = vadd.f32 %v5610_v47, %v2890_v40  ;;  %v3071_v36 = vadd.f32 %v3070_v25, %v2886_v26  ;;  %v5926_v52 = vld [vmem:[#allocation26_spill] sm:$0xff] }
 0x35a   :  { %3278 = vst [vmem:[#allocation11 + $0x118] sm:$0xff] %v2896_v22  ;;  %v3144_v20 = vmul.f32 %v2896_v22, %v2896_v22 }
 0x35b   :  { %v3072_v37 = vadd.f32 %v3071_v36, %v2891_v53  ;;  %v3143_v16 = vmul.f32 %v2891_v53, %v2891_v53  ;;  %v3205_v33 = vadd.f32 %v3204_v44, %v3142_v19  ;;  %3277 = vst [vmem:[#allocation11 + $0x110] sm:$0xff] %v2891_v53  ;;  %v3535_v60 = vpop.f32.mrb[164].mxu1 }
 0x35c   :  { %v2585_v50 = vpop.f32.mrb[100].mxu0  ;;  %v2906_v15 = vadd.f32 %v5625_v55, %v3535_v60  ;;  %v2900_v41 = vpop.f32.mrb[165].mxu1 }
 0x35d   :  { %v3206_v18 = vadd.f32 %v3205_v33, %v3143_v16  ;;  %v5690_v63 = vadd.f32 %v2585_v50, %v5923_v13  ;;  %v2587_v1 = vpop.f32.mrb[101].mxu0  ;;  %v2901_v2 = vadd.f32 %v5620_v56, %v2900_v41  ;;  %v3073_v47 = vadd.f32 %v3072_v37, %v2896_v22 }
 0x35e   :  { %3280 = vst [vmem:[#allocation11 + $0x128] sm:$0xff] %v2906_v15  ;;  %v3146_v3 = vmul.f32 %v2906_v15, %v2906_v15 }
 0x35f   :  { %v3074_v46 = vadd.f32 %v3073_v47, %v2901_v2  ;;  %v3145_v0 = vmul.f32 %v2901_v2, %v2901_v2  ;;  %v3207_v32 = vadd.f32 %v3206_v18, %v3144_v20  ;;  %3279 = vst [vmem:[#allocation11 + $0x120] sm:$0xff] %v2901_v2  ;;  %v3538_v23 = vpop.f32.mrb[166].mxu1  ;;  %v5927_v18 = vld [vmem:[#allocation28_spill] sm:$0xff] }
 0x360   :  { %v2590_v8 = vpop.f32.mrb[102].mxu0  ;;  %v2916_v49 = vadd.f32 %v5635_v27, %v3538_v23  ;;  %v2910_v55 = vpop.f32.mrb[167].mxu1 }
 0x361   :  { %v3208_v5 = vadd.f32 %v3207_v32, %v3145_v0  ;;  %v5695_v21 = vadd.f32 %v2590_v8, %v5924_v24  ;;  %v2592_v38 = vpop.f32.mrb[103].mxu0  ;;  %v2911_v12 = vadd.f32 %v5630_v61, %v2910_v55  ;;  %v3075_v56 = vadd.f32 %v3074_v46, %v2906_v15  ;;  %v5928_v55 = vld [vmem:[#allocation30_spill] sm:$0xff] }
 0x362   :  { %3282 = vst [vmem:[#allocation11 + $0x138] sm:$0xff] %v2916_v49  ;;  %v3148_v54 = vmul.f32 %v2916_v49, %v2916_v49 }
 0x363   :  { %v3076_v45 = vadd.f32 %v3075_v56, %v2911_v12  ;;  %v3147_v51 = vmul.f32 %v2911_v12, %v2911_v12  ;;  %v3209_v35 = vadd.f32 %v3208_v5, %v3146_v3  ;;  %3281 = vst [vmem:[#allocation11 + $0x130] sm:$0xff] %v2911_v12  ;;  %v3541_v26 = vpop.f32.mrb[168].mxu1 }
 0x364   :  { %v2595_v9 = vpop.f32.mrb[104].mxu0  ;;  %v2926_v30 = vadd.f32 %v5645_v4, %v3541_v26  ;;  %v2920_v27 = vpop.f32.mrb[169].mxu1 }
 0x365   :  { %v3210_v14 = vadd.f32 %v3209_v35, %v3147_v51  ;;  %v5700_v48 = vadd.f32 %v2595_v9, %v5925_v43  ;;  %v2597_v62 = vpop.f32.mrb[105].mxu0  ;;  %v2921_v25 = vadd.f32 %v5640_v57, %v2920_v27  ;;  %v3077_v61 = vadd.f32 %v3076_v45, %v2916_v49 }
 0x366   :  { %3284 = vst [vmem:[#allocation11 + $0x148] sm:$0xff] %v2926_v30  ;;  %v3150_v28 = vmul.f32 %v2926_v30, %v2926_v30 }
 0x367   :  { %v3078_v10 = vadd.f32 %v3077_v61, %v2921_v25  ;;  %v3149_v39 = vmul.f32 %v2921_v25, %v2921_v25  ;;  %v3211_v29 = vadd.f32 %v3210_v14, %v3148_v54  ;;  %3283 = vst [vmem:[#allocation11 + $0x140] sm:$0xff] %v2921_v25  ;;  %v3544_v19 = vpop.f32.mrb[170].mxu1 }
 0x368   :  { %v2600_v22 = vpop.f32.mrb[106].mxu0  ;;  %v2936_v40 = vadd.f32 %v5655_v6, %v3544_v19  ;;  %v2930_v4 = vpop.f32.mrb[171].mxu1 }
 0x369   :  { %v3212_v44 = vadd.f32 %v3211_v29, %v3149_v39  ;;  %v5705_v34 = vadd.f32 %v2600_v22, %v5926_v52  ;;  %v2602_v53 = vpop.f32.mrb[107].mxu0  ;;  %v2931_v36 = vadd.f32 %v5650_v7, %v2930_v4  ;;  %v3079_v57 = vadd.f32 %v3078_v10, %v2926_v30  ;;  %v5929_v30 = vld [vmem:[#allocation32_spill] sm:$0xff]  ;;  %v5930_v22 = vld [vmem:[#allocation34_spill] sm:$0xff] }
 0x36a   :  { %3286 = vst [vmem:[#allocation11 + $0x158] sm:$0xff] %v2936_v40  ;;  %v3152_v20 = vmul.f32 %v2936_v40, %v2936_v40 }
 0x36b   :  { %v3080_v37 = vadd.f32 %v3079_v57, %v2931_v36  ;;  %v3151_v16 = vmul.f32 %v2931_v36, %v2931_v36  ;;  %v3213_v33 = vadd.f32 %v3212_v44, %v3150_v28  ;;  %3285 = vst [vmem:[#allocation11 + $0x150] sm:$0xff] %v2931_v36  ;;  %v3547_v60 = vpop.f32.mrb[172].mxu1 }
 0x36c   :  { %v2605_v50 = vpop.f32.mrb[108].mxu0  ;;  %v2946_v15 = vadd.f32 %v5665_v58, %v3547_v60  ;;  %v2940_v6 = vpop.f32.mrb[173].mxu1 }
 0x36d   :  { %v3214_v41 = vadd.f32 %v3213_v33, %v3151_v16  ;;  %v5710_v13 = vadd.f32 %v2605_v50, %v5927_v18  ;;  %v2607_v1 = vpop.f32.mrb[109].mxu0  ;;  %v2941_v2 = vadd.f32 %v5660_v42, %v2940_v6  ;;  %v3081_v7 = vadd.f32 %v3080_v37, %v2936_v40 }
 0x36e   :  { %3288 = vst [vmem:[#allocation11 + $0x168] sm:$0xff] %v2946_v15  ;;  %v3154_v23 = vmul.f32 %v2946_v15, %v2946_v15 }
 0x36f   :  { %v3082_v47 = vadd.f32 %v3081_v7, %v2941_v2  ;;  %v3153_v46 = vmul.f32 %v2941_v2, %v2941_v2  ;;  %v3215_v0 = vadd.f32 %v3214_v41, %v3152_v20  ;;  %3287 = vst [vmem:[#allocation11 + $0x160] sm:$0xff] %v2941_v2  ;;  %v3550_v32 = vpop.f32.mrb[174].mxu1  ;;  %v5931_v20 = vld [vmem:[#allocation36_spill] sm:$0xff] }
 0x370   :  { %v2610_v3 = vpop.f32.mrb[110].mxu0  ;;  %v2956_v8 = vadd.f32 %v5675_v11, %v3550_v32  ;;  %v2950_v58 = vpop.f32.mrb[175].mxu1 }
 0x371   :  { %v3216_v49 = vadd.f32 %v3215_v0, %v3153_v46  ;;  %v3886_v5 = vadd.f32 %v2610_v3, %v5928_v55  ;;  %v2612_v24 = vpop.f32.mrb[111].mxu0  ;;  %v2951_v38 = vadd.f32 %v5670_v59, %v2950_v58  ;;  %v3083_v12 = vadd.f32 %v3082_v47, %v2946_v15 }
 0x372   :  { %3290 = vst [vmem:[#allocation11 + $0x178] sm:$0xff] %v2956_v8  ;;  %v3156_v35 = vmul.f32 %v2956_v8, %v2956_v8 }
 0x373   :  { %v3084_v42 = vadd.f32 %v3083_v12, %v2951_v38  ;;  %v3155_v56 = vmul.f32 %v2951_v38, %v2951_v38  ;;  %v3217_v45 = vadd.f32 %v3216_v49, %v3154_v23  ;;  %3289 = vst [vmem:[#allocation11 + $0x170] sm:$0xff] %v2951_v38  ;;  %v3553_v51 = vpop.f32.mrb[176].mxu1 }
 0x374   :  { %v2615_v26 = vpop.f32.mrb[112].mxu0  ;;  %v2966_v54 = vadd.f32 %v5685_v17, %v3553_v51  ;;  %v2960_v9 = vpop.f32.mrb[177].mxu1 }
 0x375   :  { %v3218_v11 = vadd.f32 %v3217_v45, %v3155_v56  ;;  %v3887_v27 = vadd.f32 %v2615_v26, %v5929_v30  ;;  %v2617_v14 = vpop.f32.mrb[113].mxu0  ;;  %v2961_v43 = vadd.f32 %v5680_v31, %v2960_v9  ;;  %v3085_v62 = vadd.f32 %v3084_v42, %v2956_v8 }
 0x376   :  { %3292 = vst [vmem:[#allocation11 + $0x188] sm:$0xff] %v2966_v54  ;;  %v3158_v39 = vmul.f32 %v2966_v54, %v2966_v54 }
 0x377   :  { %v3086_v59 = vadd.f32 %v3085_v62, %v2961_v43  ;;  %v3157_v25 = vmul.f32 %v2961_v43, %v2961_v43  ;;  %v3219_v61 = vadd.f32 %v3218_v11, %v3156_v35  ;;  %3291 = vst [vmem:[#allocation11 + $0x180] sm:$0xff] %v2961_v43  ;;  %v3556_v10 = vpop.f32.mrb[178].mxu1 }
 0x378   :  { %v2620_v29 = vpop.f32.mrb[114].mxu0  ;;  %v2976_v19 = vadd.f32 %v5695_v21, %v3556_v10  ;;  %v2970_v28 = vpop.f32.mrb[179].mxu1 }
 0x379   :  { %v3220_v17 = vadd.f32 %v3219_v61, %v3157_v25  ;;  %v3888_v40 = vadd.f32 %v2620_v29, %v5930_v22  ;;  %v2622_v4 = vpop.f32.mrb[115].mxu0  ;;  %v2971_v44 = vadd.f32 %v5690_v63, %v2970_v28  ;;  %v3087_v52 = vadd.f32 %v3086_v59, %v2966_v54  ;;  %v5934_v61 = vld [vmem:[#allocation42_spill] sm:$0xff] }
 0x37a   :  { %3294 = vst [vmem:[#allocation11 + $0x198] sm:$0xff] %v2976_v19  ;;  %v3160_v37 = vmul.f32 %v2976_v19, %v2976_v19 }
 0x37b   :  { %v3088_v31 = vadd.f32 %v3087_v52, %v2971_v44  ;;  %v3159_v53 = vmul.f32 %v2971_v44, %v2971_v44  ;;  %v3221_v36 = vadd.f32 %v3220_v17, %v3158_v39  ;;  %3293 = vst [vmem:[#allocation11 + $0x190] sm:$0xff] %v2971_v44  ;;  %v3559_v57 = vpop.f32.mrb[180].mxu1 }
 0x37c   :  { %v2625_v16 = vpop.f32.mrb[116].mxu0  ;;  %v2986_v33 = vadd.f32 %v5705_v34, %v3559_v57  ;;  %v2980_v60 = vpop.f32.mrb[181].mxu1  ;;  %v5932_v34 = vld [vmem:[#allocation38_spill] sm:$0xff] }
 0x37d   :  { %v3222_v21 = vadd.f32 %v3221_v36, %v3159_v53  ;;  %v3889_v50 = vadd.f32 %v2625_v16, %v5931_v20  ;;  %v2627_v15 = vpop.f32.mrb[117].mxu0  ;;  %v2981_v6 = vadd.f32 %v5700_v48, %v2980_v60  ;;  %v3089_v41 = vadd.f32 %v3088_v31, %v2976_v19  ;;  %v5935_v53 = vld [vmem:[#allocation45_spill] sm:$0xff] }
 0x37e   :  { %3296 = vst [vmem:[#allocation11 + $0x1a8] sm:$0xff] %v2986_v33  ;;  %v3162_v7 = vmul.f32 %v2986_v33, %v2986_v33 }
 0x37f   :  { %v3090_v63 = vadd.f32 %v3089_v41, %v2981_v6  ;;  %v3161_v18 = vmul.f32 %v2981_v6, %v2981_v6  ;;  %v3223_v1 = vadd.f32 %v3222_v21, %v3160_v37  ;;  %3295 = vst [vmem:[#allocation11 + $0x1a0] sm:$0xff] %v2981_v6  ;;  %v3562_v2 = vpop.f32.mrb[182].mxu1 }
 0x380   :  { %v2630_v47 = vpop.f32.mrb[118].mxu0  ;;  %v2996_v46 = vadd.f32 %v3886_v5, %v3562_v2  ;;  %v2990_v0 = vpop.f32.mrb[183].mxu1  ;;  %v5933_v5 = vld [vmem:[#allocation40_spill] sm:$0xff] }
 0x381   :  { %v3224_v32 = vadd.f32 %v3223_v1, %v3161_v18  ;;  %v3890_v23 = vadd.f32 %v2630_v47, %v5932_v34  ;;  %v2632_v3 = vpop.f32.mrb[119].mxu0  ;;  %v2991_v8 = vadd.f32 %v5710_v13, %v2990_v0  ;;  %v3091_v58 = vadd.f32 %v3090_v63, %v2986_v33  ;;  %v5936_v63 = vld [vmem:[#allocation48_spill] sm:$0xff] }
 0x382   :  { %3298 = vst [vmem:[#allocation11 + $0x1b8] sm:$0xff] %v2996_v46  ;;  %v3164_v38 = vmul.f32 %v2996_v46, %v2996_v46 }
 0x383   :  { %v3092_v48 = vadd.f32 %v3091_v58, %v2991_v8  ;;  %v3163_v49 = vmul.f32 %v2991_v8, %v2991_v8  ;;  %v3225_v55 = vadd.f32 %v3224_v32, %v3162_v7  ;;  %3297 = vst [vmem:[#allocation11 + $0x1b0] sm:$0xff] %v2991_v8  ;;  %v3565_v24 = vpop.f32.mrb[184].mxu1 }
 0x384   :  { %v2635_v12 = vpop.f32.mrb[120].mxu0  ;;  %v3006_v42 = vadd.f32 %v3888_v40, %v3565_v24  ;;  %v3000_v56 = vpop.f32.mrb[185].mxu1 }
 0x385   :  { %v3226_v45 = vadd.f32 %v3225_v55, %v3163_v49  ;;  %v3891_v51 = vadd.f32 %v2635_v12, %v5933_v5  ;;  %v2637_v35 = vpop.f32.mrb[121].mxu0  ;;  %v3001_v26 = vadd.f32 %v3887_v27, %v3000_v56  ;;  %v3093_v54 = vadd.f32 %v3092_v48, %v2996_v46 }
 0x386   :  { %3300 = vst [vmem:[#allocation11 + $0x1c8] sm:$0xff] %v3006_v42  ;;  %v3166_v14 = vmul.f32 %v3006_v42, %v3006_v42 }
 0x387   :  { %v3094_v9 = vadd.f32 %v3093_v54, %v3001_v26  ;;  %v3165_v13 = vmul.f32 %v3001_v26, %v3001_v26  ;;  %v3227_v11 = vadd.f32 %v3226_v45, %v3164_v38  ;;  %3299 = vst [vmem:[#allocation11 + $0x1c0] sm:$0xff] %v3001_v26  ;;  %v3568_v30 = vpop.f32.mrb[186].mxu1 }
 0x388   :  { %v2640_v43 = vpop.f32.mrb[122].mxu0  ;;  %v3016_v62 = vadd.f32 %v3890_v23, %v3568_v30  ;;  %v3010_v59 = vpop.f32.mrb[187].mxu1 }
 0x389   :  { %v3228_v25 = vadd.f32 %v3227_v11, %v3165_v13  ;;  %v3892_v10 = vadd.f32 %v2640_v43, %v5934_v61  ;;  %v2642_v39 = vpop.f32.mrb[123].mxu0  ;;  %v3011_v29 = vadd.f32 %v3889_v50, %v3010_v59  ;;  %v3095_v19 = vadd.f32 %v3094_v9, %v3006_v42 }
 0x38a   :  { %3302 = vst [vmem:[#allocation11 + $0x1d8] sm:$0xff] %v3016_v62  ;;  %v3168_v40 = vmul.f32 %v3016_v62, %v3016_v62 }
 0x38b   :  { %v3096_v28 = vadd.f32 %v3095_v19, %v3011_v29  ;;  %v3167_v27 = vmul.f32 %v3011_v29, %v3011_v29  ;;  %v3229_v17 = vadd.f32 %v3228_v25, %v3166_v14  ;;  %3301 = vst [vmem:[#allocation11 + $0x1d0] sm:$0xff] %v3011_v29  ;;  %v3571_v22 = vpop.f32.mrb[188].mxu1 }
 0x38c   :  { %v2645_v4 = vpop.f32.mrb[124].mxu0  ;;  %v3026_v44 = vadd.f32 %v3892_v10, %v3571_v22  ;;  %v3020_v52 = vpop.f32.mrb[189].mxu1 }
 0x38d   :  { %v3230_v31 = vadd.f32 %v3229_v17, %v3167_v27  ;;  %v3893_v36 = vadd.f32 %v2645_v4, %v5935_v53  ;;  %v2647_v57 = vpop.f32.mrb[125].mxu0  ;;  %v3021_v37 = vadd.f32 %v3891_v51, %v3020_v52  ;;  %v3097_v16 = vadd.f32 %v3096_v28, %v3016_v62 }
 0x38e   :  { %3304 = vst [vmem:[#allocation11 + $0x1e8] sm:$0xff] %v3026_v44  ;;  %v3170_v50 = vmul.f32 %v3026_v44, %v3026_v44 }
 0x38f   :  { %v3098_v33 = vadd.f32 %v3097_v16, %v3021_v37  ;;  %v3169_v60 = vmul.f32 %v3021_v37, %v3021_v37  ;;  %v3231_v21 = vadd.f32 %v3230_v31, %v3168_v40  ;;  %3303 = vst [vmem:[#allocation11 + $0x1e0] sm:$0xff] %v3021_v37  ;;  %v3574_v20 = vpop.f32.mrb[190].mxu1 }
 0x390   :  { %v2650_v15 = vpop.f32.mrb[126].mxu0  ;;  %v3030_v6 = vpop.f32.mrb[191].mxu1 }
 0x391   :  { %v3232_v41 = vadd.f32 %v3231_v21, %v3169_v60  ;;  %v3894_v18 = vadd.f32 %v2650_v15, %v5936_v63  ;;  %v2652_v1 = vpop.f32.mrb[127].mxu0  ;;  %v3031_v2 = vadd.f32 %v3893_v36, %v3030_v6  ;;  %v3099_v7 = vadd.f32 %v3098_v33, %v3026_v44 }
 0x393   :  { %v3036_v47 = vadd.f32 %v3894_v18, %v3574_v20  ;;  %v3100_v46 = vadd.f32 %v3099_v7, %v3031_v2  ;;  %v3171_v0 = vmul.f32 %v3031_v2, %v3031_v2  ;;  %v3233_v32 = vadd.f32 %v3232_v41, %v3170_v50  ;;  %3305 = vst [vmem:[#allocation11 + $0x1f0] sm:$0xff] %v3031_v2 }
 0x395   :  { %v3172_v34 = vmul.f32 %v3036_v47, %v3036_v47  ;;  %3306 = vst [vmem:[#allocation11 + $0x1f8] sm:$0xff] %v3036_v47  ;;  %v3101_v23 = vadd.f32 %v3100_v46, %v3036_v47  ;;  %v3234_v3 = vadd.f32 %v3233_v32, %v3171_v0 }
 0x396   :  { %4240 = shalt.err (!%p4237_p6)
}
 0x397   :  { %s4241_s30 = scalar_lea.hbm %s5782_s4, 8192 }
 0x398   :  { %p4242_p7 = scmp.ne.s32.totalorder %s5782_s4, %s4241_s30  ;;  %p4245_p8 = scmp.lt.u32.totalorder %s4241_s30, %s5782_s4 }
 0x39a   :  { %p4247_p9 = pnand %p4245_p8, %p4242_p7 }
 0x39c   :  { %4250 = shalt.err (!%p4247_p9)
}
 0x39d   :  { %3318 = dma.vmem_to_hbm [thread:$0]  %s3313_s26, 8192, %s5782_s4, [#allocation5], %s4306_s7, %s4306_s7, %s4307_s8   ;;  %v3102_v8 = vrot.slane %v3101_v23, 4  ;;  %v3235_v58 = vadd.f32 %v3234_v3, %v3172_v34 }
 0x39e   :  { %s4328_s13 = smov [#allocation12]   ;;  %s4329_s2 = smov [#allocation14]  }
 0x39f   :  { %v3236_v48 = vrot.slane %v3235_v58, 4  ;;  %v3103_v49 = vadd.f32 %v3102_v8, %v3101_v23  ;;  %s3328_s15 = sshll.u32 %s4328_s13, 4  ;;  %s3341_s16 = sshll.u32 %s4329_s2, 4  ;;  %s3329_s15 = int_to_ptr.vmem [resolvable:$true] %s3328_s15  ;;  %s5746_s16 = int_to_ptr.vmem [resolvable:$true] %s3341_s16 }
 0x3a0   :  { %s4251_s4 = scalar_lea.vmem %s3329_s15, 16  ;;  %s4255_s7 = scalar_lea.vmem %s3329_s15, 32 }
 0x3a1   :  { %v3104_v55 = vrot.slane %v3103_v49, 2  ;;  %v3237_v24 = vadd.f32 %v3236_v48, %v3235_v58  ;;  %p4252_p10 = scmp.ne.s32.totalorder %s3329_s15, %s4251_s4  ;;  %p4256_p11 = scmp.lt.s32.totalorder %s3329_s15, %s3329_s15 }
 0x3a2   :  { %p4257_p12 = scmp.lt.s32.totalorder %s4255_s7, %s4251_s4 }
 0x3a3   :  { %v3105_v38 = vadd.f32 %v3104_v55, %v3103_v49  ;;  %v3238_v12 = vrot.slane %v3237_v24, 2 }
 0x3a4   :  { %p4258_p13 = por %p4257_p12, %p4256_p11 }
 0x3a5   :  { %v3106_v42 = vrot.slane %v3105_v38, 1  ;;  %v3239_v56 = vadd.f32 %v3238_v12, %v3237_v24 }
 0x3a6   :  { %p4259_p0 = pnand %p4258_p13, %p4252_p10 }
 0x3a7   :  { %v3107_v45 = vadd.f32 %v3106_v42, %v3105_v38  ;;  %v3240_v5 = vrot.slane %v3239_v56, 1 }
 0x3a9   :  { %3108 = vst [vmem:[#allocation12] sm:$0x1] %v3107_v45  ;;  %v3241_v51 = vadd.f32 %v3240_v5, %v3239_v56 }
 0x3aa   :  { %4262 = shalt.err (!%p4259_p0)
}
 0x3ab   :  { %s4263_s18 = scalar_lea.hbm %s5783_s5, 16 }
 0x3ac   :  { %p4264_p1 = scmp.ne.s32.totalorder %s5783_s5, %s4263_s18  ;;  %p4267_p2 = scmp.lt.u32.totalorder %s4263_s18, %s5783_s5 }
 0x3ae   :  { %p4269_p3 = pnand %p4267_p2, %p4264_p1 }
 0x3b0   :  { %4272 = shalt.err (!%p4269_p3)
}
 0x3b1   :  { %3331 = dma.vmem_to_hbm [thread:$0]  %s3329_s15, 16, %s5783_s5, [#allocation13]   ;;  %3242 = vst [vmem:[#allocation14] sm:$0x1] %v3241_v51 }
 0x3b2   :  { %s4273_s24 = scalar_lea.vmem %s5746_s16, 16  ;;  %s4277_s25 = scalar_lea.vmem %s5746_s16, 32 }
 0x3b3   :  { %p4274_p4 = scmp.ne.s32.totalorder %s5746_s16, %s4273_s24  ;;  %p4278_p5 = scmp.lt.s32.totalorder %s5746_s16, %s5746_s16 }
 0x3b4   :  { %p4279_p6 = scmp.lt.s32.totalorder %s4277_s25, %s4273_s24 }
 0x3b6   :  { %p4280_p7 = por %p4279_p6, %p4278_p5 }
 0x3b8   :  { %p4281_p8 = pnand %p4280_p7, %p4274_p4 }
 0x3ba   :  { %4284 = shalt.err (!%p4281_p8)
}
 0x3bb   :  { %s4285_s27 = scalar_lea.hbm %s5784_s6, 16 }
 0x3bc   :  { %p4286_p9 = scmp.ne.s32.totalorder %s5784_s6, %s4285_s27  ;;  %p4289_p10 = scmp.lt.u32.totalorder %s4285_s27, %s5784_s6 }
 0x3be   :  { %p4291_p11 = pnand %p4289_p10, %p4286_p9 }
 0x3c0   :  { %4294 = shalt.err (!%p4291_p11)
}
 0x3c1   :  { %3344 = dma.vmem_to_hbm [thread:$0]  %s5746_s16, 16, %s5784_s6, [#allocation13]  }
 0x3c2   :  { %4301 = dma.done.wait [#allocation5], 8192  }
 0x3c3   :  { %4302 = vsyncadd [#allocation5], 4294959104 }
 0x3c4   :  { %4303 = dma.done.wait [#allocation13], 32  }
 0x3c5   :  { %4304 = vsyncadd [#allocation13], 4294967264 }
 0x3c6   :  { %3354 = vsyncpa [#allocation4], 1 }
 0x3c7   :  { %3355 = vsyncpa [#allocation7], 1 }
 0x3c8   :  { %3356 = vsyncpa [#allocation10], 1 }
 0x3c9   :  { %3357 = vsyncpa [#allocation5], 1 }
 0x3ca   :  { %3358 = vsyncpa [#allocation13], 1 }

</bundles_post_ra>
